<compile_context>
chip_gen: v7x
topology: tpu7x:2x2x1
jax: 0.10.0
libtpu: 0.0.40
codegen_flags: <defaults>
</compile_context>

<pallas_src>
import functools
import math

import numpy as np
import jax
import jax.numpy as jnp
from jax.experimental import pallas as pl
from jax.experimental.pallas import tpu as pltpu

# ----------------------------- configuration -------------------------------
DIM = 48
DEPTH = 2
HEADS = 4
DIM_HEAD = 16
NUM_TOKENS = 64
NUM_MEM = 4                                   # num_memory_tokens
SEQ_LEN = 8
FF_MULT = 4
DIM_INNER_ATTN = HEADS * DIM_HEAD             # 64
DIM_INNER_FF = int(DIM * FF_MULT * 2 / 3)     # 128
LOGITS_PAD = 128                              # lane-dense logits head

MASK_BIAS = -1e30   # finite "minus infinity": no NaN even for fully masked rows


# ------------------------------ kernel helpers ------------------------------
def _rmsnorm(x, gamma_row, dim_val):
    # matches F.normalize(x, dim=-1) * sqrt(dim) * gamma  (eps ~ 1e-12)
    ss = jnp.sum(x * x, axis=-1, keepdims=True)
    inv = jax.lax.rsqrt(jnp.maximum(ss, 1e-24))        # EUP rsqrt
    return x * inv * (dim_val ** 0.5) * gamma_row


def _gelu_tanh(x):
    # tanh-approx GELU (EUP tanh, avoids the VALU erf polynomial).
    # TODO(synk): PyTorch F.gelu default is exact erf; deviation is tiny.
    c = math.sqrt(2.0 / math.pi)
    return 0.5 * x * (1.0 + jnp.tanh(c * (x + 0.044715 * x * x * x)))


# ---------------------------------- kernel ----------------------------------
def rmt_fused_kernel(bias_ref, x_ref, rme_ref, keep_ref, shift_ref,
                     attn_g_ref, wqkv_ref, wo_ref,
                     ffg1_ref, ffw1_ref, ffg2_ref, ffw2_ref,
                     fin_g_ref, wlog_ref, blog_ref,
                     logits_ref, wmem_ref,
                     mem_scratch,
                     *, Bg, r, n, m, depth, heads, dim_head, di):
    s = pl.program_id(1)                      # segment index (recurrence axis)
    d = DIM
    dh = dim_head
    dqkv = heads * dim_head
    scale = dh ** -0.5

    # ---- recurrent write-memory carry lives in VMEM scratch -----------------
    @pl.when(s == 0)
    def _():
        mem_scratch[...] = jnp.zeros_like(mem_scratch)

    # ---- splice the read-mem carry into the pre-packed slab -----------------
    rm = mem_scratch[...] + rme_ref[...]                  # (Bg*r, d)
    xin = x_ref[0, 0]                                     # (BL, d) [zeros|seq|wm_init]
    x = jnp.concatenate([rm, xin[Bg * r:, :]], axis=0)    # Bg*r is sublane-aligned here

    # additive attention bias; segment-0 variant selected by the index_map
    bias = bias_ref[0]                                    # (BL, BL)

    # ---- token shift: 2 muls + 1 add with precomputed masks -----------------
    keep = keep_ref[...]
    shift = shift_ref[...]

    def token_shift(t):
        rolled = pltpu.roll(t, shift=1, axis=0)           # sublane shift-by-one (XLU)
        return t * keep + rolled * shift

    # --------------------------- transformer layers ---------------------------
    for layer in range(depth):
        # ------------------------------ attention ------------------------------
        xn = _rmsnorm(token_shift(x), attn_g_ref[layer:layer + 1, :], d)
        qkv = jnp.dot(xn, wqkv_ref[layer],
                      preferred_element_type=jnp.float32)          # (BL, 3*dqkv)
        heads_out = []
        for h in range(heads):
            lo = h * dh
            qh = qkv[:, lo:lo + dh]
            kh = qkv[:, dqkv + lo:dqkv + lo + dh]
            vh = qkv[:, 2 * dqkv + lo:2 * dqkv + lo + dh]
            sim = jax.lax.dot_general(qh, kh, (((1,), (1,)), ((), ())),
                                      preferred_element_type=jnp.float32) * scale
            sim = sim + bias
            sim = sim - jnp.max(sim, axis=-1, keepdims=True)
            p = jnp.exp(sim)
            p = p * pl.reciprocal(jnp.sum(p, axis=-1, keepdims=True), approx=True)
            heads_out.append(jnp.dot(p, vh, preferred_element_type=jnp.float32))
        o = jnp.concatenate(heads_out, axis=-1)                    # (BL, dqkv) in vregs
        x = x + jnp.dot(o, wo_ref[layer], preferred_element_type=jnp.float32)

        # --------------------------- GEGLU feed-forward ------------------------
        h1 = _rmsnorm(token_shift(x), ffg1_ref[layer:layer + 1, :], d)
        hm = jnp.dot(h1, ffw1_ref[layer],
                     preferred_element_type=jnp.float32)           # (BL, 2*di)
        g = hm[:, :di] * _gelu_tanh(hm[:, di:])                    # di = 128 -> aligned
        g = _rmsnorm(g, ffg2_ref[layer:layer + 1, :], di)
        x = x + jnp.dot(g, ffw2_ref[layer], preferred_element_type=jnp.float32)

    # -------------------------------- outputs ---------------------------------
    seq = x[Bg * r: Bg * (r + n), :]                               # (Bg*n, d) contiguous
    logits = jnp.dot(_rmsnorm(seq, fin_g_ref[...], d), wlog_ref[...],
                     preferred_element_type=jnp.float32) + blog_ref[...]
    logits_ref[0, 0] = logits                                      # one lane-dense store

    wm = x[Bg * (r + n):, :]                                       # (Bg*m, d) contiguous
    mem_scratch[...] = wm                                          # carry to next segment
    wmem_ref[0] = wm


# ------------------------------ pallas wrapper ------------------------------
@functools.lru_cache(maxsize=None)
def _make_rmt_call(B, S, G):
    Bg = B // G
    r, n, m = NUM_MEM, SEQ_LEN, NUM_MEM
    L = r + n + m
    BL = Bg * L
    kernel = functools.partial(
        rmt_fused_kernel, Bg=Bg, r=r, n=n, m=m,
        depth=DEPTH, heads=HEADS, dim_head=DIM_HEAD, di=DIM_INNER_FF)

    def const(shape):
        zeros = (0,) * len(shape)
        return pl.BlockSpec(shape, lambda g, s, _z=zeros: _z)

    in_specs = [
        # mask bias: block 0 at s==0 (no read mems), block 1 otherwise — DMA'd twice total
        pl.BlockSpec((1, BL, BL), lambda g, s: (jnp.minimum(s, 1), 0, 0)),
        pl.BlockSpec((1, 1, BL, DIM), lambda g, s: (s, g, 0, 0)),     # pre-packed slab
        const((1, DIM)),                                              # read_memory_emb
        const((BL, DIM)),                                             # token-shift keep mask
        const((BL, DIM)),                                             # token-shift shift mask
        const((DEPTH, DIM)),                                          # attn RMSNorm gamma
        const((DEPTH, DIM, 3 * DIM_INNER_ATTN)),                      # fused Wqkv
        const((DEPTH, DIM_INNER_ATTN, DIM)),                          # Wo
        const((DEPTH, DIM)),                                          # ff RMSNorm gamma 1
        const((DEPTH, DIM, 2 * DIM_INNER_FF)),                        # ff W1
        const((DEPTH, DIM_INNER_FF)),                                 # ff RMSNorm gamma 2
        const((DEPTH, DIM_INNER_FF, DIM)),                            # ff W2
        const((1, DIM)),                                              # final RMSNorm gamma
        const((DIM, LOGITS_PAD)),                                     # logits W (lane padded)
        const((1, LOGITS_PAD)),                                       # logits b (lane padded)
    ]
    out_specs = (
        pl.BlockSpec((1, 1, Bg * n, LOGITS_PAD), lambda g, s: (s, g, 0, 0)),
        pl.BlockSpec((1, Bg * m, DIM), lambda g, s: (g, 0, 0)),       # resident across s
    )
    out_shape = (
        jax.ShapeDtypeStruct((S, G, Bg * n, LOGITS_PAD), jnp.float32),
        jax.ShapeDtypeStruct((G, Bg * m, DIM), jnp.float32),
    )
    return pl.pallas_call(
        kernel,
        grid=(G, S),
        in_specs=in_specs,
        out_specs=out_specs,
        out_shape=out_shape,
        scratch_shapes=[pltpu.VMEM((Bg * m, DIM), jnp.float32)],      # memory carry
        compiler_params=pltpu.CompilerParams(
            dimension_semantics=("parallel", "arbitrary")),
    )


# ------------------------------ JAX glue logic ------------------------------
def _layout_tables(Bg, r, n, m):
    """Per-row (type, batch, pos) for layout [all reads | all seq | all writes]."""
    L = r + n + m
    BL = Bg * L
    typ = np.zeros(BL, np.int32)
    bat = np.zeros(BL, np.int32)
    pos = np.zeros(BL, np.int32)
    for i in range(BL):
        if i < Bg * r:
            typ[i], bat[i], pos[i] = 0, i // r, i % r
        elif i < Bg * (r + n):
            k = i - Bg * r
            typ[i], bat[i], pos[i] = 1, k // n, k % n
        else:
            k = i - Bg * (r + n)
            typ[i], bat[i], pos[i] = 2, k // m, k % m
    return typ, bat, pos


def _build_mask_bias(Bg, r, n, m):
    """(2, BL, BL) additive bias: [0]=first segment (no read mems), [1]=rest."""
    typ, bat, pos = _layout_tables(Bg, r, n, m)
    same_b = bat[:, None] == bat[None, :]
    read_col = typ[None, :] == 0
    seq_row = typ[:, None] == 1
    seq_col = typ[None, :] == 1
    write_row = typ[:, None] == 2
    causal = pos[None, :] <= pos[:, None]
    allowed_rest = same_b & (read_col | (seq_row & seq_col & causal) | write_row)
    allowed_first = allowed_rest & ~read_col

    def to_bias(a):
        return np.where(a, 0.0, MASK_BIAS).astype(np.float32)

    return jnp.asarray(np.stack([to_bias(allowed_first), to_bias(allowed_rest)], 0))


def _build_shift_masks(Bg, r, n, m, dim):
    """keep/shift masks so token_shift(t) = t*keep + roll(t,1)*shift."""
    typ, _, pos = _layout_tables(Bg, r, n, m)
    half = dim // 2
    is_seq = (typ == 1)[:, None]
    first_row = (pos == 0)[:, None]
    second = (np.arange(dim) >= half)[None, :]
    keep = (~second) | (~is_seq)
    shift = second & is_seq & (~first_row)
    return jnp.asarray(keep.astype(np.float32)), jnp.asarray(shift.astype(np.float32))


def _num_batch_groups(B):
    # Split across v7x's 2 TensorCores only when each core still gets >=128
    # packed rows per step; single-TC v5e/v6e fold the whole batch each step.
    L = 2 * NUM_MEM + SEQ_LEN
    try:
        kind = jax.devices()[0].device_kind.lower()
    except Exception:
        kind = ""
    if ("v7" in kind or "7x" in kind) and B % 2 == 0 and (B // 2) * L >= 128:
        return 2
    return 1


def init_params(key):
    ks = jax.random.split(key, 12)

    def nrm(k, shape, scale=0.02):
        return jax.random.normal(k, shape, jnp.float32) * scale

    return dict(
        token_emb=nrm(ks[0], (NUM_TOKENS, DIM)),
        pos_emb=nrm(ks[1], (SEQ_LEN, DIM)),
        memory_tokens=nrm(ks[2], (NUM_MEM, DIM)),
        read_memory_emb=nrm(ks[3], (DIM,)),
        attn_gamma=jnp.ones((DEPTH, DIM), jnp.float32),
        wq=nrm(ks[4], (DEPTH, DIM, DIM_INNER_ATTN), 0.05),
        wk=nrm(ks[5], (DEPTH, DIM, DIM_INNER_ATTN), 0.05),
        wv=nrm(ks[6], (DEPTH, DIM, DIM_INNER_ATTN), 0.05),
        wo=nrm(ks[7], (DEPTH, DIM_INNER_ATTN, DIM), 0.05),
        ff_gamma1=jnp.ones((DEPTH, DIM), jnp.float32),
        ff_w1=nrm(ks[8], (DEPTH, DIM, 2 * DIM_INNER_FF), 0.05),
        ff_gamma2=jnp.ones((DEPTH, DIM_INNER_FF), jnp.float32),
        ff_w2=nrm(ks[9], (DEPTH, DIM_INNER_FF, DIM), 0.05),
        final_gamma=jnp.ones((1, DIM), jnp.float32),
        w_logits=nrm(ks[10], (DIM, NUM_TOKENS), 0.05),
        b_logits=jnp.zeros((1, NUM_TOKENS), jnp.float32),
    )


@functools.partial(jax.jit, static_argnums=(2,))
def _rmt_forward_impl(params, x_ids, G):
    B, total = x_ids.shape
    r, n, m = NUM_MEM, SEQ_LEN, NUM_MEM
    S = total // n
    Bg = B // G

    # token + absolute positional embedding for every segment
    ids = x_ids.reshape(B, S, n)
    emb = (params['token_emb'][ids] + params['pos_emb'][None, None]).astype(jnp.float32)
    # frac_gradient is identity in value terms (gradient-only trick).

    # pre-pack [read placeholders | sequence | write-mem init] per (segment, group)
    seq_slab = jnp.transpose(emb, (1, 0, 2, 3)).reshape(S, G, Bg * n, DIM)
    read_slab = jnp.zeros((S, G, Bg * r, DIM), jnp.float32)       # overwritten in-kernel
    wm_init = jnp.tile(params['memory_tokens'], (Bg, 1)).astype(jnp.float32)
    wm_slab = jnp.broadcast_to(wm_init[None, None], (S, G, Bg * m, DIM))
    xslab = jnp.concatenate([read_slab, seq_slab, wm_slab], axis=2)

    bias = _build_mask_bias(Bg, r, n, m)
    keep_mask, shift_mask = _build_shift_masks(Bg, r, n, m, DIM)
    rm_emb = params['read_memory_emb'].reshape(1, DIM).astype(jnp.float32)

    wqkv = jnp.concatenate([params['wq'], params['wk'], params['wv']], axis=-1)
    wlog = jnp.zeros((DIM, LOGITS_PAD), jnp.float32).at[:, :NUM_TOKENS].set(params['w_logits'])
    blog = jnp.zeros((1, LOGITS_PAD), jnp.float32).at[:, :NUM_TOKENS].set(params['b_logits'])

    call = _make_rmt_call(B, S, G)
    logits4, wmem3 = call(
        bias, xslab, rm_emb, keep_mask, shift_mask,
        params['attn_gamma'], wqkv, params['wo'],
        params['ff_gamma1'], params['ff_w1'],
        params['ff_gamma2'], params['ff_w2'],
        params['final_gamma'], wlog, blog)

    logits = logits4[..., :NUM_TOKENS].reshape(S, G, Bg, n, NUM_TOKENS)
    logits = jnp.transpose(logits, (1, 2, 0, 3, 4)).reshape(B, S * n, NUM_TOKENS)
    memories = wmem3.reshape(B, NUM_MEM, DIM)
    return logits, memories


def rmt_wrapper_forward(params, x_ids):
    """RecurrentMemoryTransformerWrapper.forward (return_loss=False path)."""
    B, total = x_ids.shape
    assert total % SEQ_LEN == 0, "demo assumes whole segments"
    # TODO(synk): externally supplied initial read-memories / attention mask /
    #             xl memories / ragged last segment are not wired into the kernel.
    G = _num_batch_groups(B)
    return _rmt_forward_impl(params, x_ids, G)


# TODO(synk): generate() (autoregressive top-k / gumbel sampling loop) and the
# memory_replay_backprop training path (requires a backward pass) are not
# expressed as Pallas kernels; only the inference forward path is implemented.

if __name__ == "__main__":
    key = jax.random.PRNGKey(0)
    pkey, xkey = jax.random.split(key)
    params = init_params(pkey)

    B = 2
    total_len = 2 * SEQ_LEN                       # two recurrent segments
    x_ids = jax.random.randint(xkey, (B, total_len), 0, NUM_TOKENS,
                               dtype=jnp.int32)

    logits, memories = rmt_wrapper_forward(params, x_ids)
    jax.block_until_ready((logits, memories))

    assert logits.shape == (B, total_len, NUM_TOKENS)
    assert memories.shape == (B, NUM_MEM, DIM)
    assert bool(jnp.all(jnp.isfinite(logits)))
    assert bool(jnp.all(jnp.isfinite(memories)))
    print("KERNEL_OK")
</pallas_src>

<mosaic_0001>
module attributes {stable_mosaic.version = 11 : i64} {
  func.func @rmt_fused_kernel(%arg0: i32, %arg1: i32, %arg2: memref<1x32x32xf32, #tpu.memory_space<vmem>>, %arg3: memref<1x1x32x48xf32, #tpu.memory_space<vmem>>, %arg4: memref<1x48xf32, #tpu.memory_space<vmem>>, %arg5: memref<32x48xf32, #tpu.memory_space<vmem>>, %arg6: memref<32x48xf32, #tpu.memory_space<vmem>>, %arg7: memref<2x48xf32, #tpu.memory_space<vmem>>, %arg8: memref<2x48x192xf32, #tpu.memory_space<vmem>>, %arg9: memref<2x64x48xf32, #tpu.memory_space<vmem>>, %arg10: memref<2x48xf32, #tpu.memory_space<vmem>>, %arg11: memref<2x48x256xf32, #tpu.memory_space<vmem>>, %arg12: memref<2x128xf32, #tpu.memory_space<vmem>>, %arg13: memref<2x128x48xf32, #tpu.memory_space<vmem>>, %arg14: memref<1x48xf32, #tpu.memory_space<vmem>>, %arg15: memref<48x128xf32, #tpu.memory_space<vmem>>, %arg16: memref<1x128xf32, #tpu.memory_space<vmem>>, %arg17: memref<1x1x16x128xf32, #tpu.memory_space<vmem>>, %arg18: memref<1x8x48xf32, #tpu.memory_space<vmem>>, %arg19: memref<8x48xf32, #tpu.memory_space<vmem>>) attributes {dimension_semantics = [#tpu.dimension_semantics<parallel>, #tpu.dimension_semantics<arbitrary>], iteration_bounds = array<i64: 1, 2>, scalar_prefetch = 0 : i64, scratch_operands = 1 : i64, tpu.core_type = #tpu.core_type<tc>, window_params = [{transform_indices = @transform_0, window_bounds = array<i64: 1, 32, 32>}, {transform_indices = @transform_1, window_bounds = array<i64: 1, 1, 32, 48>}, {pipeline_mode = #tpu.pipeline_mode<synchronous>, transform_indices = @transform_2, window_bounds = array<i64: 1, 48>}, {pipeline_mode = #tpu.pipeline_mode<synchronous>, transform_indices = @transform_3, window_bounds = array<i64: 32, 48>}, {pipeline_mode = #tpu.pipeline_mode<synchronous>, transform_indices = @transform_4, window_bounds = array<i64: 32, 48>}, {pipeline_mode = #tpu.pipeline_mode<synchronous>, transform_indices = @transform_5, window_bounds = array<i64: 2, 48>}, {pipeline_mode = #tpu.pipeline_mode<synchronous>, transform_indices = @transform_6, window_bounds = array<i64: 2, 48, 192>}, {pipeline_mode = #tpu.pipeline_mode<synchronous>, transform_indices = @transform_7, window_bounds = array<i64: 2, 64, 48>}, {pipeline_mode = #tpu.pipeline_mode<synchronous>, transform_indices = @transform_8, window_bounds = array<i64: 2, 48>}, {pipeline_mode = #tpu.pipeline_mode<synchronous>, transform_indices = @transform_9, window_bounds = array<i64: 2, 48, 256>}, {pipeline_mode = #tpu.pipeline_mode<synchronous>, transform_indices = @transform_10, window_bounds = array<i64: 2, 128>}, {pipeline_mode = #tpu.pipeline_mode<synchronous>, transform_indices = @transform_11, window_bounds = array<i64: 2, 128, 48>}, {pipeline_mode = #tpu.pipeline_mode<synchronous>, transform_indices = @transform_12, window_bounds = array<i64: 1, 48>}, {pipeline_mode = #tpu.pipeline_mode<synchronous>, transform_indices = @transform_13, window_bounds = array<i64: 48, 128>}, {pipeline_mode = #tpu.pipeline_mode<synchronous>, transform_indices = @transform_14, window_bounds = array<i64: 1, 128>}, {transform_indices = @transform_15, window_bounds = array<i64: 1, 1, 16, 128>}, {transform_indices = @transform_16, window_bounds = array<i64: 1, 8, 48>}]} {
    %c0_i32 = arith.constant 0 : i32
    %0 = arith.cmpi eq, %arg1, %c0_i32 : i32
    %1 = arith.extui %0 : i1 to i32
    %c0_i32_0 = arith.constant 0 : i32
    %2 = arith.cmpi ne, %1, %c0_i32_0 : i32
    scf.if %2 {
      %cst_145 = arith.constant 0.000000e+00 : f32
      %342 = vector.broadcast %cst_145 : f32 to vector<8x48xf32>
      %c0_146 = arith.constant 0 : index
      %c0_147 = arith.constant 0 : index
      %343 = vector.load %arg19[%c0_146, %c0_147] : memref<8x48xf32, #tpu.memory_space<vmem>>, vector<8x48xf32>
      tpu.vector_store %arg19[%c0_146, %c0_147], %342 {strides = array<i32>} : memref<8x48xf32, #tpu.memory_space<vmem>>, vector<8x48xf32>,
    } else {
    }
    %c0 = arith.constant 0 : index
    %c0_1 = arith.constant 0 : index
    %3 = vector.load %arg19[%c0, %c0_1] : memref<8x48xf32, #tpu.memory_space<vmem>>, vector<8x48xf32>
    %c0_2 = arith.constant 0 : index
    %c0_3 = arith.constant 0 : index
    %4 = vector.load %arg4[%c0_2, %c0_3] : memref<1x48xf32, #tpu.memory_space<vmem>>, vector<1x48xf32>
    %5 = vector.broadcast %4 : vector<1x48xf32> to vector<8x48xf32>
    %6 = arith.addf %3, %5 : vector<8x48xf32>
    %c0_4 = arith.constant 0 : index
    %c0_5 = arith.constant 0 : index
    %c0_6 = arith.constant 0 : index
    %c0_7 = arith.constant 0 : index
    %7 = vector.load %arg3[%c0_4, %c0_5, %c0_6, %c0_7] : memref<1x1x32x48xf32, #tpu.memory_space<vmem>>, vector<1x1x32x48xf32>
    %8 = vector.shape_cast %7 : vector<1x1x32x48xf32> to vector<32x48xf32>
    %9 = vector.extract_strided_slice %8 {offsets = [8, 0], sizes = [24, 48], strides = [1, 1]} : vector<32x48xf32> to vector<24x48xf32>
    %10 = tpu.concatenate %6, %9 in 0 : vector<8x48xf32>, vector<24x48xf32> -> vector<32x48xf32>
    %c0_8 = arith.constant 0 : index
    %c0_9 = arith.constant 0 : index
    %c0_10 = arith.constant 0 : index
    %11 = vector.load %arg2[%c0_8, %c0_9, %c0_10] : memref<1x32x32xf32, #tpu.memory_space<vmem>>, vector<1x32x32xf32>
    %12 = vector.shape_cast %11 : vector<1x32x32xf32> to vector<32x32xf32>
    %c0_11 = arith.constant 0 : index
    %c0_12 = arith.constant 0 : index
    %13 = vector.load %arg5[%c0_11, %c0_12] : memref<32x48xf32, #tpu.memory_space<vmem>>, vector<32x48xf32>
    %c0_13 = arith.constant 0 : index
    %c0_14 = arith.constant 0 : index
    %14 = vector.load %arg6[%c0_13, %c0_14] : memref<32x48xf32, #tpu.memory_space<vmem>>, vector<32x48xf32>
    %c1_i32 = arith.constant 1 : i32
    %15 = tpu.dynamic_rotate %10 by %c1_i32 dim 0 : vector<32x48xf32>, i32 -> vector<32x48xf32>
    %16 = arith.mulf %10, %13 : vector<32x48xf32>
    %17 = arith.mulf %15, %14 : vector<32x48xf32>
    %18 = arith.addf %16, %17 : vector<32x48xf32>
    %c0_15 = arith.constant 0 : index
    %c0_16 = arith.constant 0 : index
    %19 = vector.load %arg7[%c0_15, %c0_16] : memref<2x48xf32, #tpu.memory_space<vmem>>, vector<1x48xf32>
    %20 = arith.mulf %18, %18 : vector<32x48xf32>
    %cst = arith.constant dense<0.000000e+00> : vector<32xf32>
    %21 = vector.multi_reduction <add>, %20, %cst [1] : vector<32x48xf32> to vector<32xf32>
    %22 = vector.shape_cast %21 : vector<32xf32> to vector<32x1xf32>
    %cst_17 = arith.constant 1.000000e-24 : f32
    %23 = vector.broadcast %cst_17 : f32 to vector<32x1xf32>
    %24 = arith.maximumf %22, %23 : vector<32x1xf32>
    %25 = math.rsqrt %24 : vector<32x1xf32>
    %26 = vector.broadcast %25 : vector<32x1xf32> to vector<32x48xf32>
    %27 = arith.mulf %18, %26 : vector<32x48xf32>
    %cst_18 = arith.constant 6.92820311 : f32
    %28 = vector.broadcast %cst_18 : f32 to vector<32x48xf32>
    %29 = arith.mulf %27, %28 : vector<32x48xf32>
    %30 = vector.broadcast %19 : vector<1x48xf32> to vector<32x48xf32>
    %31 = arith.mulf %29, %30 : vector<32x48xf32>
    %c0_19 = arith.constant 0 : index
    %c0_20 = arith.constant 0 : index
    %c0_21 = arith.constant 0 : index
    %32 = vector.load %arg8[%c0_19, %c0_20, %c0_21] : memref<2x48x192xf32, #tpu.memory_space<vmem>>, vector<1x48x192xf32>
    %33 = vector.shape_cast %32 : vector<1x48x192xf32> to vector<48x192xf32>
    %cst_22 = arith.constant dense<0.000000e+00> : vector<32x192xf32>
    %34 = tpu.matmul %31, %33, %cst_22 {dimension_numbers = #tpu.dot_dimension_numbers<[1], [0], [0], [1], [0, 0, 1, 1], [], []>} : vector<32x48xf32>, vector<48x192xf32>, vector<32x192xf32> -> vector<32x192xf32>
    %35 = vector.extract_strided_slice %34 {offsets = [0, 0], sizes = [32, 16], strides = [1, 1]} : vector<32x192xf32> to vector<32x16xf32>
    %36 = vector.extract_strided_slice %34 {offsets = [0, 64], sizes = [32, 16], strides = [1, 1]} : vector<32x192xf32> to vector<32x16xf32>
    %37 = vector.extract_strided_slice %34 {offsets = [0, 128], sizes = [32, 16], strides = [1, 1]} : vector<32x192xf32> to vector<32x16xf32>
    %cst_23 = arith.constant dense<0.000000e+00> : vector<32x32xf32>
    %38 = tpu.matmul %35, %36, %cst_23 {dimension_numbers = #tpu.dot_dimension_numbers<[1], [1], [0], [0], [0, 0, 1, 0], [], []>} : vector<32x16xf32>, vector<32x16xf32>, vector<32x32xf32> -> vector<32x32xf32>
    %cst_24 = arith.constant 2.500000e-01 : f32
    %39 = vector.broadcast %cst_24 : f32 to vector<32x32xf32>
    %40 = arith.mulf %38, %39 : vector<32x32xf32>
    %41 = arith.addf %40, %12 : vector<32x32xf32>
    %cst_25 = arith.constant dense<0xFF800000> : vector<32xf32>
    %42 = vector.multi_reduction <maximumf>, %41, %cst_25 [1] : vector<32x32xf32> to vector<32xf32>
    %43 = vector.shape_cast %42 : vector<32xf32> to vector<32x1xf32>
    %44 = vector.broadcast %43 : vector<32x1xf32> to vector<32x32xf32>
    %45 = arith.subf %41, %44 : vector<32x32xf32>
    %46 = math.exp %45 : vector<32x32xf32>
    %cst_26 = arith.constant dense<0.000000e+00> : vector<32xf32>
    %47 = vector.multi_reduction <add>, %46, %cst_26 [1] : vector<32x32xf32> to vector<32xf32>
    %48 = vector.shape_cast %47 : vector<32xf32> to vector<32x1xf32>
    %49 = tpu.reciprocal %48 {approx = true} : vector<32x1xf32> -> vector<32x1xf32>
    %50 = vector.broadcast %49 : vector<32x1xf32> to vector<32x32xf32>
    %51 = arith.mulf %46, %50 : vector<32x32xf32>
    %cst_27 = arith.constant dense<0.000000e+00> : vector<32x16xf32>
    %52 = tpu.matmul %51, %37, %cst_27 {dimension_numbers = #tpu.dot_dimension_numbers<[1], [0], [0], [1], [0, 0, 1, 1], [], []>} : vector<32x32xf32>, vector<32x16xf32>, vector<32x16xf32> -> vector<32x16xf32>
    %53 = vector.extract_strided_slice %34 {offsets = [0, 16], sizes = [32, 16], strides = [1, 1]} : vector<32x192xf32> to vector<32x16xf32>
    %54 = vector.extract_strided_slice %34 {offsets = [0, 80], sizes = [32, 16], strides = [1, 1]} : vector<32x192xf32> to vector<32x16xf32>
    %55 = vector.extract_strided_slice %34 {offsets = [0, 144], sizes = [32, 16], strides = [1, 1]} : vector<32x192xf32> to vector<32x16xf32>
    %cst_28 = arith.constant dense<0.000000e+00> : vector<32x32xf32>
    %56 = tpu.matmul %53, %54, %cst_28 {dimension_numbers = #tpu.dot_dimension_numbers<[1], [1], [0], [0], [0, 0, 1, 0], [], []>} : vector<32x16xf32>, vector<32x16xf32>, vector<32x32xf32> -> vector<32x32xf32>
    %cst_29 = arith.constant 2.500000e-01 : f32
    %57 = vector.broadcast %cst_29 : f32 to vector<32x32xf32>
    %58 = arith.mulf %56, %57 : vector<32x32xf32>
    %59 = arith.addf %58, %12 : vector<32x32xf32>
    %cst_30 = arith.constant dense<0xFF800000> : vector<32xf32>
    %60 = vector.multi_reduction <maximumf>, %59, %cst_30 [1] : vector<32x32xf32> to vector<32xf32>
    %61 = vector.shape_cast %60 : vector<32xf32> to vector<32x1xf32>
    %62 = vector.broadcast %61 : vector<32x1xf32> to vector<32x32xf32>
    %63 = arith.subf %59, %62 : vector<32x32xf32>
    %64 = math.exp %63 : vector<32x32xf32>
    %cst_31 = arith.constant dense<0.000000e+00> : vector<32xf32>
    %65 = vector.multi_reduction <add>, %64, %cst_31 [1] : vector<32x32xf32> to vector<32xf32>
    %66 = vector.shape_cast %65 : vector<32xf32> to vector<32x1xf32>
    %67 = tpu.reciprocal %66 {approx = true} : vector<32x1xf32> -> vector<32x1xf32>
    %68 = vector.broadcast %67 : vector<32x1xf32> to vector<32x32xf32>
    %69 = arith.mulf %64, %68 : vector<32x32xf32>
    %cst_32 = arith.constant dense<0.000000e+00> : vector<32x16xf32>
    %70 = tpu.matmul %69, %55, %cst_32 {dimension_numbers = #tpu.dot_dimension_numbers<[1], [0], [0], [1], [0, 0, 1, 1], [], []>} : vector<32x32xf32>, vector<32x16xf32>, vector<32x16xf32> -> vector<32x16xf32>
    %71 = vector.extract_strided_slice %34 {offsets = [0, 32], sizes = [32, 16], strides = [1, 1]} : vector<32x192xf32> to vector<32x16xf32>
    %72 = vector.extract_strided_slice %34 {offsets = [0, 96], sizes = [32, 16], strides = [1, 1]} : vector<32x192xf32> to vector<32x16xf32>
    %73 = vector.extract_strided_slice %34 {offsets = [0, 160], sizes = [32, 16], strides = [1, 1]} : vector<32x192xf32> to vector<32x16xf32>
    %cst_33 = arith.constant dense<0.000000e+00> : vector<32x32xf32>
    %74 = tpu.matmul %71, %72, %cst_33 {dimension_numbers = #tpu.dot_dimension_numbers<[1], [1], [0], [0], [0, 0, 1, 0], [], []>} : vector<32x16xf32>, vector<32x16xf32>, vector<32x32xf32> -> vector<32x32xf32>
    %cst_34 = arith.constant 2.500000e-01 : f32
    %75 = vector.broadcast %cst_34 : f32 to vector<32x32xf32>
    %76 = arith.mulf %74, %75 : vector<32x32xf32>
    %77 = arith.addf %76, %12 : vector<32x32xf32>
    %cst_35 = arith.constant dense<0xFF800000> : vector<32xf32>
    %78 = vector.multi_reduction <maximumf>, %77, %cst_35 [1] : vector<32x32xf32> to vector<32xf32>
    %79 = vector.shape_cast %78 : vector<32xf32> to vector<32x1xf32>
    %80 = vector.broadcast %79 : vector<32x1xf32> to vector<32x32xf32>
    %81 = arith.subf %77, %80 : vector<32x32xf32>
    %82 = math.exp %81 : vector<32x32xf32>
    %cst_36 = arith.constant dense<0.000000e+00> : vector<32xf32>
    %83 = vector.multi_reduction <add>, %82, %cst_36 [1] : vector<32x32xf32> to vector<32xf32>
    %84 = vector.shape_cast %83 : vector<32xf32> to vector<32x1xf32>
    %85 = tpu.reciprocal %84 {approx = true} : vector<32x1xf32> -> vector<32x1xf32>
    %86 = vector.broadcast %85 : vector<32x1xf32> to vector<32x32xf32>
    %87 = arith.mulf %82, %86 : vector<32x32xf32>
    %cst_37 = arith.constant dense<0.000000e+00> : vector<32x16xf32>
    %88 = tpu.matmul %87, %73, %cst_37 {dimension_numbers = #tpu.dot_dimension_numbers<[1], [0], [0], [1], [0, 0, 1, 1], [], []>} : vector<32x32xf32>, vector<32x16xf32>, vector<32x16xf32> -> vector<32x16xf32>
    %89 = vector.extract_strided_slice %34 {offsets = [0, 48], sizes = [32, 16], strides = [1, 1]} : vector<32x192xf32> to vector<32x16xf32>
    %90 = vector.extract_strided_slice %34 {offsets = [0, 112], sizes = [32, 16], strides = [1, 1]} : vector<32x192xf32> to vector<32x16xf32>
    %91 = vector.extract_strided_slice %34 {offsets = [0, 176], sizes = [32, 16], strides = [1, 1]} : vector<32x192xf32> to vector<32x16xf32>
    %cst_38 = arith.constant dense<0.000000e+00> : vector<32x32xf32>
    %92 = tpu.matmul %89, %90, %cst_38 {dimension_numbers = #tpu.dot_dimension_numbers<[1], [1], [0], [0], [0, 0, 1, 0], [], []>} : vector<32x16xf32>, vector<32x16xf32>, vector<32x32xf32> -> vector<32x32xf32>
    %cst_39 = arith.constant 2.500000e-01 : f32
    %93 = vector.broadcast %cst_39 : f32 to vector<32x32xf32>
    %94 = arith.mulf %92, %93 : vector<32x32xf32>
    %95 = arith.addf %94, %12 : vector<32x32xf32>
    %cst_40 = arith.constant dense<0xFF800000> : vector<32xf32>
    %96 = vector.multi_reduction <maximumf>, %95, %cst_40 [1] : vector<32x32xf32> to vector<32xf32>
    %97 = vector.shape_cast %96 : vector<32xf32> to vector<32x1xf32>
    %98 = vector.broadcast %97 : vector<32x1xf32> to vector<32x32xf32>
    %99 = arith.subf %95, %98 : vector<32x32xf32>
    %100 = math.exp %99 : vector<32x32xf32>
    %cst_41 = arith.constant dense<0.000000e+00> : vector<32xf32>
    %101 = vector.multi_reduction <add>, %100, %cst_41 [1] : vector<32x32xf32> to vector<32xf32>
    %102 = vector.shape_cast %101 : vector<32xf32> to vector<32x1xf32>
    %103 = tpu.reciprocal %102 {approx = true} : vector<32x1xf32> -> vector<32x1xf32>
    %104 = vector.broadcast %103 : vector<32x1xf32> to vector<32x32xf32>
    %105 = arith.mulf %100, %104 : vector<32x32xf32>
    %cst_42 = arith.constant dense<0.000000e+00> : vector<32x16xf32>
    %106 = tpu.matmul %105, %91, %cst_42 {dimension_numbers = #tpu.dot_dimension_numbers<[1], [0], [0], [1], [0, 0, 1, 1], [], []>} : vector<32x32xf32>, vector<32x16xf32>, vector<32x16xf32> -> vector<32x16xf32>
    %107 = tpu.concatenate %52, %70, %88, %106 in 1 : vector<32x16xf32>, vector<32x16xf32>, vector<32x16xf32>, vector<32x16xf32> -> vector<32x64xf32>
    %c0_43 = arith.constant 0 : index
    %c0_44 = arith.constant 0 : index
    %c0_45 = arith.constant 0 : index
    %108 = vector.load %arg9[%c0_43, %c0_44, %c0_45] : memref<2x64x48xf32, #tpu.memory_space<vmem>>, vector<1x64x48xf32>
    %109 = vector.shape_cast %108 : vector<1x64x48xf32> to vector<64x48xf32>
    %cst_46 = arith.constant dense<0.000000e+00> : vector<32x48xf32>
    %110 = tpu.matmul %107, %109, %cst_46 {dimension_numbers = #tpu.dot_dimension_numbers<[1], [0], [0], [1], [0, 0, 1, 1], [], []>} : vector<32x64xf32>, vector<64x48xf32>, vector<32x48xf32> -> vector<32x48xf32>
    %111 = arith.addf %10, %110 : vector<32x48xf32>
    %c1_i32_47 = arith.constant 1 : i32
    %112 = tpu.dynamic_rotate %111 by %c1_i32_47 dim 0 : vector<32x48xf32>, i32 -> vector<32x48xf32>
    %113 = arith.mulf %111, %13 : vector<32x48xf32>
    %114 = arith.mulf %112, %14 : vector<32x48xf32>
    %115 = arith.addf %113, %114 : vector<32x48xf32>
    %c0_48 = arith.constant 0 : index
    %c0_49 = arith.constant 0 : index
    %116 = vector.load %arg10[%c0_48, %c0_49] : memref<2x48xf32, #tpu.memory_space<vmem>>, vector<1x48xf32>
    %117 = arith.mulf %115, %115 : vector<32x48xf32>
    %cst_50 = arith.constant dense<0.000000e+00> : vector<32xf32>
    %118 = vector.multi_reduction <add>, %117, %cst_50 [1] : vector<32x48xf32> to vector<32xf32>
    %119 = vector.shape_cast %118 : vector<32xf32> to vector<32x1xf32>
    %cst_51 = arith.constant 1.000000e-24 : f32
    %120 = vector.broadcast %cst_51 : f32 to vector<32x1xf32>
    %121 = arith.maximumf %119, %120 : vector<32x1xf32>
    %122 = math.rsqrt %121 : vector<32x1xf32>
    %123 = vector.broadcast %122 : vector<32x1xf32> to vector<32x48xf32>
    %124 = arith.mulf %115, %123 : vector<32x48xf32>
    %cst_52 = arith.constant 6.92820311 : f32
    %125 = vector.broadcast %cst_52 : f32 to vector<32x48xf32>
    %126 = arith.mulf %124, %125 : vector<32x48xf32>
    %127 = vector.broadcast %116 : vector<1x48xf32> to vector<32x48xf32>
    %128 = arith.mulf %126, %127 : vector<32x48xf32>
    %c0_53 = arith.constant 0 : index
    %c0_54 = arith.constant 0 : index
    %c0_55 = arith.constant 0 : index
    %129 = vector.load %arg11[%c0_53, %c0_54, %c0_55] : memref<2x48x256xf32, #tpu.memory_space<vmem>>, vector<1x48x256xf32>
    %130 = vector.shape_cast %129 : vector<1x48x256xf32> to vector<48x256xf32>
    %cst_56 = arith.constant dense<0.000000e+00> : vector<32x256xf32>
    %131 = tpu.matmul %128, %130, %cst_56 {dimension_numbers = #tpu.dot_dimension_numbers<[1], [0], [0], [1], [0, 0, 1, 1], [], []>} : vector<32x48xf32>, vector<48x256xf32>, vector<32x256xf32> -> vector<32x256xf32>
    %132 = vector.extract_strided_slice %131 {offsets = [0, 0], sizes = [32, 128], strides = [1, 1]} : vector<32x256xf32> to vector<32x128xf32>
    %133 = vector.extract_strided_slice %131 {offsets = [0, 128], sizes = [32, 128], strides = [1, 1]} : vector<32x256xf32> to vector<32x128xf32>
    %cst_57 = arith.constant 5.000000e-01 : f32
    %134 = vector.broadcast %cst_57 : f32 to vector<32x128xf32>
    %135 = arith.mulf %134, %133 : vector<32x128xf32>
    %cst_58 = arith.constant 4.471500e-02 : f32
    %136 = vector.broadcast %cst_58 : f32 to vector<32x128xf32>
    %137 = arith.mulf %136, %133 : vector<32x128xf32>
    %138 = arith.mulf %137, %133 : vector<32x128xf32>
    %139 = arith.mulf %138, %133 : vector<32x128xf32>
    %140 = arith.addf %133, %139 : vector<32x128xf32>
    %cst_59 = arith.constant 0.797884583 : f32
    %141 = vector.broadcast %cst_59 : f32 to vector<32x128xf32>
    %142 = arith.mulf %141, %140 : vector<32x128xf32>
    %143 = math.tanh %142 : vector<32x128xf32>
    %cst_60 = arith.constant 1.000000e+00 : f32
    %144 = vector.broadcast %cst_60 : f32 to vector<32x128xf32>
    %145 = arith.addf %144, %143 : vector<32x128xf32>
    %146 = arith.mulf %135, %145 : vector<32x128xf32>
    %147 = arith.mulf %132, %146 : vector<32x128xf32>
    %c0_61 = arith.constant 0 : index
    %c0_62 = arith.constant 0 : index
    %148 = vector.load %arg12[%c0_61, %c0_62] : memref<2x128xf32, #tpu.memory_space<vmem>>, vector<1x128xf32>
    %149 = arith.mulf %147, %147 : vector<32x128xf32>
    %cst_63 = arith.constant dense<0.000000e+00> : vector<32xf32>
    %150 = vector.multi_reduction <add>, %149, %cst_63 [1] : vector<32x128xf32> to vector<32xf32>
    %151 = vector.shape_cast %150 : vector<32xf32> to vector<32x1xf32>
    %cst_64 = arith.constant 1.000000e-24 : f32
    %152 = vector.broadcast %cst_64 : f32 to vector<32x1xf32>
    %153 = arith.maximumf %151, %152 : vector<32x1xf32>
    %154 = math.rsqrt %153 : vector<32x1xf32>
    %155 = vector.broadcast %154 : vector<32x1xf32> to vector<32x128xf32>
    %156 = arith.mulf %147, %155 : vector<32x128xf32>
    %cst_65 = arith.constant 11.3137083 : f32
    %157 = vector.broadcast %cst_65 : f32 to vector<32x128xf32>
    %158 = arith.mulf %156, %157 : vector<32x128xf32>
    %159 = vector.broadcast %148 : vector<1x128xf32> to vector<32x128xf32>
    %160 = arith.mulf %158, %159 : vector<32x128xf32>
    %c0_66 = arith.constant 0 : index
    %c0_67 = arith.constant 0 : index
    %c0_68 = arith.constant 0 : index
    %161 = vector.load %arg13[%c0_66, %c0_67, %c0_68] : memref<2x128x48xf32, #tpu.memory_space<vmem>>, vector<1x128x48xf32>
    %162 = vector.shape_cast %161 : vector<1x128x48xf32> to vector<128x48xf32>
    %cst_69 = arith.constant dense<0.000000e+00> : vector<32x48xf32>
    %163 = tpu.matmul %160, %162, %cst_69 {dimension_numbers = #tpu.dot_dimension_numbers<[1], [0], [0], [1], [0, 0, 1, 1], [], []>} : vector<32x128xf32>, vector<128x48xf32>, vector<32x48xf32> -> vector<32x48xf32>
    %164 = arith.addf %111, %163 : vector<32x48xf32>
    %c1_i32_70 = arith.constant 1 : i32
    %165 = tpu.dynamic_rotate %164 by %c1_i32_70 dim 0 : vector<32x48xf32>, i32 -> vector<32x48xf32>
    %166 = arith.mulf %164, %13 : vector<32x48xf32>
    %167 = arith.mulf %165, %14 : vector<32x48xf32>
    %168 = arith.addf %166, %167 : vector<32x48xf32>
    %c1 = arith.constant 1 : index
    %c0_71 = arith.constant 0 : index
    %169 = vector.load %arg7[%c1, %c0_71] : memref<2x48xf32, #tpu.memory_space<vmem>>, vector<1x48xf32>
    %170 = arith.mulf %168, %168 : vector<32x48xf32>
    %cst_72 = arith.constant dense<0.000000e+00> : vector<32xf32>
    %171 = vector.multi_reduction <add>, %170, %cst_72 [1] : vector<32x48xf32> to vector<32xf32>
    %172 = vector.shape_cast %171 : vector<32xf32> to vector<32x1xf32>
    %cst_73 = arith.constant 1.000000e-24 : f32
    %173 = vector.broadcast %cst_73 : f32 to vector<32x1xf32>
    %174 = arith.maximumf %172, %173 : vector<32x1xf32>
    %175 = math.rsqrt %174 : vector<32x1xf32>
    %176 = vector.broadcast %175 : vector<32x1xf32> to vector<32x48xf32>
    %177 = arith.mulf %168, %176 : vector<32x48xf32>
    %cst_74 = arith.constant 6.92820311 : f32
    %178 = vector.broadcast %cst_74 : f32 to vector<32x48xf32>
    %179 = arith.mulf %177, %178 : vector<32x48xf32>
    %180 = vector.broadcast %169 : vector<1x48xf32> to vector<32x48xf32>
    %181 = arith.mulf %179, %180 : vector<32x48xf32>
    %c1_75 = arith.constant 1 : index
    %c0_76 = arith.constant 0 : index
    %c0_77 = arith.constant 0 : index
    %182 = vector.load %arg8[%c1_75, %c0_76, %c0_77] : memref<2x48x192xf32, #tpu.memory_space<vmem>>, vector<1x48x192xf32>
    %183 = vector.shape_cast %182 : vector<1x48x192xf32> to vector<48x192xf32>
    %cst_78 = arith.constant dense<0.000000e+00> : vector<32x192xf32>
    %184 = tpu.matmul %181, %183, %cst_78 {dimension_numbers = #tpu.dot_dimension_numbers<[1], [0], [0], [1], [0, 0, 1, 1], [], []>} : vector<32x48xf32>, vector<48x192xf32>, vector<32x192xf32> -> vector<32x192xf32>
    %185 = vector.extract_strided_slice %184 {offsets = [0, 0], sizes = [32, 16], strides = [1, 1]} : vector<32x192xf32> to vector<32x16xf32>
    %186 = vector.extract_strided_slice %184 {offsets = [0, 64], sizes = [32, 16], strides = [1, 1]} : vector<32x192xf32> to vector<32x16xf32>
    %187 = vector.extract_strided_slice %184 {offsets = [0, 128], sizes = [32, 16], strides = [1, 1]} : vector<32x192xf32> to vector<32x16xf32>
    %cst_79 = arith.constant dense<0.000000e+00> : vector<32x32xf32>
    %188 = tpu.matmul %185, %186, %cst_79 {dimension_numbers = #tpu.dot_dimension_numbers<[1], [1], [0], [0], [0, 0, 1, 0], [], []>} : vector<32x16xf32>, vector<32x16xf32>, vector<32x32xf32> -> vector<32x32xf32>
    %cst_80 = arith.constant 2.500000e-01 : f32
    %189 = vector.broadcast %cst_80 : f32 to vector<32x32xf32>
    %190 = arith.mulf %188, %189 : vector<32x32xf32>
    %191 = arith.addf %190, %12 : vector<32x32xf32>
    %cst_81 = arith.constant dense<0xFF800000> : vector<32xf32>
    %192 = vector.multi_reduction <maximumf>, %191, %cst_81 [1] : vector<32x32xf32> to vector<32xf32>
    %193 = vector.shape_cast %192 : vector<32xf32> to vector<32x1xf32>
    %194 = vector.broadcast %193 : vector<32x1xf32> to vector<32x32xf32>
    %195 = arith.subf %191, %194 : vector<32x32xf32>
    %196 = math.exp %195 : vector<32x32xf32>
    %cst_82 = arith.constant dense<0.000000e+00> : vector<32xf32>
    %197 = vector.multi_reduction <add>, %196, %cst_82 [1] : vector<32x32xf32> to vector<32xf32>
    %198 = vector.shape_cast %197 : vector<32xf32> to vector<32x1xf32>
    %199 = tpu.reciprocal %198 {approx = true} : vector<32x1xf32> -> vector<32x1xf32>
    %200 = vector.broadcast %199 : vector<32x1xf32> to vector<32x32xf32>
    %201 = arith.mulf %196, %200 : vector<32x32xf32>
    %cst_83 = arith.constant dense<0.000000e+00> : vector<32x16xf32>
    %202 = tpu.matmul %201, %187, %cst_83 {dimension_numbers = #tpu.dot_dimension_numbers<[1], [0], [0], [1], [0, 0, 1, 1], [], []>} : vector<32x32xf32>, vector<32x16xf32>, vector<32x16xf32> -> vector<32x16xf32>
    %203 = vector.extract_strided_slice %184 {offsets = [0, 16], sizes = [32, 16], strides = [1, 1]} : vector<32x192xf32> to vector<32x16xf32>
    %204 = vector.extract_strided_slice %184 {offsets = [0, 80], sizes = [32, 16], strides = [1, 1]} : vector<32x192xf32> to vector<32x16xf32>
    %205 = vector.extract_strided_slice %184 {offsets = [0, 144], sizes = [32, 16], strides = [1, 1]} : vector<32x192xf32> to vector<32x16xf32>
    %cst_84 = arith.constant dense<0.000000e+00> : vector<32x32xf32>
    %206 = tpu.matmul %203, %204, %cst_84 {dimension_numbers = #tpu.dot_dimension_numbers<[1], [1], [0], [0], [0, 0, 1, 0], [], []>} : vector<32x16xf32>, vector<32x16xf32>, vector<32x32xf32> -> vector<32x32xf32>
    %cst_85 = arith.constant 2.500000e-01 : f32
    %207 = vector.broadcast %cst_85 : f32 to vector<32x32xf32>
    %208 = arith.mulf %206, %207 : vector<32x32xf32>
    %209 = arith.addf %208, %12 : vector<32x32xf32>
    %cst_86 = arith.constant dense<0xFF800000> : vector<32xf32>
    %210 = vector.multi_reduction <maximumf>, %209, %cst_86 [1] : vector<32x32xf32> to vector<32xf32>
    %211 = vector.shape_cast %210 : vector<32xf32> to vector<32x1xf32>
    %212 = vector.broadcast %211 : vector<32x1xf32> to vector<32x32xf32>
    %213 = arith.subf %209, %212 : vector<32x32xf32>
    %214 = math.exp %213 : vector<32x32xf32>
    %cst_87 = arith.constant dense<0.000000e+00> : vector<32xf32>
    %215 = vector.multi_reduction <add>, %214, %cst_87 [1] : vector<32x32xf32> to vector<32xf32>
    %216 = vector.shape_cast %215 : vector<32xf32> to vector<32x1xf32>
    %217 = tpu.reciprocal %216 {approx = true} : vector<32x1xf32> -> vector<32x1xf32>
    %218 = vector.broadcast %217 : vector<32x1xf32> to vector<32x32xf32>
    %219 = arith.mulf %214, %218 : vector<32x32xf32>
    %cst_88 = arith.constant dense<0.000000e+00> : vector<32x16xf32>
    %220 = tpu.matmul %219, %205, %cst_88 {dimension_numbers = #tpu.dot_dimension_numbers<[1], [0], [0], [1], [0, 0, 1, 1], [], []>} : vector<32x32xf32>, vector<32x16xf32>, vector<32x16xf32> -> vector<32x16xf32>
    %221 = vector.extract_strided_slice %184 {offsets = [0, 32], sizes = [32, 16], strides = [1, 1]} : vector<32x192xf32> to vector<32x16xf32>
    %222 = vector.extract_strided_slice %184 {offsets = [0, 96], sizes = [32, 16], strides = [1, 1]} : vector<32x192xf32> to vector<32x16xf32>
    %223 = vector.extract_strided_slice %184 {offsets = [0, 160], sizes = [32, 16], strides = [1, 1]} : vector<32x192xf32> to vector<32x16xf32>
    %cst_89 = arith.constant dense<0.000000e+00> : vector<32x32xf32>
    %224 = tpu.matmul %221, %222, %cst_89 {dimension_numbers = #tpu.dot_dimension_numbers<[1], [1], [0], [0], [0, 0, 1, 0], [], []>} : vector<32x16xf32>, vector<32x16xf32>, vector<32x32xf32> -> vector<32x32xf32>
    %cst_90 = arith.constant 2.500000e-01 : f32
    %225 = vector.broadcast %cst_90 : f32 to vector<32x32xf32>
    %226 = arith.mulf %224, %225 : vector<32x32xf32>
    %227 = arith.addf %226, %12 : vector<32x32xf32>
    %cst_91 = arith.constant dense<0xFF800000> : vector<32xf32>
    %228 = vector.multi_reduction <maximumf>, %227, %cst_91 [1] : vector<32x32xf32> to vector<32xf32>
    %229 = vector.shape_cast %228 : vector<32xf32> to vector<32x1xf32>
    %230 = vector.broadcast %229 : vector<32x1xf32> to vector<32x32xf32>
    %231 = arith.subf %227, %230 : vector<32x32xf32>
    %232 = math.exp %231 : vector<32x32xf32>
    %cst_92 = arith.constant dense<0.000000e+00> : vector<32xf32>
    %233 = vector.multi_reduction <add>, %232, %cst_92 [1] : vector<32x32xf32> to vector<32xf32>
    %234 = vector.shape_cast %233 : vector<32xf32> to vector<32x1xf32>
    %235 = tpu.reciprocal %234 {approx = true} : vector<32x1xf32> -> vector<32x1xf32>
    %236 = vector.broadcast %235 : vector<32x1xf32> to vector<32x32xf32>
    %237 = arith.mulf %232, %236 : vector<32x32xf32>
    %cst_93 = arith.constant dense<0.000000e+00> : vector<32x16xf32>
    %238 = tpu.matmul %237, %223, %cst_93 {dimension_numbers = #tpu.dot_dimension_numbers<[1], [0], [0], [1], [0, 0, 1, 1], [], []>} : vector<32x32xf32>, vector<32x16xf32>, vector<32x16xf32> -> vector<32x16xf32>
    %239 = vector.extract_strided_slice %184 {offsets = [0, 48], sizes = [32, 16], strides = [1, 1]} : vector<32x192xf32> to vector<32x16xf32>
    %240 = vector.extract_strided_slice %184 {offsets = [0, 112], sizes = [32, 16], strides = [1, 1]} : vector<32x192xf32> to vector<32x16xf32>
    %241 = vector.extract_strided_slice %184 {offsets = [0, 176], sizes = [32, 16], strides = [1, 1]} : vector<32x192xf32> to vector<32x16xf32>
    %cst_94 = arith.constant dense<0.000000e+00> : vector<32x32xf32>
    %242 = tpu.matmul %239, %240, %cst_94 {dimension_numbers = #tpu.dot_dimension_numbers<[1], [1], [0], [0], [0, 0, 1, 0], [], []>} : vector<32x16xf32>, vector<32x16xf32>, vector<32x32xf32> -> vector<32x32xf32>
    %cst_95 = arith.constant 2.500000e-01 : f32
    %243 = vector.broadcast %cst_95 : f32 to vector<32x32xf32>
    %244 = arith.mulf %242, %243 : vector<32x32xf32>
    %245 = arith.addf %244, %12 : vector<32x32xf32>
    %cst_96 = arith.constant dense<0xFF800000> : vector<32xf32>
    %246 = vector.multi_reduction <maximumf>, %245, %cst_96 [1] : vector<32x32xf32> to vector<32xf32>
    %247 = vector.shape_cast %246 : vector<32xf32> to vector<32x1xf32>
    %248 = vector.broadcast %247 : vector<32x1xf32> to vector<32x32xf32>
    %249 = arith.subf %245, %248 : vector<32x32xf32>
    %250 = math.exp %249 : vector<32x32xf32>
    %cst_97 = arith.constant dense<0.000000e+00> : vector<32xf32>
    %251 = vector.multi_reduction <add>, %250, %cst_97 [1] : vector<32x32xf32> to vector<32xf32>
    %252 = vector.shape_cast %251 : vector<32xf32> to vector<32x1xf32>
    %253 = tpu.reciprocal %252 {approx = true} : vector<32x1xf32> -> vector<32x1xf32>
    %254 = vector.broadcast %253 : vector<32x1xf32> to vector<32x32xf32>
    %255 = arith.mulf %250, %254 : vector<32x32xf32>
    %cst_98 = arith.constant dense<0.000000e+00> : vector<32x16xf32>
    %256 = tpu.matmul %255, %241, %cst_98 {dimension_numbers = #tpu.dot_dimension_numbers<[1], [0], [0], [1], [0, 0, 1, 1], [], []>} : vector<32x32xf32>, vector<32x16xf32>, vector<32x16xf32> -> vector<32x16xf32>
    %257 = tpu.concatenate %202, %220, %238, %256 in 1 : vector<32x16xf32>, vector<32x16xf32>, vector<32x16xf32>, vector<32x16xf32> -> vector<32x64xf32>
    %c1_99 = arith.constant 1 : index
    %c0_100 = arith.constant 0 : index
    %c0_101 = arith.constant 0 : index
    %258 = vector.load %arg9[%c1_99, %c0_100, %c0_101] : memref<2x64x48xf32, #tpu.memory_space<vmem>>, vector<1x64x48xf32>
    %259 = vector.shape_cast %258 : vector<1x64x48xf32> to vector<64x48xf32>
    %cst_102 = arith.constant dense<0.000000e+00> : vector<32x48xf32>
    %260 = tpu.matmul %257, %259, %cst_102 {dimension_numbers = #tpu.dot_dimension_numbers<[1], [0], [0], [1], [0, 0, 1, 1], [], []>} : vector<32x64xf32>, vector<64x48xf32>, vector<32x48xf32> -> vector<32x48xf32>
    %261 = arith.addf %164, %260 : vector<32x48xf32>
    %c1_i32_103 = arith.constant 1 : i32
    %262 = tpu.dynamic_rotate %261 by %c1_i32_103 dim 0 : vector<32x48xf32>, i32 -> vector<32x48xf32>
    %263 = arith.mulf %261, %13 : vector<32x48xf32>
    %264 = arith.mulf %262, %14 : vector<32x48xf32>
    %265 = arith.addf %263, %264 : vector<32x48xf32>
    %c1_104 = arith.constant 1 : index
    %c0_105 = arith.constant 0 : index
    %266 = vector.load %arg10[%c1_104, %c0_105] : memref<2x48xf32, #tpu.memory_space<vmem>>, vector<1x48xf32>
    %267 = arith.mulf %265, %265 : vector<32x48xf32>
    %cst_106 = arith.constant dense<0.000000e+00> : vector<32xf32>
    %268 = vector.multi_reduction <add>, %267, %cst_106 [1] : vector<32x48xf32> to vector<32xf32>
    %269 = vector.shape_cast %268 : vector<32xf32> to vector<32x1xf32>
    %cst_107 = arith.constant 1.000000e-24 : f32
    %270 = vector.broadcast %cst_107 : f32 to vector<32x1xf32>
    %271 = arith.maximumf %269, %270 : vector<32x1xf32>
    %272 = math.rsqrt %271 : vector<32x1xf32>
    %273 = vector.broadcast %272 : vector<32x1xf32> to vector<32x48xf32>
    %274 = arith.mulf %265, %273 : vector<32x48xf32>
    %cst_108 = arith.constant 6.92820311 : f32
    %275 = vector.broadcast %cst_108 : f32 to vector<32x48xf32>
    %276 = arith.mulf %274, %275 : vector<32x48xf32>
    %277 = vector.broadcast %266 : vector<1x48xf32> to vector<32x48xf32>
    %278 = arith.mulf %276, %277 : vector<32x48xf32>
    %c1_109 = arith.constant 1 : index
    %c0_110 = arith.constant 0 : index
    %c0_111 = arith.constant 0 : index
    %279 = vector.load %arg11[%c1_109, %c0_110, %c0_111] : memref<2x48x256xf32, #tpu.memory_space<vmem>>, vector<1x48x256xf32>
    %280 = vector.shape_cast %279 : vector<1x48x256xf32> to vector<48x256xf32>
    %cst_112 = arith.constant dense<0.000000e+00> : vector<32x256xf32>
    %281 = tpu.matmul %278, %280, %cst_112 {dimension_numbers = #tpu.dot_dimension_numbers<[1], [0], [0], [1], [0, 0, 1, 1], [], []>} : vector<32x48xf32>, vector<48x256xf32>, vector<32x256xf32> -> vector<32x256xf32>
    %282 = vector.extract_strided_slice %281 {offsets = [0, 0], sizes = [32, 128], strides = [1, 1]} : vector<32x256xf32> to vector<32x128xf32>
    %283 = vector.extract_strided_slice %281 {offsets = [0, 128], sizes = [32, 128], strides = [1, 1]} : vector<32x256xf32> to vector<32x128xf32>
    %cst_113 = arith.constant 5.000000e-01 : f32
    %284 = vector.broadcast %cst_113 : f32 to vector<32x128xf32>
    %285 = arith.mulf %284, %283 : vector<32x128xf32>
    %cst_114 = arith.constant 4.471500e-02 : f32
    %286 = vector.broadcast %cst_114 : f32 to vector<32x128xf32>
    %287 = arith.mulf %286, %283 : vector<32x128xf32>
    %288 = arith.mulf %287, %283 : vector<32x128xf32>
    %289 = arith.mulf %288, %283 : vector<32x128xf32>
    %290 = arith.addf %283, %289 : vector<32x128xf32>
    %cst_115 = arith.constant 0.797884583 : f32
    %291 = vector.broadcast %cst_115 : f32 to vector<32x128xf32>
    %292 = arith.mulf %291, %290 : vector<32x128xf32>
    %293 = math.tanh %292 : vector<32x128xf32>
    %cst_116 = arith.constant 1.000000e+00 : f32
    %294 = vector.broadcast %cst_116 : f32 to vector<32x128xf32>
    %295 = arith.addf %294, %293 : vector<32x128xf32>
    %296 = arith.mulf %285, %295 : vector<32x128xf32>
    %297 = arith.mulf %282, %296 : vector<32x128xf32>
    %c1_117 = arith.constant 1 : index
    %c0_118 = arith.constant 0 : index
    %298 = vector.load %arg12[%c1_117, %c0_118] : memref<2x128xf32, #tpu.memory_space<vmem>>, vector<1x128xf32>
    %299 = arith.mulf %297, %297 : vector<32x128xf32>
    %cst_119 = arith.constant dense<0.000000e+00> : vector<32xf32>
    %300 = vector.multi_reduction <add>, %299, %cst_119 [1] : vector<32x128xf32> to vector<32xf32>
    %301 = vector.shape_cast %300 : vector<32xf32> to vector<32x1xf32>
    %cst_120 = arith.constant 1.000000e-24 : f32
    %302 = vector.broadcast %cst_120 : f32 to vector<32x1xf32>
    %303 = arith.maximumf %301, %302 : vector<32x1xf32>
    %304 = math.rsqrt %303 : vector<32x1xf32>
    %305 = vector.broadcast %304 : vector<32x1xf32> to vector<32x128xf32>
    %306 = arith.mulf %297, %305 : vector<32x128xf32>
    %cst_121 = arith.constant 11.3137083 : f32
    %307 = vector.broadcast %cst_121 : f32 to vector<32x128xf32>
    %308 = arith.mulf %306, %307 : vector<32x128xf32>
    %309 = vector.broadcast %298 : vector<1x128xf32> to vector<32x128xf32>
    %310 = arith.mulf %308, %309 : vector<32x128xf32>
    %c1_122 = arith.constant 1 : index
    %c0_123 = arith.constant 0 : index
    %c0_124 = arith.constant 0 : index
    %311 = vector.load %arg13[%c1_122, %c0_123, %c0_124] : memref<2x128x48xf32, #tpu.memory_space<vmem>>, vector<1x128x48xf32>
    %312 = vector.shape_cast %311 : vector<1x128x48xf32> to vector<128x48xf32>
    %cst_125 = arith.constant dense<0.000000e+00> : vector<32x48xf32>
    %313 = tpu.matmul %310, %312, %cst_125 {dimension_numbers = #tpu.dot_dimension_numbers<[1], [0], [0], [1], [0, 0, 1, 1], [], []>} : vector<32x128xf32>, vector<128x48xf32>, vector<32x48xf32> -> vector<32x48xf32>
    %314 = arith.addf %261, %313 : vector<32x48xf32>
    %315 = vector.extract_strided_slice %314 {offsets = [8, 0], sizes = [16, 48], strides = [1, 1]} : vector<32x48xf32> to vector<16x48xf32>
    %c0_126 = arith.constant 0 : index
    %c0_127 = arith.constant 0 : index
    %316 = vector.load %arg14[%c0_126, %c0_127] : memref<1x48xf32, #tpu.memory_space<vmem>>, vector<1x48xf32>
    %317 = arith.mulf %315, %315 : vector<16x48xf32>
    %cst_128 = arith.constant dense<0.000000e+00> : vector<16xf32>
    %318 = vector.multi_reduction <add>, %317, %cst_128 [1] : vector<16x48xf32> to vector<16xf32>
    %319 = vector.shape_cast %318 : vector<16xf32> to vector<16x1xf32>
    %cst_129 = arith.constant 1.000000e-24 : f32
    %320 = vector.broadcast %cst_129 : f32 to vector<16x1xf32>
    %321 = arith.maximumf %319, %320 : vector<16x1xf32>
    %322 = math.rsqrt %321 : vector<16x1xf32>
    %323 = vector.broadcast %322 : vector<16x1xf32> to vector<16x48xf32>
    %324 = arith.mulf %315, %323 : vector<16x48xf32>
    %cst_130 = arith.constant 6.92820311 : f32
    %325 = vector.broadcast %cst_130 : f32 to vector<16x48xf32>
    %326 = arith.mulf %324, %325 : vector<16x48xf32>
    %327 = vector.broadcast %316 : vector<1x48xf32> to vector<16x48xf32>
    %328 = arith.mulf %326, %327 : vector<16x48xf32>
    %c0_131 = arith.constant 0 : index
    %c0_132 = arith.constant 0 : index
    %329 = vector.load %arg15[%c0_131, %c0_132] : memref<48x128xf32, #tpu.memory_space<vmem>>, vector<48x128xf32>
    %cst_133 = arith.constant dense<0.000000e+00> : vector<16x128xf32>
    %330 = tpu.matmul %328, %329, %cst_133 {dimension_numbers = #tpu.dot_dimension_numbers<[1], [0], [0], [1], [0, 0, 1, 1], [], []>} : vector<16x48xf32>, vector<48x128xf32>, vector<16x128xf32> -> vector<16x128xf32>
    %c0_134 = arith.constant 0 : index
    %c0_135 = arith.constant 0 : index
    %331 = vector.load %arg16[%c0_134, %c0_135] : memref<1x128xf32, #tpu.memory_space<vmem>>, vector<1x128xf32>
    %332 = vector.broadcast %331 : vector<1x128xf32> to vector<16x128xf32>
    %333 = arith.addf %330, %332 : vector<16x128xf32>
    %c0_136 = arith.constant 0 : index
    %c0_137 = arith.constant 0 : index
    %c0_138 = arith.constant 0 : index
    %c0_139 = arith.constant 0 : index
    %334 = vector.load %arg17[%c0_136, %c0_137, %c0_138, %c0_139] : memref<1x1x16x128xf32, #tpu.memory_space<vmem>>, vector<1x1x16x128xf32>
    %335 = vector.shape_cast %334 : vector<1x1x16x128xf32> to vector<16x128xf32>
    %336 = vector.shape_cast %333 : vector<16x128xf32> to vector<1x1x16x128xf32>
    tpu.vector_store %arg17[%c0_136, %c0_137, %c0_138, %c0_139], %336 {strides = array<i32>} : memref<1x1x16x128xf32, #tpu.memory_space<vmem>>, vector<1x1x16x128xf32>,
    %337 = vector.extract_strided_slice %314 {offsets = [24, 0], sizes = [8, 48], strides = [1, 1]} : vector<32x48xf32> to vector<8x48xf32>
    %c0_140 = arith.constant 0 : index
    %c0_141 = arith.constant 0 : index
    %338 = vector.load %arg19[%c0_140, %c0_141] : memref<8x48xf32, #tpu.memory_space<vmem>>, vector<8x48xf32>
    tpu.vector_store %arg19[%c0_140, %c0_141], %337 {strides = array<i32>} : memref<8x48xf32, #tpu.memory_space<vmem>>, vector<8x48xf32>,
    %c0_142 = arith.constant 0 : index
    %c0_143 = arith.constant 0 : index
    %c0_144 = arith.constant 0 : index
    %339 = vector.load %arg18[%c0_142, %c0_143, %c0_144] : memref<1x8x48xf32, #tpu.memory_space<vmem>>, vector<1x8x48xf32>
    %340 = vector.shape_cast %339 : vector<1x8x48xf32> to vector<8x48xf32>
    %341 = vector.shape_cast %337 : vector<8x48xf32> to vector<1x8x48xf32>
    tpu.vector_store %arg18[%c0_142, %c0_143, %c0_144], %341 {strides = array<i32>} : memref<1x8x48xf32, #tpu.memory_space<vmem>>, vector<1x8x48xf32>,
    return
  }
  func.func @transform_0(%arg0: i32, %arg1: i32) -> (i32, i32, i32) {
    %c1_i32 = arith.constant 1 : i32
    %0 = arith.minsi %arg1, %c1_i32 : i32
    %c0_i32 = arith.constant 0 : i32
    %c0_i32_0 = arith.constant 0 : i32
    %c0_i32_1 = arith.constant 0 : i32
    return %0, %c0_i32, %c0_i32_0 : i32, i32, i32
  }
  func.func @transform_1(%arg0: i32, %arg1: i32) -> (i32, i32, i32, i32) {
    %c0_i32 = arith.constant 0 : i32
    %c0_i32_0 = arith.constant 0 : i32
    %c0_i32_1 = arith.constant 0 : i32
    return %arg1, %arg0, %c0_i32, %c0_i32_0 : i32, i32, i32, i32
  }
  func.func @transform_2(%arg0: i32, %arg1: i32) -> (i32, i32) {
    %c0_i32 = arith.constant 0 : i32
    %c0_i32_0 = arith.constant 0 : i32
    %c0_i32_1 = arith.constant 0 : i32
    return %c0_i32, %c0_i32_0 : i32, i32
  }
  func.func @transform_3(%arg0: i32, %arg1: i32) -> (i32, i32) {
    %c0_i32 = arith.constant 0 : i32
    %c0_i32_0 = arith.constant 0 : i32
    %c0_i32_1 = arith.constant 0 : i32
    return %c0_i32, %c0_i32_0 : i32, i32
  }
  func.func @transform_4(%arg0: i32, %arg1: i32) -> (i32, i32) {
    %c0_i32 = arith.constant 0 : i32
    %c0_i32_0 = arith.constant 0 : i32
    %c0_i32_1 = arith.constant 0 : i32
    return %c0_i32, %c0_i32_0 : i32, i32
  }
  func.func @transform_5(%arg0: i32, %arg1: i32) -> (i32, i32) {
    %c0_i32 = arith.constant 0 : i32
    %c0_i32_0 = arith.constant 0 : i32
    %c0_i32_1 = arith.constant 0 : i32
    return %c0_i32, %c0_i32_0 : i32, i32
  }
  func.func @transform_6(%arg0: i32, %arg1: i32) -> (i32, i32, i32) {
    %c0_i32 = arith.constant 0 : i32
    %c0_i32_0 = arith.constant 0 : i32
    %c0_i32_1 = arith.constant 0 : i32
    %c0_i32_2 = arith.constant 0 : i32
    return %c0_i32, %c0_i32_0, %c0_i32_1 : i32, i32, i32
  }
  func.func @transform_7(%arg0: i32, %arg1: i32) -> (i32, i32, i32) {
    %c0_i32 = arith.constant 0 : i32
    %c0_i32_0 = arith.constant 0 : i32
    %c0_i32_1 = arith.constant 0 : i32
    %c0_i32_2 = arith.constant 0 : i32
    return %c0_i32, %c0_i32_0, %c0_i32_1 : i32, i32, i32
  }
  func.func @transform_8(%arg0: i32, %arg1: i32) -> (i32, i32) {
    %c0_i32 = arith.constant 0 : i32
    %c0_i32_0 = arith.constant 0 : i32
    %c0_i32_1 = arith.constant 0 : i32
    return %c0_i32, %c0_i32_0 : i32, i32
  }
  func.func @transform_9(%arg0: i32, %arg1: i32) -> (i32, i32, i32) {
    %c0_i32 = arith.constant 0 : i32
    %c0_i32_0 = arith.constant 0 : i32
    %c0_i32_1 = arith.constant 0 : i32
    %c0_i32_2 = arith.constant 0 : i32
    return %c0_i32, %c0_i32_0, %c0_i32_1 : i32, i32, i32
  }
  func.func @transform_10(%arg0: i32, %arg1: i32) -> (i32, i32) {
    %c0_i32 = arith.constant 0 : i32
    %c0_i32_0 = arith.constant 0 : i32
    %c0_i32_1 = arith.constant 0 : i32
    return %c0_i32, %c0_i32_0 : i32, i32
  }
  func.func @transform_11(%arg0: i32, %arg1: i32) -> (i32, i32, i32) {
    %c0_i32 = arith.constant 0 : i32
    %c0_i32_0 = arith.constant 0 : i32
    %c0_i32_1 = arith.constant 0 : i32
    %c0_i32_2 = arith.constant 0 : i32
    return %c0_i32, %c0_i32_0, %c0_i32_1 : i32, i32, i32
  }
  func.func @transform_12(%arg0: i32, %arg1: i32) -> (i32, i32) {
    %c0_i32 = arith.constant 0 : i32
    %c0_i32_0 = arith.constant 0 : i32
    %c0_i32_1 = arith.constant 0 : i32
    return %c0_i32, %c0_i32_0 : i32, i32
  }
  func.func @transform_13(%arg0: i32, %arg1: i32) -> (i32, i32) {
    %c0_i32 = arith.constant 0 : i32
    %c0_i32_0 = arith.constant 0 : i32
    %c0_i32_1 = arith.constant 0 : i32
    return %c0_i32, %c0_i32_0 : i32, i32
  }
  func.func @transform_14(%arg0: i32, %arg1: i32) -> (i32, i32) {
    %c0_i32 = arith.constant 0 : i32
    %c0_i32_0 = arith.constant 0 : i32
    %c0_i32_1 = arith.constant 0 : i32
    return %c0_i32, %c0_i32_0 : i32, i32
  }
  func.func @transform_15(%arg0: i32, %arg1: i32) -> (i32, i32, i32, i32) {
    %c0_i32 = arith.constant 0 : i32
    %c0_i32_0 = arith.constant 0 : i32
    %c0_i32_1 = arith.constant 0 : i32
    return %arg1, %arg0, %c0_i32, %c0_i32_0 : i32, i32, i32, i32
  }
  func.func @transform_16(%arg0: i32, %arg1: i32) -> (i32, i32, i32) {
    %c0_i32 = arith.constant 0 : i32
    %c0_i32_0 = arith.constant 0 : i32
    %c0_i32_1 = arith.constant 0 : i32
    return %arg0, %c0_i32, %c0_i32_0 : i32, i32, i32
  }
}

</mosaic_0001>

<bundles_post_ra>
// kernel: _rmt_forward_impl.1
= control target key start
LH: loop header
LB: loop body
LE: loop exit
PB: predicated region body
PF: predicated region fallthrough
CT: control target
= control target key end

     0   :  { %s7357_s0 = inlined_call_operand.vmem [shape: f32[2,32,32], index: 0, kind: input, shape index: {}]   ;;  %s7358_s1 = inlined_call_operand.vmem [shape: f32[2,1,32,48], index: 1, kind: input, shape index: {}]   ;;  %s7359_s2 = inlined_call_operand.vmem [shape: f32[1,48], index: 2, kind: input, shape index: {}]   ;;  %s7360_s3 = inlined_call_operand.vmem [shape: f32[32,48], index: 3, kind: input, shape index: {}]   ;;  %s7361_s4 = inlined_call_operand.vmem [shape: f32[32,48], index: 4, kind: input, shape index: {}]   ;;  %s7362_s5 = inlined_call_operand.vmem [shape: f32[2,48], index: 5, kind: input, shape index: {}]   ;;  %s7363_s6 = inlined_call_operand.vmem [shape: f32[2,48,192], index: 6, kind: input, shape index: {}]   ;;  %s7364_s7 = inlined_call_operand.vmem [shape: f32[2,64,48], index: 7, kind: input, shape index: {}]   ;;  %s7365_s8 = inlined_call_operand.vmem [shape: f32[2,48], index: 8, kind: input, shape index: {}]   ;;  %s7366_s9 = inlined_call_operand.vmem [shape: f32[2,48,256], index: 9, kind: input, shape index: {}]   ;;  %s7367_s10 = inlined_call_operand.vmem [shape: f32[2,128], index: 10, kind: input, shape index: {}]   ;;  %s7368_s11 = inlined_call_operand.vmem [shape: f32[2,128,48], index: 11, kind: input, shape index: {}]   ;;  %s7369_s12 = inlined_call_operand.vmem [shape: f32[1,48], index: 12, kind: input, shape index: {}]   ;;  %s7370_s13 = inlined_call_operand.vmem [shape: f32[48,128], index: 13, kind: input, shape index: {}]   ;;  %s7371_s14 = inlined_call_operand.vmem [shape: f32[1,128], index: 14, kind: input, shape index: {}]   ;;  %s7372_s15 = inlined_call_operand.vmem [shape: f32[2,1,16,128], index: 15, kind: output, shape index: {0}]   ;;  %s7373_s16 = inlined_call_operand.hbm [shape: f32[1,8,48], index: 16, kind: output, shape index: {1}]  }
   0x1   :  { %7384 = sst [smem:[#allocation8_spill]] %s7357_s0 }
   0x2   :  { %7385 = sst [smem:[#allocation9_spill]] %s7371_s14 }
   0x3   :  { %7386 = sst [smem:[#allocation10_spill]] %s7373_s16 }
   0x4   :  { %22 = vsyncpa [#allocation4], 0  ;;  %s6113_s21 = smov 0   ;;  %s6115_s22 = smov 0  }
   0x5   :  { %s6117_s23 = smov 0  }
   0x6 LB: > { %7387 = sst [smem:[#allocation6_spill]] %s6012_s22  ;;  %s37_s25 = sadd.s32 1, %s6012_s22  ;;  %s6016_s23 = sphi %s6117_s23, %s28_s23   ;;  %s6012_s22 = sphi %s6115_s22, %s7401_s22   ;;  %s6008_s21 = sphi %s6113_s21, %s7400_s21  }
   0x7   : > { %p38_p0 = scmp.ge.s32.totalorder %s37_s25, 2  ;;  %p4493_p1 = scmp.ge.s32.totalorder %s6016_s23, 1 }
   0x8   : > { %p504_p2 = scmp.lt.s32.totalorder %s6016_s23, 3 }
   0x9   : > { %s7403_s25 = smov (%p38_p0, %s37_s25), 0 }
   0xa   : > { %7388 = sst [smem:[#allocation7_spill]] %s7403_s25  ;;  %p505_p3 = pnand %p4493_p1, %p504_p2 }
   0xb   : > { %p569_p4 = scmp.lt.s32.totalorder (!%p505_p3), %s6008_s21, 1  ;;  %s7389_s24 = sld [smem:[#allocation8_spill]] (!%p505_p3) }
   0xc   : > { %508 = sbr.rel (%p505_p3) target bundleno = 7629 (0x1dcd), region = 80  ;;  %p4503_p5 = scmp.ne.s32.totalorder (!%p505_p3), %s6008_s21, 0 }
  0x13   : > { %s570_s26 = scalar_select %p569_p4, %s6008_s21, 1 }
  0x14   : > { %599 = sbr.rel (%p4503_p5) target bundleno = 27 (0x1b), region = 84  ;;  %vm600_vm0 = vcmask (!%p4503_p5), 392192   ;;  %v6018_v0 = vmov (!%p4503_p5), 0.0  }
  0x15   : > { %s572_s27 = scalar_select %p569_p4, %s570_s26, 1 }
  0x16   : > { %s4688_s28 = sshll.u32 %s570_s26, 5  ;;  %s4689_s29 = sshll.u32 %s570_s26, 4  ;;  %601 = vst.msk [vmem:[#allocation2] sm:$0xff] (!%p4503_p5), %vm600_vm0, %v6018_v0 }
  0x17   : > { %s4687_s30 = sshll.u32 %s572_s27, 5  ;;  %s6135_s18 = scalar_lea.vmem %s7358_s1, %s4688_s28 }
  0x18   : > { %s6140_s22 = scalar_lea.vmem %s7389_s24, %s4687_s30  ;;  %s6145_s16 = scalar_lea.vmem %s7372_s15, %s4689_s29 }
  0x1b PF: > { %v4504_v2 = vld [vmem:[%s7359_s2] ss:$0 sm:$0xff]  ;;  %v613_v3 = vld [vmem:[%s6135_s18 + $0x18] sm:$0xff]  ;;  %v630_v4 = vlaneseq  ;;  %v611_v9 = vld [vmem:[%s6135_s18 + $0x8] sm:$0xff]  ;;  %vm654_vm2 = vcmask 392192   ;;  %v6019_v59 = vmov 0.0  }
  0x1c   : > { %v618_v6 = vld [vmem:[%s7360_s3] sm:$0xff]  ;;  %v629_v8 = vrot.slane %v613_v3, 7  ;;  %v619_v11 = vld [vmem:[%s7360_s3 + $0x8] sm:$0xff]  ;;  %v627_v13 = vrot.slane %v611_v9, 7  ;;  %v612_v14 = vld [vmem:[%s6135_s18 + $0x10] sm:$0xff]  ;;  %779 = vmatprep.mubr.f32.mxu0 %v6019_v59  ;;  %vm816_vm3 = vcmask 130048  }
  0x1d   : > { %v602_v1 = vld [vmem:[#allocation2] sm:$0xff]  ;;  %v6160_v10 = vshrl.u32 %v630_v4, 7  ;;  %v623_v12 = vld [vmem:[%s7361_s4 + $0x8] sm:$0xff]  ;;  %v620_v17 = vld [vmem:[%s7360_s3 + $0x10] sm:$0xff]  ;;  %v628_v19 = vrot.slane %v612_v14, 7  ;;  %v638_v21 = vmul.f32 %v619_v11, %v611_v9  ;;  %s6020_s25 = smov 48  }
  0x1e   : > { %v6151_v5 = vadd.f32 %v4504_v2, %v602_v1  ;;  %v622_v7 = vld [vmem:[%s7361_s4] sm:$0xff]  ;;  %v624_v18 = vld [vmem:[%s7361_s4 + $0x10] sm:$0xff]  ;;  %v621_v20 = vld [vmem:[%s7360_s3 + $0x18] sm:$0xff]  ;;  %v639_v22 = vmul.f32 %v620_v17, %v612_v14  ;;  %s6021_s28 = smov 112   ;;  %vm926_vm5 = vcmask 261120   ;;  %s6022_s29 = smov 64  }
  0x1f   : > { %vm632_vm1 = vcmp.lt.s32.totalorder %v6160_v10, 1  ;;  %v625_v23 = vld [vmem:[%s7361_s4 + $0x18] sm:$0xff]  ;;  %v640_v24 = vmul.f32 %v621_v20, %v613_v3  ;;  %v692_v45 = vld [vmem:[%s7363_s6 + $0x8] sm:$0xff]  ;;  %v691_v48 = vld [vmem:[%s7363_s6] sm:$0xff]  ;;  %s7382_s30 = smov 32   ;;  %s7380_s0 = smov 96  }
  0x20   : > { %v626_v15 = vrot.slane %v6151_v5, 7  ;;  %v637_v16 = vmul.f32 %v618_v6, %v6151_v5  ;;  %v634_v27 = vsel %vm632_vm1, %v627_v13, %v628_v19  ;;  %v633_v28 = vsel %vm632_vm1, %v628_v19, %v629_v8  ;;  %v694_v46 = vld [vmem:[%s7363_s6 + $0x18] sm:$0xff]  ;;  %v693_v49 = vld [vmem:[%s7363_s6 + $0x10] sm:$0xff]  ;;  %v696_v51 = vld [vmem:[%s7363_s6 + $0x28] sm:$0xff]  ;;  %s7378_s17 = smov 16   ;;  %s7376_s19 = smov 80  }
  0x21   : > { %v643_v31 = vmul.f32 %v634_v27, %v624_v18  ;;  %v644_v32 = vmul.f32 %v633_v28, %v625_v23  ;;  %v5249_v47 = vpack.c.bf16 %v694_v46, %v692_v45  ;;  %v5251_v50 = vpack.c.bf16 %v693_v49, %v691_v48  ;;  %v698_v52 = vld [vmem:[%s7363_s6 + $0x38] sm:$0xff]  ;;  %v695_v54 = vld [vmem:[%s7363_s6 + $0x20] sm:$0xff]  ;;  %v697_v55 = vld [vmem:[%s7363_s6 + $0x30] sm:$0xff]  ;;  %s7395_s21 = smov 80   ;;  %s6027_s27 = smov [#allocation3]  }
  0x22   : > { %v636_v25 = vsel %vm632_vm1, %v629_v8, %v626_v15  ;;  %v635_v26 = vsel %vm632_vm1, %v626_v15, %v627_v13  ;;  %v5253_v53 = vpack.c.bf16 %v698_v52, %v696_v51  ;;  %v700_v56 = vld [vmem:[%s7363_s6 + $0x48] sm:$0xff]  ;;  %v5255_v57 = vpack.c.bf16 %v697_v55, %v695_v54  ;;  %v702_v58 = vld [vmem:[%s7363_s6 + $0x58] sm:$0xff]  ;;  %v699_v61 = vld [vmem:[%s7363_s6 + $0x40] sm:$0xff]  ;;  %s4377_s14 = sshll.u32 %s6027_s27, 4  ;;  %s4378_s14 = int_to_ptr.vmem [resolvable:$true] %s4377_s14 }
  0x23   : > { %v641_v29 = vmul.f32 %v636_v25, %v622_v7  ;;  %v642_v30 = vmul.f32 %v635_v26, %v623_v12  ;;  %v647_v35 = vadd.f32 %v643_v31, %v639_v22  ;;  %v6194_v36 = vadd.f32 %v644_v32, %v640_v24  ;;  %5250 = vmatprep.subr.bf16.mxu0 %v5249_v47  ;;  %v701_v62 = vld [vmem:[%s7363_s6 + $0x50] sm:$0xff]  ;;  %v4505_v13 = vld [vmem:[%s7362_s5] ss:$0 sm:$0xff]  ;;  %vm6293_vm4 = vmpackc.low %vm816_vm3, %vm816_vm3  ;;  %s5964_s24 = scalar_lea.vmem %s4378_s14, 128  ;;  %p5971_p10 = scmp.lt.s32.totalorder %s4378_s14, %s4378_s14 }
  0x24   : > { %5252 = vmatpush1.bf16.msra.mxu0 %v5251_v50  ;;  %v5257_v60 = vpack.c.bf16 %v702_v58, %v700_v56  ;;  %v5259_v63 = vpack.c.bf16 %v701_v62, %v699_v61  ;;  %v6310_v55 = vld [vmem:[%s6140_s22 + $0x8] sm:$0xff]  ;;  %v6313_v58 = vld [vmem:[%s6140_s22] sm:$0xff]  ;;  %vm1974_vm6 = vcmask 523264   ;;  %v5962_v10 = vld [vmem:[%s7361_s4 + $0x18] sm:$0xff]  ;;  %p5965_p7 = scmp.ne.s32.totalorder %s4378_s14, %s5964_s24  ;;  %p5972_p11 = scmp.lt.s32.totalorder %s5964_s24, %s5964_s24 }
  0x25   : > { %v645_v33 = vadd.f32 %v641_v29, %v637_v16  ;;  %v6192_v34 = vadd.f32 %v642_v30, %v638_v21  ;;  %v652_v39 = vmul.f32 %v647_v35, %v647_v35  ;;  %v653_v40 = vmul.f32 %v6194_v36, %v6194_v36  ;;  %5254 = vmatprep.subr.bf16.mxu0 %v5253_v53 }
  0x26   : > { %p5973_p12 = por %p5972_p11, %p5971_p10 }
  0x27   : > { %v650_v37 = vmul.f32 %v645_v33, %v645_v33  ;;  %v651_v38 = vmul.f32 %v6192_v34, %v6192_v34  ;;  %v661_v42 = vsel %vm654_vm2, %v652_v39, 0.0  ;;  %v664_v44 = vsel %vm654_vm2, %v653_v40, 0.0 }
  0x28   : > { %662 = vadd.xlane.f32.xlu1 %v661_v42  ;;  %5256 = vmatpush1.bf16.msra.mxu0 %v5255_v57 }
  0x29   : > { %v655_v41 = vsel %vm654_vm2, %v650_v37, 0.0  ;;  %v658_v43 = vsel %vm654_vm2, %v651_v38, 0.0  ;;  %5258 = vmatprep.subr.bf16.mxu0 %v5257_v60 }
  0x2a   : > { %656 = vadd.xlane.f32.xlu0 %v655_v41 }
  0x2c   : > { %665 = vadd.xlane.f32.xlu1 %v664_v44  ;;  %5260 = vmatpush1.bf16.msra.mxu0 %v5259_v63 }
  0x2e   : > { %659 = vadd.xlane.f32.xlu0 %v658_v43 }
  0xb5   : > { %v663_v1 = vpop.xlane.xlu1 %662 }
  0xb6   : > { %v669_v3 = vmax.f32 %v663_v1, 1e-24 }
  0xb7   : > { %v657_v0 = vpop.xlane.xlu0 %656 }
  0xb8   : > { %v667_v2 = vmax.f32 %v657_v0, 1e-24 }
  0xb9   : > { %v666_v6 = vpop.xlane.xlu1 %665 }
  0xba   : > { %5745 = vrsqrt.f32 %v667_v2  ;;  %v670_v8 = vmax.f32 %v666_v6, 1e-24  ;;  %v6319_v2 = vld [vmem:[%s6140_s22 + $0x10] sm:$0xff] }
  0xbb   : > { %v660_v4 = vpop.xlane.xlu0 %659  ;;  %5747 = vrsqrt.f32 %v669_v3 }
  0xbc   : > { %v668_v7 = vmax.f32 %v660_v4, 1e-24 }
  0xbe   : > { %5749 = vrsqrt.f32 %v668_v7  ;;  %v6323_v7 = vld [vmem:[%s6140_s22 + $0x18] sm:$0xff] }
  0xbf   : > { %5751 = vrsqrt.f32 %v670_v8 }
  0xc4   : > { %v5746_v9 = vpop.eup %5745 }
  0xc5   : > { %v5748_v11 = vpop.eup %5747  ;;  %v675_v12 = vmul.f32 %v5746_v9, %v645_v33 }
  0xc6   : > { %v677_v15 = vmul.f32 %v5748_v11, %v647_v35 }
  0xc7   : > { %v679_v14 = vmul.f32 6.928203, %v675_v12 }
  0xc8   : > { %v5750_v16 = vpop.eup %5749  ;;  %v681_v21 = vmul.f32 6.928203, %v677_v15 }
  0xc9   : > { %v5752_v17 = vpop.eup %5751  ;;  %v687_v18 = vmul.f32 %v4505_v13, %v679_v14  ;;  %v676_v19 = vmul.f32 %v5750_v16, %v6192_v34 }
  0xca   : > { %v678_v22 = vmul.f32 %v5752_v17, %v6194_v36  ;;  %v689_v24 = vmul.f32 %v4505_v13, %v681_v21 }
  0xcb   : > { %4506 = vmatmul.mubr.msk.f32.vlgmr.msra.gmra.mrb[0].mxu0 %vm654_vm2, %v687_v18  ;;  %v680_v20 = vmul.f32 6.928203, %v676_v19 }
  0xcc   : > { %785 = vmatprep.mubr.f32.mxu0 %v6019_v59  ;;  %v682_v25 = vmul.f32 6.928203, %v678_v22 }
  0xcd   : > { %v688_v23 = vmul.f32 %v4505_v13, %v680_v20 }
  0xce   : > { %v690_v26 = vmul.f32 %v4505_v13, %v682_v25 }
  0xcf   : > { %4507 = vmatmul.mubr.msk.f32.gmra.mrb[2].mxu0 %vm654_vm2, %v688_v23 }
  0xd0   : > { %791 = vmatprep.mubr.f32.mxu0 %v6019_v59 }
  0xd3   : > { %4508 = vmatmul.mubr.msk.f32.gmra.mrb[4].mxu0 %vm654_vm2, %v689_v24 }
  0xd4   : > { %797 = vmatprep.mubr.f32.mxu0 %v6019_v59 }
  0xd7   : > { %4509 = vmatmul.mubr.msk.f32.gmra.mrb[6].mxu0 %vm654_vm2, %v690_v26 }
 0x19e   : > { %v6253_v27 = vpop.f32.mrb[0].mxu0 }
 0x19f   : > { %v783_v28 = vpop.f32.mrb[1].mxu0  ;;  %4898 = vmatprep.mubr.msk.f32.mxu1 %vm816_vm3, %v6253_v27 }
 0x1a2   : > { %v6257_v29 = vpop.f32.mrb[2].mxu0 }
 0x1a3   : > { %v789_v30 = vpop.f32.mrb[3].mxu0  ;;  %v6261_v31 = vpack.i.bf16 %v6257_v29, %v6253_v27 }
 0x1a4   : > { %v6263_v32 = vpack.i.bf16 %v789_v30, %v783_v28  ;;  %v6265_v33 = vpack.c.bf16 %v789_v30, %v783_v28 }
 0x1a5   : > { %5606 = vrot.lane.b32.xlu0 %v6261_v31, %s6020_s25 }
 0x1a6   : > { %v6269_v34 = vpop.f32.mrb[4].mxu0 }
 0x1a7   : > { %v795_v35 = vpop.f32.mrb[5].mxu0 }
 0x1a9   : > { %1072 = vrot.lane.b32.xlu0 %v6269_v34, %s6021_s28 }
 0x1aa   : > { %v6273_v36 = vpop.f32.mrb[6].mxu0 }
 0x1ab   : > { %v801_v37 = vpop.f32.mrb[7].mxu0  ;;  %v6277_v38 = vpack.i.bf16 %v6273_v36, %v6269_v34 }
 0x1ac   : > { %v6279_v39 = vpack.i.bf16 %v801_v37, %v795_v35  ;;  %v6281_v40 = vpack.c.bf16 %v801_v37, %v795_v35 }
 0x1ad   : > { %5611 = vrot.lane.b32.xlu1 %v6277_v38, %s6020_s25 }
 0x1b1   : > { %1068 = vrot.lane.b32.xlu1 %v6253_v27, %s6021_s28 }
 0x1b5   : > { %1070 = vrot.lane.b32.xlu1 %v6257_v29, %s6021_s28 }
 0x1b9   : > { %1074 = vrot.lane.b32.xlu1 %v6273_v36, %s6021_s28 }
 0x217   : > { %v5607_v41 = vpop.permute.xlu0 %5606 }
 0x218   : > { %v5609_v42 = vunpack.i.h.bf16 %v5607_v41  ;;  %v5608_v43 = vunpack.i.l.bf16 %v5607_v41 }
 0x21a   : > { %v5281_v45 = vpack.c.bf16 %v5609_v42, %v5608_v43 }
 0x21b   : > { %v1073_v52 = vpop.permute.xlu0 %1072 }
 0x21c   : > { %5283 = vmatprep.subr.msk.bf16.mxu0 %vm6293_vm4, %v5281_v45 }
 0x21d   : > { %5286 = vmatpush3.bf16.xpose.msk.msra.mxu0 %vm6293_vm4, %v5281_v45 }
 0x21f   : > { %v5612_v46 = vpop.permute.xlu1 %5611 }
 0x220   : > { %v5614_v47 = vunpack.i.h.bf16 %v5612_v46  ;;  %v5613_v48 = vunpack.i.l.bf16 %v5612_v46 }
 0x222   : > { %v5287_v49 = vpack.c.bf16 %v5614_v47, %v5613_v48 }
 0x223   : > { %v1069_v50 = vpop.permute.xlu1 %1068 }
 0x224   : > { %5289 = vmatprep.subr.msk.bf16.mxu0 %vm6293_vm4, %v5287_v49  ;;  %4926 = vmatprep.mubr.msk.f32.mxu0 %vm816_vm3, %v1069_v50 }
 0x225   : > { %5292 = vmatpush3.bf16.xpose.msk.msra.mxu0 %vm6293_vm4, %v5287_v49 }
 0x227   : > { %v1071_v51 = vpop.permute.xlu1 %1070 }
 0x22b   : > { %v1075_v53 = vpop.permute.xlu1 %1074 }
 0x22c   : > { %4927 = vmatmul.mubr.msk.f32.vlgmr.msra.gmra.mrb[8].mxu0 %vm816_vm3, %v1071_v51 }
 0x22d   : > { %4929 = vmatprep.mubr.msk.f32.mxu0 %vm816_vm3, %v1073_v52 }
 0x230   : > { %4930 = vmatmul.mubr.msk.f32.gmra.mrb[10].mxu0 %vm816_vm3, %v1075_v53 }
 0x2ff   : > { %v4928_v54 = vpop.f32.mrb[8].mxu0 }
 0x300   : > { %v1186_v56 = vmul.f32 0.25, %v4928_v54  ;;  %v1166_v57 = vpop.f32.mrb[9].mxu0 }
 0x301   : > { %v1185_v60 = vmul.f32 0.25, %v1166_v57 }
 0x302   : > { %v1190_v61 = vadd.f32 %v1186_v56, %v6310_v55 }
 0x303   : > { %v4931_v62 = vpop.f32.mrb[10].mxu0  ;;  %v1189_v63 = vadd.f32 %v1185_v60, %v6313_v58 }
 0x304   : > { %v1176_v0 = vpop.f32.mrb[11].mxu0  ;;  %v1196_v1 = vsel %vm926_vm5, %v1190_v61, -inf  ;;  %v1188_v3 = vmul.f32 0.25, %v4931_v62 }
 0x305   : > { %v1187_v4 = vmul.f32 0.25, %v1176_v0  ;;  %1197 = vmax.xlane.f32.xlu1 %v1196_v1  ;;  %v1193_v6 = vsel %vm926_vm5, %v1189_v63, -inf }
 0x306   : > { %1194 = vmax.xlane.f32.xlu0 %v1193_v6  ;;  %v1192_v11 = vadd.f32 %v1188_v3, %v6323_v7 }
 0x307   : > { %v1191_v8 = vadd.f32 %v1187_v4, %v6319_v2 }
 0x308   : > { %v1202_v12 = vsel %vm926_vm5, %v1192_v11, -inf }
 0x309   : > { %v1199_v9 = vsel %vm926_vm5, %v1191_v8, -inf }
 0x30a   : > { %1200 = vmax.xlane.f32.xlu0 %v1199_v9 }
 0x30e   : > { %1203 = vmax.xlane.f32.xlu0 %v1202_v12 }
 0x316   : > { %5616 = vrot.lane.b32.xlu1 %v6261_v31, %s6022_s29 }
 0x392   : > { %v1198_v13 = vpop.xlane.xlu1 %1197 }
 0x393   : > { %v1206_v14 = vsub.f32 %v1190_v61, %v1198_v13  ;;  %v1195_v15 = vpop.xlane.xlu0 %1194 }
 0x394   : > { %v1205_v16 = vsub.f32 %v1189_v63, %v1195_v15 }
 0x395   : > { %v1211_v17 = vmul.f32 1.442695, %v1206_v14 }
 0x396   : > { %v1209_v18 = vmul.f32 1.442695, %v1205_v16  ;;  %v5617_v19 = vpop.permute.xlu1 %5616 }
 0x397   : > { %5753 = vpow2.f32 %v1211_v17  ;;  %v5619_v20 = vunpack.i.h.bf16 %v5617_v19  ;;  %v5618_v21 = vunpack.i.l.bf16 %v5617_v19  ;;  %v1201_v28 = vpop.xlane.xlu0 %1200 }
 0x398   : > { %5755 = vpow2.f32 %v1209_v18  ;;  %v1207_v37 = vsub.f32 %v1191_v8, %v1201_v28 }
 0x399   : > { %v5261_v22 = vpack.c.bf16 %v5619_v20, %v5618_v21 }
 0x39a   : > { %v1213_v42 = vmul.f32 1.442695, %v1207_v37 }
 0x39b   : > { %5263 = vmatprep.subr.msk.bf16.mxu1 %vm6293_vm4, %v5261_v22  ;;  %v1204_v30 = vpop.xlane.xlu0 %1203 }
 0x39c   : > { %5266 = vmatpush3.bf16.xpose.msk.msra.mxu1 %vm6293_vm4, %v5261_v22  ;;  %v1208_v35 = vsub.f32 %v1192_v11, %v1204_v30 }
 0x39e   : > { %v1215_v41 = vmul.f32 1.442695, %v1208_v35 }
 0x3a0   : > { %5757 = vpow2.f32 %v1215_v41 }
 0x3a1   : > { %v5754_v23 = vpop.eup %5753  ;;  %5759 = vpow2.f32 %v1213_v42 }
 0x3a2   : > { %v5756_v24 = vpop.eup %5755  ;;  %v1220_v25 = vsel %vm926_vm5, %v5754_v23, 0.0 }
 0x3a3   : > { %1221 = vadd.xlane.f32.xlu1 %v1220_v25  ;;  %v1217_v26 = vsel %vm926_vm5, %v5756_v24, 0.0 }
 0x3a4   : > { %1218 = vadd.xlane.f32.xlu0 %v1217_v26 }
 0x3aa   : > { %v6351_v43 = vpop.eup %5757 }
 0x3ab   : > { %v1226_v45 = vsel %vm926_vm5, %v6351_v43, 0.0  ;;  %v5760_v46 = vpop.eup %5759 }
 0x3ac   : > { %v1223_v47 = vsel %vm926_vm5, %v5760_v46, 0.0 }
 0x3b4   : > { %5626 = vrot.lane.b32.xlu1 %v6279_v39, %s6021_s28 }
 0x3b8   : > { %5631 = vrot.lane.b32.xlu1 %v6277_v38, %s6022_s29 }
 0x3ba   : > { %5621 = vrot.lane.b32.xlu0 %v6263_v32, %s6021_s28 }
 0x3bc   : > { %5636 = vrot.lane.b32.xlu1 %v6261_v31, %s7382_s30 }
 0x3c0   : > { %5641 = vrot.lane.b32.xlu1 %v6277_v38, %s7382_s30 }
 0x3c4   : > { %1352 = vrot.lane.b32.xlu1 %v6257_v29, %s7380_s0 }
 0x3c8   : > { %1356 = vrot.lane.b32.xlu1 %v6273_v36, %s7380_s0 }
 0x3d9   : > { %1227 = vadd.xlane.f32.xlu0 %v1226_v45 }
 0x3dd   : > { %1224 = vadd.xlane.f32.xlu0 %v1223_v47 }
 0x3f3   : > { %1350 = vrot.lane.b32.xlu0 %v6253_v27, %s7380_s0 }
 0x3f7   : > { %1354 = vrot.lane.b32.xlu0 %v6269_v34, %s7380_s0 }
 0x430   : > { %v1222_v48 = vpop.xlane.xlu1 %1221 }
 0x431   : > { %v1219_v49 = vpop.xlane.xlu0 %1218 }
 0x432   : > { %5761 = vrcp.f32 %v1219_v49 }
 0x433   : > { %5763 = vrcp.f32 %v1222_v48 }
 0x434   : > { %v5627_v50 = vpop.permute.xlu1 %5626 }
 0x435   : > { %v5622_v51 = vpop.permute.xlu0 %5621  ;;  %v5629_v52 = vunpack.i.h.bf16 %v5627_v50  ;;  %v5628_v53 = vunpack.i.l.bf16 %v5627_v50 }
 0x436   : > { %v5624_v54 = vunpack.i.h.bf16 %v5622_v51  ;;  %v5623_v56 = vunpack.i.l.bf16 %v5622_v51 }
 0x437   : > { %v5297_v63 = vpack.c.bf16 %v5629_v52, %v5628_v53 }
 0x438   : > { %v5632_v57 = vpop.permute.xlu1 %5631  ;;  %v5293_v60 = vpack.c.bf16 %v5624_v54, %v5623_v56 }
 0x439   : > { %v5634_v61 = vunpack.i.h.bf16 %v5632_v57  ;;  %v5633_v62 = vunpack.i.l.bf16 %v5632_v57 }
 0x43a   : > { %5294 = vmatprep.subr.bf16.mxu0 %v5293_v60 }
 0x43b   : > { %v5267_v0 = vpack.c.bf16 %v5634_v61, %v5633_v62  ;;  %5296 = vmatpush3.bf16.msra.mxu0 %v5293_v60 }
 0x43c   : > { %v5762_v1 = vpop.eup %5761  ;;  %v5637_v3 = vpop.permute.xlu1 %5636  ;;  %5298 = vmatprep.subr.bf16.mxu0 %v5297_v63 }
 0x43d   : > { %v5764_v4 = vpop.eup %5763  ;;  %v5639_v6 = vunpack.i.h.bf16 %v5637_v3  ;;  %v5638_v8 = vunpack.i.l.bf16 %v5637_v3  ;;  %5269 = vmatprep.subr.msk.bf16.mxu1 %vm6293_vm4, %v5267_v0  ;;  %v1233_v9 = vmul.f32 %v5762_v1, %v5756_v24 }
 0x43e   : > { %5272 = vmatpush3.bf16.xpose.msk.msra.mxu1 %vm6293_vm4, %v5267_v0  ;;  %v1234_v12 = vmul.f32 %v5764_v4, %v5754_v23 }
 0x43f   : > { %v5301_v11 = vpack.c.bf16 %v5639_v6, %v5638_v8  ;;  %5274 = vmatprep.subr.bf16.mxu1 %v6265_v33  ;;  %5300 = vmatpush3.bf16.msra.mxu0 %v5297_v63 }
 0x440   : > { %4940 = vmatprep.mubr.msk.f32.mxu0 %vm926_vm5, %v1233_v9  ;;  %v5642_v13 = vpop.permute.xlu1 %5641 }
 0x441   : > { %5303 = vmatprep.subr.msk.bf16.mxu0 %vm6293_vm4, %v5301_v11  ;;  %v5644_v14 = vunpack.i.h.bf16 %v5642_v13  ;;  %v5643_v15 = vunpack.i.l.bf16 %v5642_v13 }
 0x442   : > { %4941 = vmatmul.mubr.msk.f32.vlgmr.msra.gmra.mrb[12].mxu0 %vm926_vm5, %v1234_v12 }
 0x443   : > { %v5307_v16 = vpack.c.bf16 %v5644_v14, %v5643_v15 }
 0x444   : > { %v1353_v23 = vpop.permute.xlu1 %1352 }
 0x445   : > { %4899 = vmatmul.mubr.msk.f32.vlgmr.msra.gmra.mrb[0].mxu1 %vm816_vm3, %v6257_v29 }
 0x446   : > { %4901 = vmatprep.mubr.msk.f32.mxu1 %vm816_vm3, %v6269_v34  ;;  %5276 = vmatpush3.bf16.msra.mxu1 %v6265_v33 }
 0x447   : > { %5278 = vmatprep.subr.bf16.mxu1 %v6281_v40 }
 0x448   : > { %5306 = vmatpush3.bf16.xpose.msk.msra.mxu0 %vm6293_vm4, %v5301_v11  ;;  %v1357_v24 = vpop.permute.xlu1 %1356 }
 0x449   : > { %4902 = vmatmul.mubr.msk.f32.gmra.mrb[2].mxu1 %vm816_vm3, %v6273_v36  ;;  %5309 = vmatprep.subr.msk.bf16.mxu0 %vm6293_vm4, %v5307_v16 }
 0x44a   : > { %5280 = vmatpush3.bf16.msra.mxu1 %v6281_v40 }
 0x450   : > { %5312 = vmatpush3.bf16.xpose.msk.msra.mxu0 %vm6293_vm4, %v5307_v16 }
 0x466   : > { %v1228_v17 = vpop.xlane.xlu0 %1227 }
 0x467   : > { %5765 = vrcp.f32 %v1228_v17 }
 0x46a   : > { %v1225_v33 = vpop.xlane.xlu0 %1224 }
 0x46b   : > { %5767 = vrcp.f32 %v1225_v33 }
 0x46e   : > { %v1351_v21 = vpop.permute.xlu0 %1350 }
 0x471   : > { %v5766_v18 = vpop.eup %5765 }
 0x472   : > { %v1236_v22 = vmul.f32 %v5766_v18, %v6351_v43  ;;  %v1355_v40 = vpop.permute.xlu0 %1354 }
 0x475   : > { %v5768_v19 = vpop.eup %5767 }
 0x476   : > { %v1235_v20 = vmul.f32 %v5768_v19, %v5760_v46 }
 0x478   : > { %4943 = vmatprep.mubr.msk.f32.mxu0 %vm926_vm5, %v1235_v20 }
 0x479   : > { %4944 = vmatmul.mubr.msk.f32.gmra.mrb[14].mxu0 %vm926_vm5, %v1236_v22 }
 0x47a   : > { %4954 = vmatprep.mubr.msk.f32.mxu0 %vm816_vm3, %v1351_v21 }
 0x47d   : > { %4955 = vmatmul.mubr.msk.f32.vlgmr.msra.gmra.mrb[16].mxu0 %vm816_vm3, %v1353_v23 }
 0x47e   : > { %4957 = vmatprep.mubr.msk.f32.mxu0 %vm816_vm3, %v1355_v40 }
 0x481   : > { %4958 = vmatmul.mubr.msk.f32.gmra.mrb[18].mxu0 %vm816_vm3, %v1357_v24 }
 0x515   : > { %v6391_v25 = vpop.f32.mrb[12].mxu0 }
 0x516   : > { %v6393_v26 = vpop.f32.mrb[13].mxu0 }
 0x518   : > { %v4900_v28 = vpop.f32.mrb[0].mxu1 }
 0x519   : > { %v919_v30 = vmul.f32 0.25, %v4900_v28  ;;  %v899_v35 = vpop.f32.mrb[1].mxu1 }
 0x51a   : > { %v918_v37 = vmul.f32 0.25, %v899_v35 }
 0x51b   : > { %v923_v41 = vadd.f32 %v919_v30, %v6310_v55 }
 0x51c   : > { %v4903_v42 = vpop.f32.mrb[2].mxu1  ;;  %v922_v43 = vadd.f32 %v918_v37, %v6313_v58 }
 0x51d   : > { %v909_v45 = vpop.f32.mrb[3].mxu1  ;;  %v930_v46 = vsel %vm926_vm5, %v923_v41, -inf  ;;  %v921_v47 = vmul.f32 0.25, %v4903_v42 }
 0x51e   : > { %v920_v48 = vmul.f32 0.25, %v909_v45  ;;  %931 = vmax.xlane.f32.xlu1 %v930_v46  ;;  %v927_v49 = vsel %vm926_vm5, %v922_v43, -inf }
 0x51f   : > { %928 = vmax.xlane.f32.xlu0 %v927_v49  ;;  %v925_v52 = vadd.f32 %v921_v47, %v6323_v7 }
 0x520   : > { %v924_v50 = vadd.f32 %v920_v48, %v6319_v2 }
 0x521   : > { %v936_v53 = vsel %vm926_vm5, %v925_v52, -inf }
 0x522   : > { %v933_v51 = vsel %vm926_vm5, %v924_v50, -inf }
 0x523   : > { %934 = vmax.xlane.f32.xlu0 %v933_v51 }
 0x527   : > { %937 = vmax.xlane.f32.xlu0 %v936_v53 }
 0x54c   : > { %v6403_v54 = vpop.f32.mrb[14].mxu0 }
 0x54d   : > { %v6405_v56 = vpop.f32.mrb[15].mxu0 }
 0x550   : > { %v4956_v57 = vpop.f32.mrb[16].mxu0 }
 0x551   : > { %v1468_v60 = vmul.f32 0.25, %v4956_v57  ;;  %v1448_v61 = vpop.f32.mrb[17].mxu0 }
 0x552   : > { %v1467_v62 = vmul.f32 0.25, %v1448_v61 }
 0x553   : > { %v1472_v63 = vadd.f32 %v1468_v60, %v6310_v55 }
 0x554   : > { %v4959_v0 = vpop.f32.mrb[18].mxu0  ;;  %v1471_v1 = vadd.f32 %v1467_v62, %v6313_v58 }
 0x555   : > { %v1470_v3 = vmul.f32 0.25, %v4959_v0  ;;  %v1458_v4 = vpop.f32.mrb[19].mxu0  ;;  %v1478_v6 = vsel %vm926_vm5, %v1472_v63, -inf }
 0x556   : > { %v1469_v8 = vmul.f32 0.25, %v1458_v4  ;;  %1479 = vmax.xlane.f32.xlu1 %v1478_v6  ;;  %v1475_v9 = vsel %vm926_vm5, %v1471_v1, -inf }
 0x557   : > { %1476 = vmax.xlane.f32.xlu0 %v1475_v9  ;;  %v1474_v11 = vadd.f32 %v1470_v3, %v6323_v7 }
 0x558   : > { %v1473_v12 = vadd.f32 %v1469_v8, %v6319_v2 }
 0x559   : > { %v1484_v13 = vsel %vm926_vm5, %v1474_v11, -inf }
 0x55a   : > { %1485 = vmax.xlane.f32.xlu1 %v1484_v13  ;;  %v1481_v14 = vsel %vm926_vm5, %v1473_v12, -inf }
 0x55b   : > { %1482 = vmax.xlane.f32.xlu0 %v1481_v14 }
 0x5ab   : > { %v932_v15 = vpop.xlane.xlu1 %931 }
 0x5ac   : > { %v940_v16 = vsub.f32 %v923_v41, %v932_v15  ;;  %v929_v17 = vpop.xlane.xlu0 %928 }
 0x5ad   : > { %v939_v33 = vsub.f32 %v922_v43, %v929_v17 }
 0x5ae   : > { %v945_v18 = vmul.f32 1.442695, %v940_v16 }
 0x5af   : > { %v943_v19 = vmul.f32 1.442695, %v939_v33 }
 0x5b0   : > { %5769 = vpow2.f32 %v945_v18  ;;  %v935_v20 = vpop.xlane.xlu0 %934 }
 0x5b1   : > { %5771 = vpow2.f32 %v943_v19  ;;  %v941_v21 = vsub.f32 %v924_v50, %v935_v20 }
 0x5b3   : > { %v947_v22 = vmul.f32 1.442695, %v941_v21 }
 0x5b4   : > { %v938_v23 = vpop.xlane.xlu0 %937 }
 0x5b5   : > { %5773 = vpow2.f32 %v947_v22  ;;  %v942_v40 = vsub.f32 %v925_v52, %v938_v23 }
 0x5b7   : > { %v949_v24 = vmul.f32 1.442695, %v942_v40 }
 0x5b9   : > { %5775 = vpow2.f32 %v949_v24 }
 0x5ba   : > { %v5770_v28 = vpop.eup %5769 }
 0x5bb   : > { %v5772_v30 = vpop.eup %5771  ;;  %v954_v35 = vsel %vm926_vm5, %v5770_v28, 0.0 }
 0x5bc   : > { %955 = vadd.xlane.f32.xlu1 %v954_v35  ;;  %v951_v37 = vsel %vm926_vm5, %v5772_v30, 0.0 }
 0x5bd   : > { %952 = vadd.xlane.f32.xlu0 %v951_v37 }
 0x5bf   : > { %v5774_v41 = vpop.eup %5773 }
 0x5c0   : > { %v957_v42 = vsel %vm926_vm5, %v5774_v41, 0.0 }
 0x5c1   : > { %958 = vadd.xlane.f32.xlu0 %v957_v42 }
 0x5c3   : > { %v5776_v43 = vpop.eup %5775 }
 0x5c4   : > { %v960_v45 = vsel %vm926_vm5, %v5776_v43, 0.0 }
 0x5c5   : > { %961 = vadd.xlane.f32.xlu1 %v960_v45 }
 0x5e3   : > { %v1480_v46 = vpop.xlane.xlu1 %1479 }
 0x5e4   : > { %v1488_v47 = vsub.f32 %v1472_v63, %v1480_v46  ;;  %v1477_v48 = vpop.xlane.xlu0 %1476 }
 0x5e5   : > { %v1487_v49 = vsub.f32 %v1471_v1, %v1477_v48 }
 0x5e6   : > { %v1493_v50 = vmul.f32 1.442695, %v1488_v47 }
 0x5e7   : > { %v1491_v51 = vmul.f32 1.442695, %v1487_v49  ;;  %v1486_v63 = vpop.xlane.xlu1 %1485 }
 0x5e8   : > { %5777 = vpow2.f32 %v1493_v50  ;;  %v1483_v61 = vpop.xlane.xlu0 %1482  ;;  %v1490_v1 = vsub.f32 %v1474_v11, %v1486_v63 }
 0x5e9   : > { %5779 = vpow2.f32 %v1491_v51  ;;  %v1489_v62 = vsub.f32 %v1473_v12, %v1483_v61 }
 0x5ea   : > { %v1497_v3 = vmul.f32 1.442695, %v1490_v1 }
 0x5eb   : > { %v1495_v0 = vmul.f32 1.442695, %v1489_v62 }
 0x5ed   : > { %5781 = vpow2.f32 %v1495_v0 }
 0x5ee   : > { %5783 = vpow2.f32 %v1497_v3 }
 0x5f2   : > { %v6419_v52 = vpop.eup %5777 }
 0x5f3   : > { %v6421_v53 = vpop.eup %5779  ;;  %v1502_v57 = vsel %vm926_vm5, %v6419_v52, 0.0 }
 0x5f4   : > { %1503 = vadd.xlane.f32.xlu1 %v1502_v57  ;;  %v1499_v60 = vsel %vm926_vm5, %v6421_v53, 0.0 }
 0x5f5   : > { %1500 = vadd.xlane.f32.xlu0 %v1499_v60 }
 0x5f7   : > { %v6435_v4 = vpop.eup %5781 }
 0x5f8   : > { %v1505_v6 = vsel %vm926_vm5, %v6435_v4, 0.0 }
 0x605   : > { %5651 = vrot.lane.b32.xlu1 %v6279_v39, %s7380_s0 }
 0x609   : > { %5656 = vrot.lane.b32.xlu1 %v6261_v31, %s7378_s17  ;;  %v6439_v31 = vpop.eup %5783 }
 0x60a   : > { %v1508_v8 = vsel %vm926_vm5, %v6439_v31, 0.0 }
 0x60b   : > { %5646 = vrot.lane.b32.xlu0 %v6263_v32, %s7380_s0 }
 0x60d   : > { %5661 = vrot.lane.b32.xlu1 %v6277_v38, %s7378_s17 }
 0x62a   : > { %1506 = vadd.xlane.f32.xlu0 %v1505_v6 }
 0x631   : > { %1509 = vadd.xlane.f32.xlu1 %v1508_v8 }
 0x640   : > { %1628 = vrot.lane.b32.xlu0 %v6253_v27, %s7376_s19 }
 0x642   : > { %1630 = vrot.lane.b32.xlu1 %v6257_v29, %s7376_s19 }
 0x644   : > { %1632 = vrot.lane.b32.xlu0 %v6269_v34, %s7376_s19 }
 0x646   : > { %1634 = vrot.lane.b32.xlu1 %v6273_v36, %s7376_s19 }
 0x649   : > { %v956_v38 = vpop.xlane.xlu1 %955 }
 0x64a   : > { %5785 = vrcp.f32 %v956_v38  ;;  %v953_v9 = vpop.xlane.xlu0 %952 }
 0x64b   : > { %5787 = vrcp.f32 %v953_v9 }
 0x64e   : > { %v959_v11 = vpop.xlane.xlu0 %958 }
 0x64f   : > { %5789 = vrcp.f32 %v959_v11 }
 0x652   : > { %v962_v12 = vpop.xlane.xlu1 %961 }
 0x653   : > { %5791 = vrcp.f32 %v962_v12 }
 0x654   : > { %v5786_v13 = vpop.eup %5785 }
 0x655   : > { %v5788_v14 = vpop.eup %5787  ;;  %v968_v15 = vmul.f32 %v5786_v13, %v5770_v28 }
 0x656   : > { %v967_v27 = vmul.f32 %v5788_v14, %v5772_v30 }
 0x658   : > { %4912 = vmatprep.mubr.msk.f32.mxu1 %vm926_vm5, %v967_v27 }
 0x659   : > { %v5790_v29 = vpop.eup %5789  ;;  %4913 = vmatmul.mubr.msk.f32.vlgmr.msra.gmra.mrb[4].mxu1 %vm926_vm5, %v968_v15 }
 0x65a   : > { %v969_v34 = vmul.f32 %v5790_v29, %v5774_v41 }
 0x65c   : > { %4915 = vmatprep.mubr.msk.f32.mxu1 %vm926_vm5, %v969_v34 }
 0x65d   : > { %v5792_v36 = vpop.eup %5791 }
 0x65e   : > { %v970_v16 = vmul.f32 %v5792_v36, %v5776_v43 }
 0x660   : > { %4916 = vmatmul.mubr.msk.f32.gmra.mrb[6].mxu1 %vm926_vm5, %v970_v16 }
 0x681   : > { %v1504_v17 = vpop.xlane.xlu1 %1503 }
 0x682   : > { %v1501_v33 = vpop.xlane.xlu0 %1500 }
 0x683   : > { %5793 = vrcp.f32 %v1501_v33 }
 0x684   : > { %5795 = vrcp.f32 %v1504_v17 }
 0x685   : > { %v5652_v18 = vpop.permute.xlu1 %5651 }
 0x686   : > { %v5647_v19 = vpop.permute.xlu0 %5646  ;;  %v5654_v20 = vunpack.i.h.bf16 %v5652_v18  ;;  %v5653_v21 = vunpack.i.l.bf16 %v5652_v18 }
 0x687   : > { %v5649_v22 = vunpack.i.h.bf16 %v5647_v19  ;;  %v5648_v23 = vunpack.i.l.bf16 %v5647_v19 }
 0x688   : > { %v5317_v35 = vpack.c.bf16 %v5654_v20, %v5653_v21 }
 0x689   : > { %v5657_v40 = vpop.permute.xlu1 %5656  ;;  %v5313_v24 = vpack.c.bf16 %v5649_v22, %v5648_v23 }
 0x68a   : > { %v5659_v28 = vunpack.i.h.bf16 %v5657_v40  ;;  %v5658_v30 = vunpack.i.l.bf16 %v5657_v40 }
 0x68b   : > { %5314 = vmatprep.subr.bf16.mxu1 %v5313_v24 }
 0x68c   : > { %5316 = vmatpush3.bf16.msra.mxu1 %v5313_v24  ;;  %v5321_v43 = vpack.c.bf16 %v5659_v28, %v5658_v30 }
 0x68d   : > { %v5794_v37 = vpop.eup %5793  ;;  %5318 = vmatprep.subr.bf16.mxu1 %v5317_v35  ;;  %v5662_v46 = vpop.permute.xlu1 %5661 }
 0x68e   : > { %v5796_v41 = vpop.eup %5795  ;;  %v1515_v42 = vmul.f32 %v5794_v37, %v6421_v53  ;;  %v5664_v47 = vunpack.i.h.bf16 %v5662_v46  ;;  %v5663_v48 = vunpack.i.l.bf16 %v5662_v46 }
 0x68f   : > { %v1516_v45 = vmul.f32 %v5796_v41, %v6419_v52 }
 0x690   : > { %5320 = vmatpush3.bf16.msra.mxu1 %v5317_v35  ;;  %4968 = vmatprep.mubr.msk.f32.mxu1 %vm926_vm5, %v1515_v42  ;;  %v5327_v49 = vpack.c.bf16 %v5664_v47, %v5663_v48 }
 0x691   : > { %5323 = vmatprep.subr.msk.bf16.mxu1 %vm6293_vm4, %v5321_v43 }
 0x693   : > { %4969 = vmatmul.mubr.msk.f32.vlgmr.msra.gmra.mrb[8].mxu1 %vm926_vm5, %v1516_v45 }
 0x699   : > { %5326 = vmatpush3.bf16.xpose.msk.msra.mxu1 %vm6293_vm4, %v5321_v43 }
 0x69a   : > { %5329 = vmatprep.subr.msk.bf16.mxu1 %vm6293_vm4, %v5327_v49 }
 0x6a1   : > { %5332 = vmatpush3.bf16.xpose.msk.msra.mxu1 %vm6293_vm4, %v5327_v49 }
 0x6b7   : > { %v1507_v50 = vpop.xlane.xlu0 %1506 }
 0x6b8   : > { %5797 = vrcp.f32 %v1507_v50 }
 0x6bb   : > { %v1629_v60 = vpop.permute.xlu0 %1628 }
 0x6be   : > { %v1510_v51 = vpop.xlane.xlu1 %1509 }
 0x6bf   : > { %5799 = vrcp.f32 %v1510_v51  ;;  %v1633_v63 = vpop.permute.xlu0 %1632 }
 0x6c2   : > { %v5798_v52 = vpop.eup %5797  ;;  %v1631_v62 = vpop.permute.xlu1 %1630 }
 0x6c3   : > { %v1517_v53 = vmul.f32 %v5798_v52, %v6435_v4 }
 0x6c5   : > { %4971 = vmatprep.mubr.msk.f32.mxu1 %vm926_vm5, %v1517_v53 }
 0x6c6   : > { %v1635_v0 = vpop.permute.xlu1 %1634 }
 0x6c9   : > { %v5800_v57 = vpop.eup %5799 }
 0x6ca   : > { %v1518_v61 = vmul.f32 %v5800_v57, %v6439_v31 }
 0x6cc   : > { %4972 = vmatmul.mubr.msk.f32.gmra.mrb[10].mxu1 %vm926_vm5, %v1518_v61 }
 0x6cd   : > { %4982 = vmatprep.mubr.msk.f32.mxu1 %vm816_vm3, %v1629_v60 }
 0x6d0   : > { %4983 = vmatmul.mubr.msk.f32.vlgmr.msra.gmra.mrb[12].mxu1 %vm816_vm3, %v1631_v62 }
 0x6d1   : > { %4985 = vmatprep.mubr.msk.f32.mxu1 %vm816_vm3, %v1633_v63 }
 0x6d4   : > { %4986 = vmatmul.mubr.msk.f32.gmra.mrb[14].mxu1 %vm816_vm3, %v1635_v0 }
 0x6d5   : > { %2225 = vmatprep.mubr.f32.mxu1 %v6019_v59 }
 0x72c   : > { %v6476_v1 = vpop.f32.mrb[4].mxu1 }
 0x72d   : > { %v6478_v3 = vpop.f32.mrb[5].mxu1 }
 0x733   : > { %v6480_v4 = vpop.f32.mrb[6].mxu1 }
 0x734   : > { %v6482_v6 = vpop.f32.mrb[7].mxu1 }
 0x766   : > { %v4970_v31 = vpop.f32.mrb[8].mxu1 }
 0x767   : > { %v1609_v8 = vpop.f32.mrb[9].mxu1 }
 0x79f   : > { %v4973_v38 = vpop.f32.mrb[10].mxu1 }
 0x7a0   : > { %v1619_v9 = vpop.f32.mrb[11].mxu1 }
 0x7a3   : > { %v4984_v11 = vpop.f32.mrb[12].mxu1 }
 0x7a4   : > { %v1746_v12 = vmul.f32 0.25, %v4984_v11  ;;  %v1726_v13 = vpop.f32.mrb[13].mxu1  ;;  %v1966_v11 = vld [vmem:[%s7364_s7] sm:$0xff] }
 0x7a5   : > { %v1745_v14 = vmul.f32 0.25, %v1726_v13  ;;  %v1968_v13 = vld [vmem:[%s7364_s7 + $0x10] sm:$0xff] }
 0x7a6   : > { %v1750_v27 = vadd.f32 %v1746_v12, %v6310_v55  ;;  %v1967_v12 = vld [vmem:[%s7364_s7 + $0x8] sm:$0xff] }
 0x7a7   : > { %v4987_v15 = vpop.f32.mrb[14].mxu1  ;;  %v1749_v29 = vadd.f32 %v1745_v14, %v6313_v58  ;;  %v5341_v14 = vpack.c.bf16 %v1967_v12, %v1966_v11  ;;  %v6602_v12 = vld [vmem:[%s7360_s3] sm:$0xff] }
 0x7a8   : > { %v1736_v34 = vpop.f32.mrb[15].mxu1  ;;  %v1756_v36 = vsel %vm926_vm5, %v1750_v27, -inf  ;;  %v1748_v16 = vmul.f32 0.25, %v4987_v15 }
 0x7a9   : > { %v1747_v17 = vmul.f32 0.25, %v1736_v34  ;;  %1757 = vmax.xlane.f32.xlu1 %v1756_v36  ;;  %v1753_v33 = vsel %vm926_vm5, %v1749_v29, -inf  ;;  %v1971_v34 = vld [vmem:[%s7364_s7 + $0x28] sm:$0xff] }
 0x7aa   : > { %1754 = vmax.xlane.f32.xlu0 %v1753_v33  ;;  %v1752_v20 = vadd.f32 %v1748_v16, %v6323_v7  ;;  %v1972_v16 = vld [vmem:[%s7364_s7 + $0x30] sm:$0xff] }
 0x7ab   : > { %v1751_v18 = vadd.f32 %v1747_v17, %v6319_v2  ;;  %v1973_v17 = vld [vmem:[%s7364_s7 + $0x38] sm:$0xff] }
 0x7ac   : > { %v1762_v55 = vsel %vm926_vm5, %v1752_v20, -inf  ;;  %v5353_v33 = vpack.c.bf16 %v1973_v17, %v1972_v16  ;;  %v6628_v17 = vld [vmem:[%s7361_s4 + $0x10] sm:$0xff] }
 0x7ad   : > { %v1759_v19 = vsel %vm926_vm5, %v1751_v18, -inf }
 0x7ae   : > { %1760 = vmax.xlane.f32.xlu0 %v1759_v19 }
 0x7b2   : > { %1763 = vmax.xlane.f32.xlu0 %v1762_v55 }
 0x836   : > { %v1758_v58 = vpop.xlane.xlu1 %1757 }
 0x837   : > { %v1766_v21 = vsub.f32 %v1750_v27, %v1758_v58  ;;  %v1755_v22 = vpop.xlane.xlu0 %1754  ;;  %v1969_v27 = vld [vmem:[%s7364_s7 + $0x18] sm:$0xff] }
 0x838   : > { %v1765_v23 = vsub.f32 %v1749_v29, %v1755_v22  ;;  %v5345_v15 = vpack.c.bf16 %v1969_v27, %v1968_v13  ;;  %v1970_v29 = vld [vmem:[%s7364_s7 + $0x20] sm:$0xff] }
 0x839   : > { %v1771_v40 = vmul.f32 1.442695, %v1766_v21  ;;  %v5349_v36 = vpack.c.bf16 %v1971_v34, %v1970_v29  ;;  %v6619_v34 = vld [vmem:[%s7360_s3 + $0x10] sm:$0xff] }
 0x83a   : > { %v1769_v24 = vmul.f32 1.442695, %v1765_v23 }
 0x83b   : > { %5801 = vpow2.f32 %v1771_v40  ;;  %v1761_v28 = vpop.xlane.xlu0 %1760 }
 0x83c   : > { %5803 = vpow2.f32 %v1769_v24  ;;  %v1767_v30 = vsub.f32 %v1751_v18, %v1761_v28 }
 0x83e   : > { %v1773_v35 = vmul.f32 1.442695, %v1767_v30 }
 0x83f   : > { %v1764_v2 = vpop.xlane.xlu0 %1763 }
 0x840   : > { %5805 = vpow2.f32 %v1773_v35  ;;  %v1768_v37 = vsub.f32 %v1752_v20, %v1764_v2 }
 0x842   : > { %v1775_v41 = vmul.f32 1.442695, %v1768_v37 }
 0x844   : > { %5807 = vpow2.f32 %v1775_v41 }
 0x845   : > { %v5802_v7 = vpop.eup %5801 }
 0x846   : > { %v5804_v42 = vpop.eup %5803  ;;  %v1780_v43 = vsel %vm926_vm5, %v5802_v7, 0.0 }
 0x847   : > { %1781 = vadd.xlane.f32.xlu1 %v1780_v43  ;;  %v1777_v45 = vsel %vm926_vm5, %v5804_v42, 0.0 }
 0x848   : > { %1778 = vadd.xlane.f32.xlu0 %v1777_v45 }
 0x84a   : > { %v5806_v46 = vpop.eup %5805 }
 0x84b   : > { %v1783_v47 = vsel %vm926_vm5, %v5806_v46, 0.0 }
 0x84c   : > { %1784 = vadd.xlane.f32.xlu0 %v1783_v47 }
 0x84e   : > { %v5808_v48 = vpop.eup %5807 }
 0x84f   : > { %v1786_v49 = vsel %vm926_vm5, %v5808_v48, 0.0 }
 0x850   : > { %1787 = vadd.xlane.f32.xlu1 %v1786_v49 }
 0x861   : > { %5671 = vrot.lane.b32.xlu1 %v6279_v39, %s7376_s19 }
 0x862   : > { %5666 = vrot.lane.b32.xlu0 %v6263_v32, %s7376_s19 }
 0x865   : > { %1910 = vrot.lane.b32.xlu1 %v6393_v26, %s7378_s17 }
 0x866   : > { %1926 = vrot.lane.b32.xlu0 %v1609_v8, %s7382_s30 }
 0x869   : > { %1912 = vrot.lane.b32.xlu1 %v6391_v25, %s7378_s17 }
 0x86a   : > { %1914 = vrot.lane.b32.xlu0 %v6405_v56, %s7378_s17 }
 0x86d   : > { %1928 = vrot.lane.b32.xlu1 %v4970_v31, %s7382_s30 }
 0x86e   : > { %1930 = vrot.lane.b32.xlu0 %v1619_v9, %s7382_s30 }
 0x871   : > { %1916 = vrot.lane.b32.xlu1 %v6403_v54, %s7378_s17 }
 0x875   : > { %1932 = vrot.lane.b32.xlu1 %v4973_v38, %s7382_s30 }
 0x8d4   : > { %v1782_v39 = vpop.xlane.xlu1 %1781 }
 0x8d5   : > { %v1779_v32 = vpop.xlane.xlu0 %1778 }
 0x8d6   : > { %5809 = vrcp.f32 %v1779_v32 }
 0x8d7   : > { %5811 = vrcp.f32 %v1782_v39 }
 0x8d9   : > { %v1785_v26 = vpop.xlane.xlu0 %1784 }
 0x8da   : > { %5813 = vrcp.f32 %v1785_v26  ;;  %v5941_v26 = vld [vmem:[%s6135_s18 + $0x8] sm:$0xff] }
 0x8dd   : > { %v1788_v50 = vpop.xlane.xlu1 %1787  ;;  %v5667_v25 = vpop.permute.xlu0 %5666 }
 0x8de   : > { %v5669_v51 = vunpack.i.h.bf16 %v5667_v25  ;;  %v5668_v52 = vunpack.i.l.bf16 %v5667_v25  ;;  %5815 = vrcp.f32 %v1788_v50 }
 0x8e0   : > { %v5810_v56 = vpop.eup %5809  ;;  %v5333_v53 = vpack.c.bf16 %v5669_v51, %v5668_v52 }
 0x8e1   : > { %v5672_v57 = vpop.permute.xlu1 %5671  ;;  %v1793_v60 = vmul.f32 %v5810_v56, %v5804_v42  ;;  %v5812_v63 = vpop.eup %5811 }
 0x8e2   : > { %v5674_v61 = vunpack.i.h.bf16 %v5672_v57  ;;  %v5673_v62 = vunpack.i.l.bf16 %v5672_v57  ;;  %5334 = vmatprep.subr.bf16.mxu0 %v5333_v53  ;;  %v1794_v31 = vmul.f32 %v5812_v63, %v5802_v7  ;;  %v1927_v23 = vpop.permute.xlu0 %1926 }
 0x8e3   : > { %5336 = vmatpush3.bf16.msra.mxu0 %v5333_v53  ;;  %4996 = vmatprep.mubr.msk.f32.mxu0 %vm926_vm5, %v1793_v60  ;;  %v5942_v53 = vld [vmem:[%s6135_s18 + $0x18] sm:$0xff] }
 0x8e4   : > { %v5337_v54 = vpack.c.bf16 %v5674_v61, %v5673_v62  ;;  %v5814_v0 = vpop.eup %5813  ;;  %v5943_v61 = vld [vmem:[%s6135_s18 + $0x10] sm:$0xff] }
 0x8e5   : > { %v1795_v38 = vmul.f32 %v5814_v0, %v5806_v46  ;;  %v1911_v58 = vpop.permute.xlu1 %1910 }
 0x8e6   : > { %5338 = vmatprep.subr.bf16.mxu0 %v5337_v54  ;;  %v1915_v24 = vpop.permute.xlu0 %1914  ;;  %v1954_v35 = vsel %vm816_vm3, %v6478_v3, %v1911_v58 }
 0x8e7   : > { %5340 = vmatpush3.bf16.msra.mxu0 %v5337_v54  ;;  %v1958_v41 = vsel %vm926_vm5, %v1954_v35, %v1927_v23  ;;  %v1956_v3 = vsel %vm816_vm3, %v6482_v6, %v1915_v24 }
 0x8e8   : > { %v5816_v8 = vpop.eup %5815  ;;  %5342 = vmatprep.subr.bf16.mxu0 %v5341_v14 }
 0x8e9   : > { %v1796_v9 = vmul.f32 %v5816_v8, %v5808_v48  ;;  %v1913_v21 = vpop.permute.xlu1 %1912 }
 0x8ea   : > { %4997 = vmatmul.mubr.msk.f32.vlgmr.msra.gmra.mrb[20].mxu0 %vm926_vm5, %v1794_v31  ;;  %v1931_v30 = vpop.permute.xlu0 %1930  ;;  %v1955_v37 = vsel %vm816_vm3, %v6476_v1, %v1913_v21  ;;  %v6591_v31 = vld [vmem:[%s7361_s4 + $0x8] sm:$0xff]  ;;  %v6641_v21 = vld [vmem:[%s7360_s3 + $0x18] sm:$0xff] }
 0x8eb   : > { %4999 = vmatprep.mubr.msk.f32.mxu0 %vm926_vm5, %v1795_v38  ;;  %5344 = vmatpush3.bf16.msra.mxu0 %v5341_v14  ;;  %v1960_v1 = vsel %vm926_vm5, %v1956_v3, %v1931_v30  ;;  %v6609_v14 = vld [vmem:[%s7361_s4] sm:$0xff]  ;;  %v2142_v3 = vld [vmem:[%s7366_s9 + $0x28] sm:$0xff] }
 0x8ec   : > { %5346 = vmatprep.subr.bf16.mxu0 %v5345_v15 }
 0x8ed   : > { %v1929_v22 = vpop.permute.xlu1 %1928 }
 0x8ee   : > { %5000 = vmatmul.mubr.msk.f32.gmra.mrb[22].mxu0 %vm926_vm5, %v1796_v9  ;;  %v1959_v42 = vsel %vm926_vm5, %v1955_v37, %v1929_v22  ;;  %v2138_v37 = vld [vmem:[%s7366_s9 + $0x8] sm:$0xff] }
 0x8ef   : > { %5348 = vmatpush3.bf16.msra.mxu0 %v5345_v15 }
 0x8f0   : > { %5350 = vmatprep.subr.bf16.mxu0 %v5349_v36 }
 0x8f1   : > { %v1917_v40 = vpop.permute.xlu1 %1916 }
 0x8f2   : > { %v1957_v47 = vsel %vm816_vm3, %v6480_v4, %v1917_v40 }
 0x8f3   : > { %5352 = vmatpush3.bf16.msra.mxu0 %v5349_v36 }
 0x8f4   : > { %5354 = vmatprep.subr.bf16.mxu0 %v5353_v33 }
 0x8f5   : > { %v1933_v28 = vpop.permute.xlu1 %1932 }
 0x8f6   : > { %v1961_v49 = vsel %vm926_vm5, %v1957_v47, %v1933_v28  ;;  %v2141_v47 = vld [vmem:[%s7366_s9 + $0x20] sm:$0xff] }
 0x8f7   : > { %5356 = vmatpush3.bf16.msra.mxu0 %v5353_v33 }
 0x9bd   : > { %v4998_v18 = vpop.f32.mrb[20].mxu0 }
 0x9be   : > { %1944 = vrot.lane.b32.xlu1 %v4998_v18, %s6020_s25  ;;  %v1887_v19 = vpop.f32.mrb[21].mxu0 }
 0x9bf   : > { %1942 = vrot.lane.b32.xlu0 %v1887_v19, %s6020_s25  ;;  %v6634_v19 = vld [vmem:[%s7361_s4 + $0x18] sm:$0xff] }
 0x9c1   : > { %v5001_v20 = vpop.f32.mrb[22].mxu0 }
 0x9c2   : > { %1948 = vrot.lane.b32.xlu1 %v5001_v20, %s6020_s25  ;;  %v1897_v55 = vpop.f32.mrb[23].mxu0 }
 0x9c3   : > { %1946 = vrot.lane.b32.xlu0 %v1897_v55, %s6020_s25 }
 0xa30   : > { %v1945_v2 = vpop.permute.xlu1 %1944 }
 0xa31   : > { %v1943_v7 = vpop.permute.xlu0 %1942  ;;  %v1963_v45 = vsel %vm654_vm2, %v1959_v42, %v1945_v2  ;;  %v2137_v42 = vld [vmem:[%s7366_s9] sm:$0xff] }
 0xa32   : > { %v1962_v43 = vsel %vm654_vm2, %v1958_v41, %v1943_v7  ;;  %v2140_v41 = vld [vmem:[%s7366_s9 + $0x18] sm:$0xff] }
 0xa33   : > { %5018 = vmatprep.mubr.msk.f32.mxu0 %vm1974_vm6, %v1962_v43  ;;  %v5357_v7 = vpack.c.bf16 %v2140_v41, %v2138_v37  ;;  %v2139_v43 = vld [vmem:[%s7366_s9 + $0x10] sm:$0xff]  ;;  %v2331_v37 = vld [vmem:[%s7368_s11 + $0x20] sm:$0xff]  ;;  %v2332_v41 = vld [vmem:[%s7368_s11 + $0x28] sm:$0xff] }
 0xa34   : > { %5019 = vmatmul.mubr.msk.f32.vlgmr.msra.gmra.mrb[24].mxu0 %vm1974_vm6, %v1963_v45  ;;  %v1949_v46 = vpop.permute.xlu1 %1948  ;;  %v5359_v45 = vpack.c.bf16 %v2139_v43, %v2137_v42 }
 0xa35   : > { %v1947_v48 = vpop.permute.xlu0 %1946  ;;  %v1965_v39 = vsel %vm654_vm2, %v1961_v49, %v1949_v46  ;;  %5358 = vmatprep.subr.bf16.mxu1 %v5357_v7  ;;  %v2144_v46 = vld [vmem:[%s7366_s9 + $0x38] sm:$0xff]  ;;  %v5377_v7 = vpack.c.bf16 %v2332_v41, %v2331_v37 }
 0xa36   : > { %v1964_v32 = vsel %vm654_vm2, %v1960_v1, %v1947_v48  ;;  %5360 = vmatpush1.bf16.msra.mxu1 %v5359_v45  ;;  %v5361_v1 = vpack.c.bf16 %v2144_v46, %v2142_v3  ;;  %v2143_v48 = vld [vmem:[%s7366_s9 + $0x30] sm:$0xff] }
 0xa37   : > { %5021 = vmatprep.mubr.msk.f32.mxu0 %vm1974_vm6, %v1964_v32  ;;  %v5363_v49 = vpack.c.bf16 %v2143_v48, %v2141_v47  ;;  %v2146_v32 = vld [vmem:[%s7366_s9 + $0x48] sm:$0xff] }
 0xa38   : > { %5022 = vmatmul.mubr.msk.f32.gmra.mrb[26].mxu0 %vm1974_vm6, %v1965_v39  ;;  %5362 = vmatprep.subr.bf16.mxu1 %v5361_v1  ;;  %v2148_v39 = vld [vmem:[%s7366_s9 + $0x58] sm:$0xff] }
 0xa3a   : > { %5364 = vmatpush1.bf16.msra.mxu1 %v5363_v49 }
 0xb07   : > { %v5020_v6 = vpop.f32.mrb[24].mxu0 }
 0xb08   : > { %v6565_v50 = vadd.f32 %v5941_v26, %v5020_v6  ;;  %v2053_v25 = vpop.f32.mrb[25].mxu0  ;;  %v5365_v6 = vpack.c.bf16 %v2148_v39, %v2146_v32  ;;  %v2145_v26 = vld [vmem:[%s7366_s9 + $0x40] sm:$0xff] }
 0xb09   : > { %v6568_v51 = vadd.f32 %v2053_v25, %v6151_v5  ;;  %v6583_v5 = vld [vmem:[%s7360_s3 + $0x8] sm:$0xff]  ;;  %v2147_v25 = vld [vmem:[%s7366_s9 + $0x50] sm:$0xff] }
 0xb0a   : > { %v2077_v4 = vrot.slane %v6565_v50, 7  ;;  %v2085_v63 = vmul.f32 %v6583_v5, %v6565_v50  ;;  %5366 = vmatprep.subr.bf16.mxu1 %v5365_v6 }
 0xb0b   : > { %v2076_v52 = vrot.slane %v6568_v51, 7  ;;  %v5023_v56 = vpop.f32.mrb[26].mxu0  ;;  %v2084_v13 = vmul.f32 %v6602_v12, %v6568_v51 }
 0xb0c   : > { %v6573_v57 = vadd.f32 %v5942_v53, %v5023_v56  ;;  %v2063_v60 = vpop.f32.mrb[27].mxu0 }
 0xb0d   : > { %v6576_v62 = vadd.f32 %v5943_v61, %v2063_v60  ;;  %v2082_v54 = vsel %vm632_vm1, %v2076_v52, %v2077_v4 }
 0xb0e   : > { %v2079_v0 = vrot.slane %v6573_v57, 7  ;;  %v2089_v8 = vmul.f32 %v6591_v31, %v2082_v54  ;;  %v2087_v22 = vmul.f32 %v6641_v21, %v6573_v57 }
 0xb0f   : > { %v2078_v38 = vrot.slane %v6576_v62, 7  ;;  %v2086_v36 = vmul.f32 %v6619_v34, %v6576_v62 }
 0xb10   : > { %v6595_v9 = vadd.f32 %v2089_v8, %v2085_v63  ;;  %v2083_v11 = vsel %vm632_vm1, %v2079_v0, %v2076_v52 }
 0xb11   : > { %v2088_v27 = vmul.f32 %v6609_v14, %v2083_v11  ;;  %v2081_v15 = vsel %vm632_vm1, %v2077_v4, %v2078_v38  ;;  %v2080_v29 = vsel %vm632_vm1, %v2078_v38, %v2079_v0  ;;  %v5367_v4 = vpack.c.bf16 %v2147_v25, %v2145_v26 }
 0xb12   : > { %v2098_v16 = vmul.f32 %v6595_v9, %v6595_v9  ;;  %v2090_v33 = vmul.f32 %v6628_v17, %v2081_v15  ;;  %v2091_v20 = vmul.f32 %v6634_v19, %v2080_v29  ;;  %v4562_v29 = vld [vmem:[%s7365_s8] ss:$0 sm:$0xff] }
 0xb13   : > { %v2092_v18 = vadd.f32 %v2088_v27, %v2084_v13  ;;  %5368 = vmatpush1.bf16.msra.mxu1 %v5367_v4 }
 0xb14   : > { %v2104_v55 = vsel %vm654_vm2, %v2098_v16, 0.0  ;;  %v2094_v58 = vadd.f32 %v2090_v33, %v2086_v36  ;;  %v2095_v28 = vadd.f32 %v2091_v20, %v2087_v22 }
 0xb15   : > { %2105 = vadd.xlane.f32.xlu1 %v2104_v55  ;;  %v2097_v23 = vmul.f32 %v2092_v18, %v2092_v18 }
 0xb16   : > { %v2099_v24 = vmul.f32 %v2094_v58, %v2094_v58  ;;  %v2100_v35 = vmul.f32 %v2095_v28, %v2095_v28 }
 0xb17   : > { %v2101_v40 = vsel %vm654_vm2, %v2097_v23, 0.0 }
 0xb18   : > { %2102 = vadd.xlane.f32.xlu0 %v2101_v40  ;;  %v2107_v30 = vsel %vm654_vm2, %v2099_v24, 0.0  ;;  %v2110_v2 = vsel %vm654_vm2, %v2100_v35, 0.0  ;;  %v2328_v24 = vld [vmem:[%s7368_s11 + $0x8] sm:$0xff]  ;;  %v2330_v35 = vld [vmem:[%s7368_s11 + $0x18] sm:$0xff] }
 0xb1c   : > { %2108 = vadd.xlane.f32.xlu0 %v2107_v30 }
 0xb20   : > { %2111 = vadd.xlane.f32.xlu0 %v2110_v2 }
 0xba2   : > { %v2106_v52 = vpop.xlane.xlu1 %2105 }
 0xba3   : > { %v2114_v56 = vmax.f32 %v2106_v52, 1e-24 }
 0xba5   : > { %v2103_v53 = vpop.xlane.xlu0 %2102  ;;  %5817 = vrsqrt.f32 %v2114_v56 }
 0xba6   : > { %v2113_v60 = vmax.f32 %v2103_v53, 1e-24 }
 0xba8   : > { %5819 = vrsqrt.f32 %v2113_v60 }
 0xba9   : > { %v2109_v61 = vpop.xlane.xlu0 %2108 }
 0xbaa   : > { %v2115_v54 = vmax.f32 %v2109_v61, 1e-24 }
 0xbac   : > { %5821 = vrsqrt.f32 %v2115_v54 }
 0xbad   : > { %v2112_v63 = vpop.xlane.xlu0 %2111 }
 0xbae   : > { %v2116_v0 = vmax.f32 %v2112_v63, 1e-24 }
 0xbaf   : > { %v5818_v8 = vpop.eup %5817 }
 0xbb0   : > { %5823 = vrsqrt.f32 %v2116_v0  ;;  %v2122_v13 = vmul.f32 %v5818_v8, %v6595_v9 }
 0xbb2   : > { %v5820_v38 = vpop.eup %5819  ;;  %v2126_v16 = vmul.f32 6.928203, %v2122_v13 }
 0xbb3   : > { %v2121_v11 = vmul.f32 %v5820_v38, %v2092_v18 }
 0xbb4   : > { %v2134_v55 = vmul.f32 %v4562_v29, %v2126_v16 }
 0xbb5   : > { %v2125_v27 = vmul.f32 6.928203, %v2121_v11 }
 0xbb6   : > { %v5822_v15 = vpop.eup %5821 }
 0xbb7   : > { %v2133_v36 = vmul.f32 %v4562_v29, %v2125_v27  ;;  %v2123_v33 = vmul.f32 %v5822_v15, %v2094_v58  ;;  %v2327_v58 = vld [vmem:[%s7368_s11] sm:$0xff] }
 0xbb8   : > { %v5369_v30 = vpack.c.bf16 %v2328_v24, %v2327_v58 }
 0xbb9   : > { %4563 = vmatmul.mubr.msk.f32.vlgmr.msra.gmra.mrb[16].mxu1 %vm654_vm2, %v2133_v36  ;;  %v2127_v22 = vmul.f32 6.928203, %v2123_v33 }
 0xbba   : > { %v5824_v20 = vpop.eup %5823  ;;  %2231 = vmatprep.mubr.f32.mxu1 %v6019_v59  ;;  %5370 = vmatprep.subr.bf16.mxu0 %v5369_v30 }
 0xbbb   : > { %v2124_v23 = vmul.f32 %v5824_v20, %v2095_v28  ;;  %v2135_v9 = vmul.f32 %v4562_v29, %v2127_v22  ;;  %v2329_v28 = vld [vmem:[%s7368_s11 + $0x10] sm:$0xff]  ;;  %5372 = vmatpush3.bf16.msra.mxu0 %v5369_v30 }
 0xbbc   : > { %v5373_v2 = vpack.c.bf16 %v2330_v35, %v2329_v28 }
 0xbbd   : > { %4564 = vmatmul.mubr.msk.f32.gmra.mrb[18].mxu1 %vm654_vm2, %v2134_v55  ;;  %v2128_v18 = vmul.f32 6.928203, %v2124_v23 }
 0xbbe   : > { %2237 = vmatprep.mubr.f32.mxu1 %v6019_v59  ;;  %5374 = vmatprep.subr.bf16.mxu0 %v5373_v2 }
 0xbbf   : > { %v2136_v40 = vmul.f32 %v4562_v29, %v2128_v18  ;;  %5376 = vmatpush3.bf16.msra.mxu0 %v5373_v2 }
 0xbc0   : > { %5378 = vmatprep.subr.bf16.mxu0 %v5377_v7 }
 0xbc1   : > { %4565 = vmatmul.mubr.msk.f32.gmra.mrb[20].mxu1 %vm654_vm2, %v2135_v9 }
 0xbc2   : > { %2243 = vmatprep.mubr.f32.mxu1 %v6019_v59 }
 0xbc3   : > { %5380 = vmatpush3.bf16.msra.mxu0 %v5377_v7 }
 0xbc5   : > { %4566 = vmatmul.mubr.msk.f32.gmra.mrb[22].mxu1 %vm654_vm2, %v2136_v40 }
 0xbc6   : > { %2582 = vmatprep.mubr.f32.mxu1 %v6019_v59 }
 0xc8c   : > { %v2227_v42 = vpop.f32.mrb[16].mxu1 }
 0xc8d   : > { %v2229_v43 = vpop.f32.mrb[17].mxu1 }
 0xc8e   : > { %v2254_v45 = vmul.f32 0.044715, %v2229_v43  ;;  %v2250_v29 = vmul.f32 0.5, %v2229_v43 }
 0xc90   : > { %v2258_v3 = vmul.f32 %v2254_v45, %v2229_v43  ;;  %v2233_v46 = vpop.f32.mrb[18].mxu1 }
 0xc91   : > { %v2235_v1 = vpop.f32.mrb[19].mxu1 }
 0xc92   : > { %v2262_v47 = vmul.f32 %v2258_v3, %v2229_v43  ;;  %v2255_v48 = vmul.f32 0.044715, %v2235_v1  ;;  %v2251_v55 = vmul.f32 0.5, %v2235_v1  ;;  %v2333_v3 = vld [vmem:[%s7368_s11 + $0x30] sm:$0xff] }
 0xc94   : > { %v2266_v49 = vadd.f32 %v2262_v47, %v2229_v43  ;;  %v2259_v32 = vmul.f32 %v2255_v48, %v2235_v1  ;;  %v2239_v39 = vpop.f32.mrb[20].mxu1  ;;  %v2335_v47 = vld [vmem:[%s7368_s11 + $0x40] sm:$0xff]  ;;  %v2336_v48 = vld [vmem:[%s7368_s11 + $0x48] sm:$0xff] }
 0xc95   : > { %v2241_v6 = vpop.f32.mrb[21].mxu1 }
 0xc96   : > { %v2270_v26 = vmul.f32 0.7978846, %v2266_v49  ;;  %v2263_v25 = vmul.f32 %v2259_v32, %v2235_v1  ;;  %v2256_v4 = vmul.f32 0.044715, %v2241_v6  ;;  %v2252_v58 = vmul.f32 0.5, %v2241_v6  ;;  %v2337_v32 = vld [vmem:[%s7368_s11 + $0x50] sm:$0xff] }
 0xc97   : > { %v5385_v49 = vpack.c.bf16 %v2336_v48, %v2335_v47 }
 0xc98   : > { %5825 = vtanh.f32 %v2270_v26  ;;  %v2267_v52 = vadd.f32 %v2263_v25, %v2235_v1  ;;  %v2260_v56 = vmul.f32 %v2256_v4, %v2241_v6  ;;  %v2245_v53 = vpop.f32.mrb[22].mxu1  ;;  %v2339_v26 = vld [vmem:[%s7368_s11 + $0x60] sm:$0xff]  ;;  %v2340_v25 = vld [vmem:[%s7368_s11 + $0x68] sm:$0xff] }
 0xc99   : > { %v2247_v60 = vpop.f32.mrb[23].mxu1  ;;  %v5393_v4 = vpack.c.bf16 %v2340_v25, %v2339_v26 }
 0xc9a   : > { %v2271_v61 = vmul.f32 0.7978846, %v2267_v52  ;;  %v2264_v54 = vmul.f32 %v2260_v56, %v2241_v6  ;;  %v2257_v63 = vmul.f32 0.044715, %v2247_v60  ;;  %v2253_v37 = vmul.f32 0.5, %v2247_v60  ;;  %v2341_v52 = vld [vmem:[%s7368_s11 + $0x70] sm:$0xff] }
 0xc9b   : > { %v2342_v56 = vld [vmem:[%s7368_s11 + $0x78] sm:$0xff] }
 0xc9c   : > { %5827 = vtanh.f32 %v2271_v61  ;;  %v2268_v0 = vadd.f32 %v2264_v54, %v2241_v6  ;;  %v2261_v8 = vmul.f32 %v2257_v63, %v2247_v60 }
 0xc9e   : > { %v2272_v38 = vmul.f32 0.7978846, %v2268_v0  ;;  %v2265_v11 = vmul.f32 %v2261_v8, %v2247_v60 }
 0xca0   : > { %5829 = vtanh.f32 %v2272_v38  ;;  %v2269_v13 = vadd.f32 %v2265_v11, %v2247_v60 }
 0xca2   : > { %v5826_v27 = vpop.eup %5825  ;;  %v2273_v15 = vmul.f32 0.7978846, %v2269_v13 }
 0xca3   : > { %v2278_v36 = vadd.f32 1.0, %v5826_v27 }
 0xca4   : > { %5831 = vtanh.f32 %v2273_v15  ;;  %v4567_v15 = vld [vmem:[%s7367_s10] ss:$0 sm:$0xff] }
 0xca5   : > { %v2282_v16 = vmul.f32 %v2278_v36, %v2250_v29 }
 0xca6   : > { %v5828_v33 = vpop.eup %5827 }
 0xca7   : > { %v2286_v20 = vmul.f32 %v2282_v16, %v2227_v42  ;;  %v2279_v22 = vadd.f32 1.0, %v5828_v33 }
 0xca9   : > { %v2291_v23 = vmul.f32 %v2286_v20, %v2286_v20  ;;  %v2283_v9 = vmul.f32 %v2279_v22, %v2251_v55 }
 0xcaa   : > { %v5830_v18 = vpop.eup %5829 }
 0xcab   : > { %2295 = vadd.xlane.f32.xlu0 %v2291_v23  ;;  %v2287_v40 = vmul.f32 %v2283_v9, %v2233_v46  ;;  %v2280_v24 = vadd.f32 1.0, %v5830_v18  ;;  %v2334_v46 = vld [vmem:[%s7368_s11 + $0x38] sm:$0xff] }
 0xcac   : > { %v5381_v1 = vpack.c.bf16 %v2334_v46, %v2333_v3 }
 0xcad   : > { %v2292_v28 = vmul.f32 %v2287_v40, %v2287_v40  ;;  %v2284_v30 = vmul.f32 %v2280_v24, %v2252_v58 }
 0xcae   : > { %v5832_v35 = vpop.eup %5831  ;;  %5382 = vmatprep.subr.bf16.mxu0 %v5381_v1 }
 0xcaf   : > { %2297 = vadd.xlane.f32.xlu1 %v2292_v28  ;;  %v2288_v2 = vmul.f32 %v2284_v30, %v2239_v39  ;;  %v2281_v41 = vadd.f32 1.0, %v5832_v35  ;;  %5384 = vmatpush3.bf16.msra.mxu0 %v5381_v1  ;;  %v2338_v39 = vld [vmem:[%s7368_s11 + $0x58] sm:$0xff] }
 0xcb0   : > { %5386 = vmatprep.subr.bf16.mxu0 %v5385_v49  ;;  %v5389_v6 = vpack.c.bf16 %v2338_v39, %v2337_v32 }
 0xcb1   : > { %v2293_v7 = vmul.f32 %v2288_v2, %v2288_v2  ;;  %v2285_v43 = vmul.f32 %v2281_v41, %v2253_v37 }
 0xcb3   : > { %2299 = vadd.xlane.f32.xlu0 %v2293_v7  ;;  %v2289_v42 = vmul.f32 %v2285_v43, %v2245_v53  ;;  %5388 = vmatpush3.bf16.msra.mxu0 %v5385_v49  ;;  %v5397_v53 = vpack.c.bf16 %v2342_v56, %v2341_v52 }
 0xcb4   : > { %5390 = vmatprep.subr.bf16.mxu0 %v5389_v6 }
 0xcb5   : > { %v2294_v45 = vmul.f32 %v2289_v42, %v2289_v42 }
 0xcb7   : > { %2301 = vadd.xlane.f32.xlu1 %v2294_v45  ;;  %5392 = vmatpush3.bf16.msra.mxu0 %v5389_v6 }
 0xcb8   : > { %5394 = vmatprep.subr.bf16.mxu0 %v5393_v4 }
 0xcbb   : > { %5396 = vmatpush3.bf16.msra.mxu0 %v5393_v4 }
 0xcbc   : > { %5398 = vmatprep.subr.bf16.mxu0 %v5397_v53 }
 0xcbf   : > { %5400 = vmatpush3.bf16.msra.mxu0 %v5397_v53 }
 0xd38   : > { %v2296_v60 = vpop.xlane.xlu0 %2295 }
 0xd39   : > { %v2303_v61 = vmax.f32 %v2296_v60, 1e-24 }
 0xd3b   : > { %5833 = vrsqrt.f32 %v2303_v61 }
 0xd3c   : > { %v2298_v54 = vpop.xlane.xlu1 %2297 }
 0xd3d   : > { %v2304_v63 = vmax.f32 %v2298_v54, 1e-24 }
 0xd3f   : > { %5835 = vrsqrt.f32 %v2304_v63  ;;  %v4569_v63 = vld [vmem:[%s7363_s6 + $0x60] sm:$0xff] }
 0xd40   : > { %v2300_v0 = vpop.xlane.xlu0 %2299 }
 0xd41   : > { %v2305_v8 = vmax.f32 %v2300_v0, 1e-24  ;;  %v4571_v0 = vld [vmem:[%s7363_s6 + $0x70] sm:$0xff] }
 0xd43   : > { %5837 = vrsqrt.f32 %v2305_v8  ;;  %v5403_v8 = vpack.c.bf16 %v4571_v0, %v4569_v63 }
 0xd44   : > { %v2302_v38 = vpop.xlane.xlu1 %2301 }
 0xd45   : > { %v5834_v11 = vpop.eup %5833  ;;  %v2306_v13 = vmax.f32 %v2302_v38, 1e-24  ;;  %v4574_v38 = vld [vmem:[%s7363_s6 + $0x88] sm:$0xff] }
 0xd46   : > { %v2311_v27 = vmul.f32 %v5834_v11, %v2286_v20  ;;  %v4576_v11 = vld [vmem:[%s7363_s6 + $0x98] sm:$0xff] }
 0xd47   : > { %5839 = vrsqrt.f32 %v2306_v13  ;;  %v5405_v13 = vpack.c.bf16 %v4576_v11, %v4574_v38 }
 0xd48   : > { %v2315_v29 = vmul.f32 11.313708, %v2311_v27  ;;  %v4573_v27 = vld [vmem:[%s7363_s6 + $0x80] sm:$0xff] }
 0xd49   : > { %v5836_v36 = vpop.eup %5835 }
 0xd4a   : > { %v2312_v16 = vmul.f32 %v5836_v36, %v2287_v40  ;;  %v2323_v33 = vmul.f32 %v4567_v15, %v2315_v29  ;;  %v4578_v36 = vld [vmem:[%s7363_s6 + $0xa8] sm:$0xff] }
 0xd4c   : > { %v2316_v55 = vmul.f32 11.313708, %v2312_v16  ;;  %5056 = vmatprep.mubr.f32.mxu0 %v2323_v33  ;;  %v4580_v16 = vld [vmem:[%s7363_s6 + $0xb8] sm:$0xff] }
 0xd4d   : > { %v5838_v22 = vpop.eup %5837  ;;  %v5409_v33 = vpack.c.bf16 %v4580_v16, %v4578_v36 }
 0xd4e   : > { %v2324_v23 = vmul.f32 %v4567_v15, %v2316_v55  ;;  %v2313_v9 = vmul.f32 %v5838_v22, %v2288_v2  ;;  %v4577_v55 = vld [vmem:[%s7363_s6 + $0xa0] sm:$0xff]  ;;  %v4579_v22 = vld [vmem:[%s7363_s6 + $0xb0] sm:$0xff] }
 0xd50   : > { %5057 = vmatmul.mubr.f32.vlgmr.msra.gmra.mrb[28].mxu0 %v2324_v23  ;;  %v2317_v18 = vmul.f32 11.313708, %v2313_v9  ;;  %v5411_v23 = vpack.c.bf16 %v4579_v22, %v4577_v55 }
 0xd51   : > { %v5840_v58 = vpop.eup %5839 }
 0xd52   : > { %v2325_v24 = vmul.f32 %v4567_v15, %v2317_v18  ;;  %v2314_v28 = vmul.f32 %v5840_v58, %v2289_v42 }
 0xd54   : > { %5059 = vmatprep.mubr.f32.mxu0 %v2325_v24  ;;  %v2318_v20 = vmul.f32 11.313708, %v2314_v28 }
 0xd56   : > { %v2326_v30 = vmul.f32 %v4567_v15, %v2318_v20  ;;  %v4575_v15 = vld [vmem:[%s7363_s6 + $0x90] sm:$0xff] }
 0xd57   : > { %v5407_v29 = vpack.c.bf16 %v4575_v15, %v4573_v27 }
 0xd58   : > { %5060 = vmatmul.mubr.f32.gmra.mrb[30].mxu0 %v2326_v30 }
 0xe23   : > { %v5058_v35 = vpop.f32.mrb[28].mxu0 }
 0xe24   : > { %v6748_v37 = vadd.f32 %v5058_v35, %v6565_v50  ;;  %v2409_v40 = vpop.f32.mrb[29].mxu0 }
 0xe25   : > { %v6751_v41 = vadd.f32 %v2409_v40, %v6568_v51 }
 0xe26   : > { %v2433_v7 = vrot.slane %v6748_v37, 7  ;;  %v2441_v42 = vmul.f32 %v6583_v5, %v6748_v37 }
 0xe27   : > { %v2432_v2 = vrot.slane %v6751_v41, 7 }
 0xe29   : > { %v2438_v43 = vsel %vm632_vm1, %v2432_v2, %v2433_v7 }
 0xe2a   : > { %v2445_v45 = vmul.f32 %v6591_v31, %v2438_v43 }
 0xe2b   : > { %v5061_v3 = vpop.f32.mrb[30].mxu0 }
 0xe2c   : > { %v6761_v50 = vadd.f32 %v5061_v3, %v6573_v57  ;;  %v2419_v46 = vpop.f32.mrb[31].mxu0  ;;  %v6763_v1 = vadd.f32 %v2445_v45, %v2441_v42  ;;  %v2440_v57 = vmul.f32 %v6602_v12, %v6751_v41  ;;  %v4568_v3 = vld [vmem:[%s7362_s5 + $0x1] ss:$0 sm:$0xff] }
 0xe2d   : > { %v6766_v51 = vadd.f32 %v2419_v46, %v6576_v62 }
 0xe2e   : > { %v2435_v47 = vrot.slane %v6761_v50, 7  ;;  %v2454_v48 = vmul.f32 %v6763_v1, %v6763_v1  ;;  %v2443_v6 = vmul.f32 %v6641_v21, %v6761_v50 }
 0xe2f   : > { %v2434_v49 = vrot.slane %v6766_v51, 7  ;;  %v2442_v26 = vmul.f32 %v6619_v34, %v6766_v51  ;;  %v4570_v34 = vld [vmem:[%s7363_s6 + $0x68] sm:$0xff] }
 0xe30   : > { %v2460_v5 = vsel %vm654_vm2, %v2454_v48, 0.0  ;;  %v2439_v31 = vsel %vm632_vm1, %v2435_v47, %v2432_v2 }
 0xe31   : > { %2461 = vadd.xlane.f32.xlu1 %v2460_v5  ;;  %v2444_v32 = vmul.f32 %v6609_v14, %v2439_v31  ;;  %v2436_v62 = vsel %vm632_vm1, %v2434_v49, %v2435_v47  ;;  %v2437_v39 = vsel %vm632_vm1, %v2433_v7, %v2434_v49 }
 0xe32   : > { %v2447_v25 = vmul.f32 %v6634_v19, %v2436_v62  ;;  %v2446_v4 = vmul.f32 %v6628_v17, %v2437_v39  ;;  %v4572_v17 = vld [vmem:[%s7363_s6 + $0x78] sm:$0xff] }
 0xe33   : > { %v2448_v12 = vadd.f32 %v2444_v32, %v2440_v57  ;;  %v5401_v19 = vpack.c.bf16 %v4572_v17, %v4570_v34 }
 0xe34   : > { %v2451_v52 = vadd.f32 %v2447_v25, %v2443_v6  ;;  %v2450_v56 = vadd.f32 %v2446_v4, %v2442_v26 }
 0xe35   : > { %v2453_v14 = vmul.f32 %v2448_v12, %v2448_v12  ;;  %5402 = vmatprep.subr.bf16.mxu1 %v5401_v19 }
 0xe36   : > { %v2456_v53 = vmul.f32 %v2451_v52, %v2451_v52  ;;  %v2455_v61 = vmul.f32 %v2450_v56, %v2450_v56  ;;  %5404 = vmatpush1.bf16.msra.mxu1 %v5403_v8 }
 0xe37   : > { %v2457_v60 = vsel %vm654_vm2, %v2453_v14, 0.0  ;;  %5406 = vmatprep.subr.bf16.mxu1 %v5405_v13 }
 0xe38   : > { %2458 = vadd.xlane.f32.xlu0 %v2457_v60  ;;  %v2466_v54 = vsel %vm654_vm2, %v2456_v53, 0.0  ;;  %v2463_v21 = vsel %vm654_vm2, %v2455_v61, 0.0 }
 0xe39   : > { %2467 = vadd.xlane.f32.xlu1 %v2466_v54 }
 0xe3a   : > { %5408 = vmatpush1.bf16.msra.mxu1 %v5407_v29 }
 0xe3b   : > { %5410 = vmatprep.subr.bf16.mxu1 %v5409_v33 }
 0xe3c   : > { %2464 = vadd.xlane.f32.xlu0 %v2463_v21 }
 0xe3e   : > { %5412 = vmatpush1.bf16.msra.mxu1 %v5411_v23 }
 0xebe   : > { %v2462_v9 = vpop.xlane.xlu1 %2461 }
 0xebf   : > { %v2470_v18 = vmax.f32 %v2462_v9, 1e-24 }
 0xec1   : > { %5841 = vrsqrt.f32 %v2470_v18 }
 0xec5   : > { %v2459_v58 = vpop.xlane.xlu0 %2458 }
 0xec6   : > { %v2469_v24 = vmax.f32 %v2459_v58, 1e-24  ;;  %v2468_v28 = vpop.xlane.xlu1 %2467 }
 0xec7   : > { %v2472_v30 = vmax.f32 %v2468_v28, 1e-24 }
 0xec8   : > { %5843 = vrsqrt.f32 %v2469_v24 }
 0xec9   : > { %v2465_v20 = vpop.xlane.xlu0 %2464 }
 0xeca   : > { %v2471_v35 = vmax.f32 %v2465_v20, 1e-24 }
 0xecb   : > { %v5842_v40 = vpop.eup %5841 }
 0xecc   : > { %5845 = vrsqrt.f32 %v2471_v35  ;;  %v2478_v43 = vmul.f32 %v5842_v40, %v6763_v1 }
 0xecd   : > { %5847 = vrsqrt.f32 %v2472_v30  ;;  %v6903_v30 = vld [vmem:[%s6140_s22 + $0x8] sm:$0xff] }
 0xece   : > { %v2482_v47 = vmul.f32 6.928203, %v2478_v43 }
 0xed0   : > { %v2490_v5 = vmul.f32 %v4568_v3, %v2482_v47  ;;  %v6913_v47 = vld [vmem:[%s6140_s22 + $0x18] sm:$0xff] }
 0xed2   : > { %v5844_v7 = vpop.eup %5843 }
 0xed3   : > { %v2477_v2 = vmul.f32 %v5844_v7, %v2448_v12  ;;  %v6907_v7 = vld [vmem:[%s6140_s22] sm:$0xff] }
 0xed5   : > { %v2481_v42 = vmul.f32 6.928203, %v2477_v2 }
 0xed6   : > { %v5846_v45 = vpop.eup %5845 }
 0xed7   : > { %v2489_v46 = vmul.f32 %v4568_v3, %v2481_v42  ;;  %v2479_v48 = vmul.f32 %v5846_v45, %v2450_v56  ;;  %v5848_v49 = vpop.eup %5847 }
 0xed8   : > { %v2480_v57 = vmul.f32 %v5848_v49, %v2451_v52 }
 0xed9   : > { %4581 = vmatmul.mubr.msk.f32.vlgmr.msra.gmra.mrb[24].mxu1 %vm654_vm2, %v2489_v46  ;;  %v2483_v31 = vmul.f32 6.928203, %v2479_v48 }
 0xeda   : > { %2588 = vmatprep.mubr.f32.mxu1 %v6019_v59  ;;  %v2484_v32 = vmul.f32 6.928203, %v2480_v57 }
 0xedb   : > { %v2491_v1 = vmul.f32 %v4568_v3, %v2483_v31 }
 0xedc   : > { %v2492_v62 = vmul.f32 %v4568_v3, %v2484_v32 }
 0xedd   : > { %4582 = vmatmul.mubr.msk.f32.gmra.mrb[26].mxu1 %vm654_vm2, %v2490_v5  ;;  %v6918_v5 = vld [vmem:[%s6140_s22 + $0x10] sm:$0xff]  ;;  %s7392_s22 = smov 32  }
 0xede   : > { %2594 = vmatprep.mubr.f32.mxu1 %v6019_v59 }
 0xee1   : > { %4583 = vmatmul.mubr.msk.f32.gmra.mrb[28].mxu1 %vm654_vm2, %v2491_v1 }
 0xee2   : > { %2600 = vmatprep.mubr.f32.mxu1 %v6019_v59 }
 0xee5   : > { %4584 = vmatmul.mubr.msk.f32.gmra.mrb[30].mxu1 %vm654_vm2, %v2492_v62 }
 0xfac   : > { %v6838_v39 = vpop.f32.mrb[24].mxu1 }
 0xfad   : > { %v2586_v6 = vpop.f32.mrb[25].mxu1  ;;  %5070 = vmatprep.mubr.msk.f32.mxu1 %vm816_vm3, %v6838_v39 }
 0xfb0   : > { %v6842_v26 = vpop.f32.mrb[26].mxu1 }
 0xfb1   : > { %v2592_v25 = vpop.f32.mrb[27].mxu1  ;;  %v6846_v4 = vpack.i.bf16 %v6842_v26, %v6838_v39 }
 0xfb2   : > { %v6848_v12 = vpack.i.bf16 %v2592_v25, %v2586_v6  ;;  %v5425_v52 = vpack.c.bf16 %v2592_v25, %v2586_v6 }
 0xfb3   : > { %5676 = vrot.lane.b32.xlu0 %v6846_v4, %s6022_s29 }
 0xfb4   : > { %v6852_v56 = vpop.f32.mrb[28].mxu1  ;;  %5426 = vmatprep.subr.bf16.mxu0 %v5425_v52 }
 0xfb5   : > { %v2598_v14 = vpop.f32.mrb[29].mxu1  ;;  %5428 = vmatpush3.bf16.msra.mxu0 %v5425_v52 }
 0xfb7   : > { %2869 = vrot.lane.b32.xlu0 %v6838_v39, %s6021_s28 }
 0xfb8   : > { %v6856_v53 = vpop.f32.mrb[30].mxu1 }
 0xfb9   : > { %v2604_v60 = vpop.f32.mrb[31].mxu1  ;;  %v6860_v61 = vpack.i.bf16 %v6856_v53, %v6852_v56 }
 0xfba   : > { %v6862_v54 = vpack.i.bf16 %v2604_v60, %v2598_v14  ;;  %v5429_v21 = vpack.c.bf16 %v2604_v60, %v2598_v14 }
 0xfbb   : > { %2873 = vrot.lane.b32.xlu0 %v6852_v56, %s6021_s28  ;;  %5681 = vrot.lane.b32.xlu1 %v6860_v61, %s6022_s29  ;;  %s7394_s29 = smov 16  }
 0xfbc   : > { %5430 = vmatprep.subr.bf16.mxu0 %v5429_v21 }
 0xfbd   : > { %5432 = vmatpush3.bf16.msra.mxu0 %v5429_v21 }
 0xfbf   : > { %5686 = vrot.lane.b32.xlu1 %v6846_v4, %s6020_s25 }
 0xfc3   : > { %5691 = vrot.lane.b32.xlu1 %v6860_v61, %s6020_s25 }
 0xfc7   : > { %2871 = vrot.lane.b32.xlu1 %v6842_v26, %s6021_s28 }
 0xfcb   : > { %2875 = vrot.lane.b32.xlu1 %v6856_v53, %s6021_s28 }
0x1025   : > { %v5677_v34 = vpop.permute.xlu0 %5676 }
0x1026   : > { %v5679_v17 = vunpack.i.h.bf16 %v5677_v34  ;;  %v5678_v19 = vunpack.i.l.bf16 %v5677_v34 }
0x1028   : > { %v5413_v63 = vpack.c.bf16 %v5679_v17, %v5678_v19 }
0x1029   : > { %v2870_v22 = vpop.permute.xlu0 %2869 }
0x102a   : > { %5415 = vmatprep.subr.msk.bf16.mxu1 %vm6293_vm4, %v5413_v63 }
0x102b   : > { %5418 = vmatpush3.bf16.xpose.msk.msra.mxu1 %vm6293_vm4, %v5413_v63 }
0x102d   : > { %v5682_v0 = vpop.permute.xlu1 %5681  ;;  %v2874_v9 = vpop.permute.xlu0 %2873 }
0x102e   : > { %v5684_v8 = vunpack.i.h.bf16 %v5682_v0  ;;  %v5683_v38 = vunpack.i.l.bf16 %v5682_v0 }
0x1030   : > { %v5419_v11 = vpack.c.bf16 %v5684_v8, %v5683_v38 }
0x1031   : > { %v5687_v13 = vpop.permute.xlu1 %5686 }
0x1032   : > { %v5689_v27 = vunpack.i.h.bf16 %v5687_v13  ;;  %v5688_v15 = vunpack.i.l.bf16 %v5687_v13  ;;  %5421 = vmatprep.subr.msk.bf16.mxu1 %vm6293_vm4, %v5419_v11 }
0x1033   : > { %5424 = vmatpush3.bf16.xpose.msk.msra.mxu1 %vm6293_vm4, %v5419_v11 }
0x1034   : > { %v5433_v29 = vpack.c.bf16 %v5689_v27, %v5688_v15 }
0x1035   : > { %v5692_v36 = vpop.permute.xlu1 %5691 }
0x1036   : > { %v5694_v16 = vunpack.i.h.bf16 %v5692_v36  ;;  %v5693_v33 = vunpack.i.l.bf16 %v5692_v36  ;;  %5435 = vmatprep.subr.msk.bf16.mxu1 %vm6293_vm4, %v5433_v29 }
0x1038   : > { %v5439_v55 = vpack.c.bf16 %v5694_v16, %v5693_v33 }
0x1039   : > { %v2872_v23 = vpop.permute.xlu1 %2871 }
0x103a   : > { %5071 = vmatmul.mubr.msk.f32.vlgmr.msra.gmra.mrb[32].mxu1 %vm816_vm3, %v6842_v26 }
0x103b   : > { %5073 = vmatprep.mubr.msk.f32.mxu1 %vm816_vm3, %v6852_v56  ;;  %5438 = vmatpush3.bf16.xpose.msk.msra.mxu1 %vm6293_vm4, %v5433_v29 }
0x103c   : > { %5441 = vmatprep.subr.msk.bf16.mxu1 %vm6293_vm4, %v5439_v55 }
0x103d   : > { %v2876_v18 = vpop.permute.xlu1 %2875 }
0x103e   : > { %5074 = vmatmul.mubr.msk.f32.gmra.mrb[34].mxu1 %vm816_vm3, %v6856_v53 }
0x103f   : > { %5098 = vmatprep.mubr.msk.f32.mxu1 %vm816_vm3, %v2870_v22 }
0x1043   : > { %5444 = vmatpush3.bf16.xpose.msk.msra.mxu1 %vm6293_vm4, %v5439_v55 }
0x104a   : > { %5099 = vmatmul.mubr.msk.f32.vlgmr.msra.gmra.mrb[36].mxu1 %vm816_vm3, %v2872_v23 }
0x104b   : > { %5101 = vmatprep.mubr.msk.f32.mxu1 %vm816_vm3, %v2874_v9 }
0x104e   : > { %5102 = vmatmul.mubr.msk.f32.gmra.mrb[38].mxu1 %vm816_vm3, %v2876_v18 }
0x110d   : > { %v5072_v58 = vpop.f32.mrb[32].mxu1 }
0x110e   : > { %v2721_v24 = vmul.f32 0.25, %v5072_v58  ;;  %v2701_v28 = vpop.f32.mrb[33].mxu1 }
0x110f   : > { %v2720_v20 = vmul.f32 0.25, %v2701_v28 }
0x1110   : > { %v2725_v35 = vadd.f32 %v6903_v30, %v2721_v24 }
0x1111   : > { %v5075_v40 = vpop.f32.mrb[34].mxu1  ;;  %v2724_v2 = vadd.f32 %v6907_v7, %v2720_v20 }
0x1112   : > { %v2723_v43 = vmul.f32 0.25, %v5075_v40  ;;  %v2711_v42 = vpop.f32.mrb[35].mxu1  ;;  %v2731_v45 = vsel %vm926_vm5, %v2725_v35, -inf }
0x1113   : > { %v2722_v3 = vmul.f32 0.25, %v2711_v42  ;;  %2732 = vmax.xlane.f32.xlu1 %v2731_v45  ;;  %v2728_v46 = vsel %vm926_vm5, %v2724_v2, -inf }
0x1114   : > { %2729 = vmax.xlane.f32.xlu0 %v2728_v46  ;;  %v2727_v48 = vadd.f32 %v6913_v47, %v2723_v43 }
0x1115   : > { %v2726_v31 = vadd.f32 %v6918_v5, %v2722_v3 }
0x1116   : > { %v2737_v49 = vsel %vm926_vm5, %v2727_v48, -inf }
0x1117   : > { %v2734_v57 = vsel %vm926_vm5, %v2726_v31, -inf }
0x1118   : > { %2738 = vmax.xlane.f32.xlu0 %v2737_v49 }
0x111c   : > { %2735 = vmax.xlane.f32.xlu0 %v2734_v57 }
0x111d   : > { %v5100_v1 = vpop.f32.mrb[36].mxu1 }
0x111e   : > { %v2987_v32 = vmul.f32 0.25, %v5100_v1  ;;  %v2967_v62 = vpop.f32.mrb[37].mxu1 }
0x111f   : > { %v2986_v6 = vmul.f32 0.25, %v2967_v62 }
0x1120   : > { %v2991_v25 = vadd.f32 %v6903_v30, %v2987_v32 }
0x1121   : > { %v2990_v52 = vadd.f32 %v6907_v7, %v2986_v6  ;;  %v5103_v14 = vpop.f32.mrb[38].mxu1 }
0x1122   : > { %v2989_v60 = vmul.f32 0.25, %v5103_v14  ;;  %v2977_v21 = vpop.f32.mrb[39].mxu1  ;;  %v2997_v34 = vsel %vm926_vm5, %v2991_v25, -inf }
0x1123   : > { %v2988_v17 = vmul.f32 0.25, %v2977_v21  ;;  %2998 = vmax.xlane.f32.xlu1 %v2997_v34  ;;  %v2994_v19 = vsel %vm926_vm5, %v2990_v52, -inf }
0x1124   : > { %v2993_v63 = vadd.f32 %v6913_v47, %v2989_v60  ;;  %2995 = vmax.xlane.f32.xlu0 %v2994_v19 }
0x1125   : > { %v2992_v0 = vadd.f32 %v6918_v5, %v2988_v17 }
0x1126   : > { %v3003_v8 = vsel %vm926_vm5, %v2993_v63, -inf }
0x1127   : > { %3004 = vmax.xlane.f32.xlu1 %v3003_v8  ;;  %v3000_v38 = vsel %vm926_vm5, %v2992_v0, -inf }
0x1128   : > { %3001 = vmax.xlane.f32.xlu0 %v3000_v38 }
0x11a0   : > { %v2733_v11 = vpop.xlane.xlu1 %2732 }
0x11a1   : > { %v2741_v13 = vsub.f32 %v2725_v35, %v2733_v11  ;;  %v2730_v27 = vpop.xlane.xlu0 %2729 }
0x11a2   : > { %v2740_v15 = vsub.f32 %v2724_v2, %v2730_v27 }
0x11a3   : > { %v2746_v29 = vmul.f32 1.442695, %v2741_v13 }
0x11a4   : > { %v2744_v36 = vmul.f32 1.442695, %v2740_v15 }
0x11a5   : > { %5849 = vpow2.f32 %v2746_v29  ;;  %v2739_v16 = vpop.xlane.xlu0 %2738 }
0x11a6   : > { %5851 = vpow2.f32 %v2744_v36  ;;  %v2743_v33 = vsub.f32 %v2727_v48, %v2739_v16 }
0x11a8   : > { %v2750_v55 = vmul.f32 1.442695, %v2743_v33 }
0x11a9   : > { %v2736_v22 = vpop.xlane.xlu0 %2735 }
0x11aa   : > { %5853 = vpow2.f32 %v2750_v55  ;;  %v2742_v23 = vsub.f32 %v2726_v31, %v2736_v22 }
0x11ac   : > { %v2748_v9 = vmul.f32 1.442695, %v2742_v23 }
0x11ae   : > { %5855 = vpow2.f32 %v2748_v9 }
0x11af   : > { %v5850_v18 = vpop.eup %5849 }
0x11b0   : > { %v5852_v58 = vpop.eup %5851  ;;  %v2999_v24 = vpop.xlane.xlu1 %2998  ;;  %v2755_v28 = vsel %vm926_vm5, %v5850_v18, 0.0 }
0x11b1   : > { %v3007_v20 = vsub.f32 %v2991_v25, %v2999_v24  ;;  %2756 = vadd.xlane.f32.xlu1 %v2755_v28  ;;  %v2996_v35 = vpop.xlane.xlu0 %2995  ;;  %v2752_v40 = vsel %vm926_vm5, %v5852_v58, 0.0 }
0x11b2   : > { %v3006_v2 = vsub.f32 %v2990_v52, %v2996_v35  ;;  %2753 = vadd.xlane.f32.xlu0 %v2752_v40 }
0x11b3   : > { %v3012_v43 = vmul.f32 1.442695, %v3007_v20 }
0x11b4   : > { %v5854_v42 = vpop.eup %5853  ;;  %v3010_v45 = vmul.f32 1.442695, %v3006_v2  ;;  %v3005_v6 = vpop.xlane.xlu1 %3004 }
0x11b5   : > { %5857 = vpow2.f32 %v3012_v43  ;;  %v2761_v3 = vsel %vm926_vm5, %v5854_v42, 0.0  ;;  %v3002_v32 = vpop.xlane.xlu0 %3001  ;;  %v3009_v52 = vsub.f32 %v2993_v63, %v3005_v6 }
0x11b6   : > { %5859 = vpow2.f32 %v3010_v45  ;;  %2762 = vadd.xlane.f32.xlu1 %v2761_v3  ;;  %v3008_v62 = vsub.f32 %v2992_v0, %v3002_v32 }
0x11b7   : > { %v3016_v14 = vmul.f32 1.442695, %v3009_v52 }
0x11b8   : > { %v5856_v46 = vpop.eup %5855  ;;  %v3014_v25 = vmul.f32 1.442695, %v3008_v62 }
0x11b9   : > { %v2758_v48 = vsel %vm926_vm5, %v5856_v46, 0.0 }
0x11ba   : > { %2759 = vadd.xlane.f32.xlu0 %v2758_v48  ;;  %5861 = vpow2.f32 %v3014_v25 }
0x11bb   : > { %5863 = vpow2.f32 %v3016_v14 }
0x11bf   : > { %v6934_v49 = vpop.eup %5857 }
0x11c0   : > { %v6936_v31 = vpop.eup %5859  ;;  %v3021_v57 = vsel %vm926_vm5, %v6934_v49, 0.0 }
0x11c1   : > { %3022 = vadd.xlane.f32.xlu1 %v3021_v57  ;;  %v3018_v1 = vsel %vm926_vm5, %v6936_v31, 0.0 }
0x11c2   : > { %3019 = vadd.xlane.f32.xlu0 %v3018_v1 }
0x11c4   : > { %v6950_v60 = vpop.eup %5861 }
0x11c5   : > { %v3024_v21 = vsel %vm926_vm5, %v6950_v60, 0.0  ;;  %v6954_v34 = vpop.eup %5863 }
0x11c6   : > { %v3027_v17 = vsel %vm926_vm5, %v6954_v34, 0.0 }
0x11d2   : > { %5701 = vrot.lane.b32.xlu1 %v6862_v54, %s6021_s28 }
0x11d6   : > { %5706 = vrot.lane.b32.xlu1 %v6846_v4, %s7392_s22 }
0x11d8   : > { %5696 = vrot.lane.b32.xlu0 %v6848_v12, %s6021_s28  ;;  %s7393_s28 = smov 96  }
0x11da   : > { %5711 = vrot.lane.b32.xlu1 %v6860_v61, %s7392_s22 }
0x11f7   : > { %3025 = vadd.xlane.f32.xlu0 %v3024_v21 }
0x11fe   : > { %3028 = vadd.xlane.f32.xlu1 %v3027_v17 }
0x120d   : > { %3151 = vrot.lane.b32.xlu0 %v6838_v39, %s7393_s28 }
0x120f   : > { %3153 = vrot.lane.b32.xlu1 %v6842_v26, %s7393_s28 }
0x1211   : > { %3155 = vrot.lane.b32.xlu0 %v6852_v56, %s7393_s28 }
0x1213   : > { %3157 = vrot.lane.b32.xlu1 %v6856_v53, %s7393_s28 }
0x123e   : > { %v2757_v19 = vpop.xlane.xlu1 %2756 }
0x123f   : > { %5865 = vrcp.f32 %v2757_v19  ;;  %v2754_v63 = vpop.xlane.xlu0 %2753 }
0x1240   : > { %5867 = vrcp.f32 %v2754_v63 }
0x1243   : > { %v2763_v0 = vpop.xlane.xlu1 %2762 }
0x1244   : > { %5869 = vrcp.f32 %v2763_v0 }
0x1247   : > { %v2760_v8 = vpop.xlane.xlu0 %2759 }
0x1248   : > { %5871 = vrcp.f32 %v2760_v8 }
0x1249   : > { %v5866_v38 = vpop.eup %5865 }
0x124a   : > { %v5868_v11 = vpop.eup %5867  ;;  %v2769_v27 = vmul.f32 %v5866_v38, %v5850_v18 }
0x124b   : > { %v2768_v13 = vmul.f32 %v5868_v11, %v5852_v58 }
0x124d   : > { %5084 = vmatprep.mubr.msk.f32.mxu0 %vm926_vm5, %v2768_v13 }
0x124e   : > { %v3023_v15 = vpop.xlane.xlu1 %3022  ;;  %5085 = vmatmul.mubr.msk.f32.vlgmr.msra.gmra.mrb[32].mxu0 %vm926_vm5, %v2769_v27  ;;  %v5870_v36 = vpop.eup %5869 }
0x124f   : > { %v3020_v29 = vpop.xlane.xlu0 %3019  ;;  %v2771_v23 = vmul.f32 %v5870_v36, %v5854_v42 }
0x1250   : > { %5873 = vrcp.f32 %v3020_v29 }
0x1251   : > { %5875 = vrcp.f32 %v3023_v15 }
0x1252   : > { %v5872_v16 = vpop.eup %5871  ;;  %v5702_v33 = vpop.permute.xlu1 %5701 }
0x1253   : > { %v5697_v55 = vpop.permute.xlu0 %5696  ;;  %v2770_v22 = vmul.f32 %v5872_v16, %v5856_v46  ;;  %v5704_v9 = vunpack.i.h.bf16 %v5702_v33  ;;  %v5703_v24 = vunpack.i.l.bf16 %v5702_v33 }
0x1254   : > { %v5699_v28 = vunpack.i.h.bf16 %v5697_v55  ;;  %v5698_v20 = vunpack.i.l.bf16 %v5697_v55 }
0x1255   : > { %5087 = vmatprep.mubr.msk.f32.mxu0 %vm926_vm5, %v2770_v22  ;;  %v5449_v35 = vpack.c.bf16 %v5704_v9, %v5703_v24 }
0x1256   : > { %v5445_v18 = vpack.c.bf16 %v5699_v28, %v5698_v20  ;;  %v5707_v58 = vpop.permute.xlu1 %5706  ;;  %5088 = vmatmul.mubr.msk.f32.gmra.mrb[34].mxu0 %vm926_vm5, %v2771_v23 }
0x1257   : > { %v5709_v40 = vunpack.i.h.bf16 %v5707_v58  ;;  %v5708_v2 = vunpack.i.l.bf16 %v5707_v58 }
0x1258   : > { %5446 = vmatprep.subr.bf16.mxu0 %v5445_v18 }
0x1259   : > { %5448 = vmatpush3.bf16.msra.mxu0 %v5445_v18  ;;  %v5453_v3 = vpack.c.bf16 %v5709_v40, %v5708_v2 }
0x125a   : > { %v5874_v43 = vpop.eup %5873  ;;  %5450 = vmatprep.subr.bf16.mxu0 %v5449_v35  ;;  %v5712_v48 = vpop.permute.xlu1 %5711 }
0x125b   : > { %v5876_v45 = vpop.eup %5875  ;;  %v3034_v42 = vmul.f32 %v5874_v43, %v6936_v31  ;;  %v5714_v57 = vunpack.i.h.bf16 %v5712_v48  ;;  %v5713_v1 = vunpack.i.l.bf16 %v5712_v48 }
0x125c   : > { %v3035_v46 = vmul.f32 %v5876_v45, %v6934_v49 }
0x125d   : > { %5452 = vmatpush3.bf16.msra.mxu0 %v5449_v35  ;;  %5112 = vmatprep.mubr.msk.f32.mxu0 %vm926_vm5, %v3034_v42  ;;  %v5459_v32 = vpack.c.bf16 %v5714_v57, %v5713_v1 }
0x125e   : > { %5455 = vmatprep.subr.msk.bf16.mxu0 %vm6293_vm4, %v5453_v3 }
0x1260   : > { %5113 = vmatmul.mubr.msk.f32.vlgmr.msra.gmra.mrb[36].mxu0 %vm926_vm5, %v3035_v46 }
0x1266   : > { %5458 = vmatpush3.bf16.xpose.msk.msra.mxu0 %vm6293_vm4, %v5453_v3 }
0x1267   : > { %5461 = vmatprep.subr.msk.bf16.mxu0 %vm6293_vm4, %v5459_v32 }
0x126e   : > { %5464 = vmatpush3.bf16.xpose.msk.msra.mxu0 %vm6293_vm4, %v5459_v32 }
0x1284   : > { %v3026_v31 = vpop.xlane.xlu0 %3025 }
0x1285   : > { %5877 = vrcp.f32 %v3026_v31 }
0x1288   : > { %v3152_v52 = vpop.permute.xlu0 %3151 }
0x128b   : > { %v3029_v49 = vpop.xlane.xlu1 %3028 }
0x128c   : > { %5879 = vrcp.f32 %v3029_v49  ;;  %v3156_v17 = vpop.permute.xlu0 %3155 }
0x128f   : > { %v5878_v62 = vpop.eup %5877  ;;  %v3154_v21 = vpop.permute.xlu1 %3153 }
0x1290   : > { %v3036_v6 = vmul.f32 %v5878_v62, %v6950_v60 }
0x1292   : > { %5115 = vmatprep.mubr.msk.f32.mxu0 %vm926_vm5, %v3036_v6 }
0x1293   : > { %v3158_v19 = vpop.permute.xlu1 %3157 }
0x1296   : > { %v5880_v25 = vpop.eup %5879 }
0x1297   : > { %v3037_v14 = vmul.f32 %v5880_v25, %v6954_v34 }
0x1299   : > { %5116 = vmatmul.mubr.msk.f32.gmra.mrb[38].mxu0 %vm926_vm5, %v3037_v14 }
0x129a   : > { %5126 = vmatprep.mubr.msk.f32.mxu0 %vm816_vm3, %v3152_v52 }
0x129d   : > { %5127 = vmatmul.mubr.msk.f32.vlgmr.msra.gmra.mrb[40].mxu0 %vm816_vm3, %v3154_v21 }
0x129e   : > { %5129 = vmatprep.mubr.msk.f32.mxu0 %vm816_vm3, %v3156_v17 }
0x12a1   : > { %5130 = vmatmul.mubr.msk.f32.gmra.mrb[42].mxu0 %vm816_vm3, %v3158_v19 }
0x1321   : > { %v6990_v60 = vpop.f32.mrb[32].mxu0 }
0x1322   : > { %v6992_v63 = vpop.f32.mrb[33].mxu0 }
0x1329   : > { %v6994_v0 = vpop.f32.mrb[34].mxu0 }
0x132a   : > { %v6996_v34 = vpop.f32.mrb[35].mxu0 }
0x1333   : > { %v6998_v8 = vpop.f32.mrb[36].mxu0 }
0x1334   : > { %v7000_v38 = vpop.f32.mrb[37].mxu0 }
0x136c   : > { %v7002_v11 = vpop.f32.mrb[38].mxu0 }
0x136d   : > { %v7004_v13 = vpop.f32.mrb[39].mxu0 }
0x1370   : > { %v5128_v27 = vpop.f32.mrb[40].mxu0 }
0x1371   : > { %v3269_v15 = vmul.f32 0.25, %v5128_v27  ;;  %v3249_v29 = vpop.f32.mrb[41].mxu0 }
0x1372   : > { %v3268_v36 = vmul.f32 0.25, %v3249_v29 }
0x1373   : > { %v3273_v16 = vadd.f32 %v6903_v30, %v3269_v15 }
0x1374   : > { %v3272_v33 = vadd.f32 %v6907_v7, %v3268_v36  ;;  %v5131_v55 = vpop.f32.mrb[42].mxu0 }
0x1375   : > { %v3259_v22 = vpop.f32.mrb[43].mxu0  ;;  %v3279_v23 = vsel %vm926_vm5, %v3273_v16, -inf  ;;  %v3271_v9 = vmul.f32 0.25, %v5131_v55 }
0x1376   : > { %v3270_v24 = vmul.f32 0.25, %v3259_v22  ;;  %3280 = vmax.xlane.f32.xlu1 %v3279_v23  ;;  %v3276_v28 = vsel %vm926_vm5, %v3272_v33, -inf }
0x1377   : > { %3277 = vmax.xlane.f32.xlu0 %v3276_v28  ;;  %v3275_v18 = vadd.f32 %v6913_v47, %v3271_v9 }
0x1378   : > { %v3274_v20 = vadd.f32 %v6918_v5, %v3270_v24 }
0x1379   : > { %v3285_v35 = vsel %vm926_vm5, %v3275_v18, -inf }
0x137a   : > { %v3282_v58 = vsel %vm926_vm5, %v3274_v20, -inf }
0x137b   : > { %3283 = vmax.xlane.f32.xlu0 %v3282_v58 }
0x137f   : > { %3286 = vmax.xlane.f32.xlu0 %v3285_v35 }
0x1403   : > { %v3281_v40 = vpop.xlane.xlu1 %3280 }
0x1404   : > { %v3289_v2 = vsub.f32 %v3273_v16, %v3281_v40  ;;  %v3278_v43 = vpop.xlane.xlu0 %3277 }
0x1405   : > { %v3288_v45 = vsub.f32 %v3272_v33, %v3278_v43 }
0x1406   : > { %v3294_v42 = vmul.f32 1.442695, %v3289_v2 }
0x1407   : > { %v3292_v3 = vmul.f32 1.442695, %v3288_v45 }
0x1408   : > { %5881 = vpow2.f32 %v3294_v42  ;;  %v3284_v32 = vpop.xlane.xlu0 %3283 }
0x1409   : > { %5883 = vpow2.f32 %v3292_v3  ;;  %v3290_v31 = vsub.f32 %v3274_v20, %v3284_v32 }
0x140b   : > { %v3296_v49 = vmul.f32 1.442695, %v3290_v31 }
0x140c   : > { %v3287_v62 = vpop.xlane.xlu0 %3286 }
0x140d   : > { %v3291_v6 = vsub.f32 %v3275_v18, %v3287_v62  ;;  %5885 = vpow2.f32 %v3296_v49 }
0x140f   : > { %v3298_v25 = vmul.f32 1.442695, %v3291_v6 }
0x1411   : > { %5887 = vpow2.f32 %v3298_v25 }
0x1412   : > { %v5882_v46 = vpop.eup %5881 }
0x1413   : > { %v5884_v48 = vpop.eup %5883  ;;  %v3303_v57 = vsel %vm926_vm5, %v5882_v46, 0.0 }
0x1414   : > { %3304 = vadd.xlane.f32.xlu1 %v3303_v57  ;;  %v3300_v1 = vsel %vm926_vm5, %v5884_v48, 0.0 }
0x1415   : > { %3301 = vadd.xlane.f32.xlu0 %v3300_v1 }
0x1417   : > { %v5886_v52 = vpop.eup %5885 }
0x1418   : > { %v3306_v14 = vsel %vm926_vm5, %v5886_v52, 0.0 }
0x141b   : > { %v5888_v21 = vpop.eup %5887 }
0x1425   : > { %5721 = vrot.lane.b32.xlu1 %v6862_v54, %s7393_s28 }
0x1429   : > { %5726 = vrot.lane.b32.xlu1 %v6846_v4, %s7394_s29  ;;  %v3309_v4 = vsel %vm926_vm5, %v5888_v21, 0.0 }
0x142b   : > { %5716 = vrot.lane.b32.xlu0 %v6848_v12, %s7393_s28 }
0x142d   : > { %5731 = vrot.lane.b32.xlu1 %v6860_v61, %s7394_s29 }
0x144a   : > { %3307 = vadd.xlane.f32.xlu0 %v3306_v14 }
0x1451   : > { %3310 = vadd.xlane.f32.xlu1 %v3309_v4 }
0x1460   : > { %3429 = vrot.lane.b32.xlu0 %v6838_v39, %s7395_s21 }
0x1462   : > { %3431 = vrot.lane.b32.xlu1 %v6842_v26, %s7395_s21 }
0x1464   : > { %3433 = vrot.lane.b32.xlu0 %v6852_v56, %s7395_s21 }
0x1466   : > { %3435 = vrot.lane.b32.xlu1 %v6856_v53, %s7395_s21 }
0x14a1   : > { %v3305_v61 = vpop.xlane.xlu1 %3304 }
0x14a2   : > { %v3302_v17 = vpop.xlane.xlu0 %3301 }
0x14a3   : > { %5889 = vrcp.f32 %v3302_v17 }
0x14a4   : > { %5891 = vrcp.f32 %v3305_v61 }
0x14a5   : > { %v5722_v19 = vpop.permute.xlu1 %5721 }
0x14a6   : > { %v5717_v27 = vpop.permute.xlu0 %5716  ;;  %v5724_v15 = vunpack.i.h.bf16 %v5722_v19  ;;  %v5723_v29 = vunpack.i.l.bf16 %v5722_v19 }
0x14a7   : > { %v5719_v36 = vunpack.i.h.bf16 %v5717_v27  ;;  %v5718_v16 = vunpack.i.l.bf16 %v5717_v27 }
0x14a8   : > { %v5469_v55 = vpack.c.bf16 %v5724_v15, %v5723_v29 }
0x14a9   : > { %v5465_v39 = vpack.c.bf16 %v5719_v36, %v5718_v16  ;;  %v5727_v33 = vpop.permute.xlu1 %5726 }
0x14aa   : > { %v5729_v26 = vunpack.i.h.bf16 %v5727_v33  ;;  %v5728_v22 = vunpack.i.l.bf16 %v5727_v33 }
0x14ab   : > { %5466 = vmatprep.subr.bf16.mxu1 %v5465_v39 }
0x14ac   : > { %5468 = vmatpush3.bf16.msra.mxu1 %v5465_v39  ;;  %v5473_v9 = vpack.c.bf16 %v5729_v26, %v5728_v22 }
0x14ad   : > { %v5890_v56 = vpop.eup %5889  ;;  %5470 = vmatprep.subr.bf16.mxu1 %v5469_v55  ;;  %v5732_v28 = vpop.permute.xlu1 %5731 }
0x14ae   : > { %v5892_v53 = vpop.eup %5891  ;;  %v3316_v23 = vmul.f32 %v5890_v56, %v5884_v48  ;;  %v5734_v20 = vunpack.i.h.bf16 %v5732_v28  ;;  %v5733_v18 = vunpack.i.l.bf16 %v5732_v28 }
0x14af   : > { %v3317_v24 = vmul.f32 %v5892_v53, %v5882_v46 }
0x14b0   : > { %5472 = vmatpush3.bf16.msra.mxu1 %v5469_v55  ;;  %5140 = vmatprep.mubr.msk.f32.mxu1 %vm926_vm5, %v3316_v23  ;;  %v5479_v58 = vpack.c.bf16 %v5734_v20, %v5733_v18 }
0x14b1   : > { %5475 = vmatprep.subr.msk.bf16.mxu1 %vm6293_vm4, %v5473_v9 }
0x14b3   : > { %5141 = vmatmul.mubr.msk.f32.vlgmr.msra.gmra.mrb[40].mxu1 %vm926_vm5, %v3317_v24 }
0x14b9   : > { %5478 = vmatpush3.bf16.xpose.msk.msra.mxu1 %vm6293_vm4, %v5473_v9 }
0x14ba   : > { %5481 = vmatprep.subr.msk.bf16.mxu1 %vm6293_vm4, %v5479_v58 }
0x14c1   : > { %5484 = vmatpush3.bf16.xpose.msk.msra.mxu1 %vm6293_vm4, %v5479_v58 }
0x14d7   : > { %v3308_v35 = vpop.xlane.xlu0 %3307 }
0x14d8   : > { %5893 = vrcp.f32 %v3308_v35 }
0x14db   : > { %v3430_v42 = vpop.permute.xlu0 %3429 }
0x14de   : > { %v3311_v40 = vpop.xlane.xlu1 %3310 }
0x14df   : > { %5895 = vrcp.f32 %v3311_v40  ;;  %v3434_v48 = vpop.permute.xlu0 %3433 }
0x14e2   : > { %v5894_v2 = vpop.eup %5893  ;;  %v3432_v46 = vpop.permute.xlu1 %3431 }
0x14e3   : > { %v3318_v43 = vmul.f32 %v5894_v2, %v5886_v52 }
0x14e5   : > { %5143 = vmatprep.mubr.msk.f32.mxu1 %vm926_vm5, %v3318_v43 }
0x14e6   : > { %v3436_v44 = vpop.permute.xlu1 %3435 }
0x14e9   : > { %v5896_v45 = vpop.eup %5895 }
0x14ea   : > { %v3319_v3 = vmul.f32 %v5896_v45, %v5888_v21 }
0x14ec   : > { %5144 = vmatmul.mubr.msk.f32.gmra.mrb[42].mxu1 %vm926_vm5, %v3319_v3 }
0x14ed   : > { %5154 = vmatprep.mubr.msk.f32.mxu1 %vm816_vm3, %v3430_v42 }
0x14f0   : > { %5155 = vmatmul.mubr.msk.f32.vlgmr.msra.gmra.mrb[44].mxu1 %vm816_vm3, %v3432_v46 }
0x14f1   : > { %5157 = vmatprep.mubr.msk.f32.mxu1 %vm816_vm3, %v3434_v48 }
0x14f4   : > { %5158 = vmatmul.mubr.msk.f32.gmra.mrb[46].mxu1 %vm816_vm3, %v3436_v44 }
0x14f5   : > { %4027 = vmatprep.mubr.f32.mxu1 %v6019_v59 }
0x1586   : > { %v5142_v57 = vpop.f32.mrb[40].mxu1 }
0x1587   : > { %v3410_v1 = vpop.f32.mrb[41].mxu1 }
0x15bf   : > { %v5145_v32 = vpop.f32.mrb[42].mxu1 }
0x15c0   : > { %v3420_v31 = vpop.f32.mrb[43].mxu1 }
0x15c3   : > { %v5156_v49 = vpop.f32.mrb[44].mxu1 }
0x15c4   : > { %v3547_v62 = vmul.f32 0.25, %v5156_v49  ;;  %v3527_v6 = vpop.f32.mrb[45].mxu1 }
0x15c5   : > { %v3546_v25 = vmul.f32 0.25, %v3527_v6  ;;  %v4633_v6 = vld [vmem:[%s7364_s7 + $0x40] sm:$0xff] }
0x15c6   : > { %v3551_v52 = vadd.f32 %v6903_v30, %v3547_v62 }
0x15c7   : > { %v3550_v14 = vadd.f32 %v6907_v7, %v3546_v25  ;;  %v5159_v21 = vpop.f32.mrb[46].mxu1  ;;  %v4634_v25 = vld [vmem:[%s7364_s7 + $0x48] sm:$0xff] }
0x15c8   : > { %v3537_v4 = vpop.f32.mrb[47].mxu1  ;;  %v3557_v61 = vsel %vm926_vm5, %v3551_v52, -inf  ;;  %v3549_v17 = vmul.f32 0.25, %v5159_v21  ;;  %v4636_v21 = vld [vmem:[%s7364_s7 + $0x58] sm:$0xff] }
0x15c9   : > { %v3548_v19 = vmul.f32 0.25, %v3537_v4  ;;  %3558 = vmax.xlane.f32.xlu1 %v3557_v61  ;;  %v3554_v27 = vsel %vm926_vm5, %v3550_v14, -inf  ;;  %v4637_v61 = vld [vmem:[%s7364_s7 + $0x60] sm:$0xff] }
0x15ca   : > { %3555 = vmax.xlane.f32.xlu0 %v3554_v27  ;;  %v3553_v29 = vadd.f32 %v6913_v47, %v3549_v17  ;;  %v4638_v17 = vld [vmem:[%s7364_s7 + $0x68] sm:$0xff]  ;;  %v4639_v27 = vld [vmem:[%s7364_s7 + $0x70] sm:$0xff] }
0x15cb   : > { %v3552_v15 = vadd.f32 %v6918_v5, %v3548_v19  ;;  %v5501_v19 = vpack.c.bf16 %v4638_v17, %v4637_v61  ;;  %v5961_v61 = vld [vmem:[%s7361_s4 + $0x10] sm:$0xff] }
0x15cc   : > { %v3563_v30 = vsel %vm926_vm5, %v3553_v29, -inf }
0x15cd   : > { %v3560_v36 = vsel %vm926_vm5, %v3552_v15, -inf }
0x15ce   : > { %3561 = vmax.xlane.f32.xlu0 %v3560_v36 }
0x15d2   : > { %3564 = vmax.xlane.f32.xlu0 %v3563_v30 }
0x1656   : > { %v3559_v7 = vpop.xlane.xlu1 %3558 }
0x1657   : > { %v3567_v16 = vsub.f32 %v3551_v52, %v3559_v7  ;;  %v3556_v39 = vpop.xlane.xlu0 %3555  ;;  %v4635_v52 = vld [vmem:[%s7364_s7 + $0x50] sm:$0xff] }
0x1658   : > { %v3566_v33 = vsub.f32 %v3550_v14, %v3556_v39  ;;  %v5493_v14 = vpack.c.bf16 %v4634_v25, %v4633_v6  ;;  %v5497_v4 = vpack.c.bf16 %v4636_v21, %v4635_v52 }
0x1659   : > { %v3572_v55 = vmul.f32 1.442695, %v3567_v16 }
0x165a   : > { %v3570_v26 = vmul.f32 1.442695, %v3566_v33 }
0x165b   : > { %5897 = vpow2.f32 %v3572_v55  ;;  %v3562_v22 = vpop.xlane.xlu0 %3561 }
0x165c   : > { %5899 = vpow2.f32 %v3570_v26  ;;  %v3568_v56 = vsub.f32 %v3552_v15, %v3562_v22  ;;  %v4640_v15 = vld [vmem:[%s7364_s7 + $0x78] sm:$0xff] }
0x165e   : > { %v3574_v53 = vmul.f32 1.442695, %v3568_v56 }
0x165f   : > { %v3565_v5 = vpop.xlane.xlu0 %3564 }
0x1660   : > { %5901 = vpow2.f32 %v3574_v53  ;;  %v3569_v47 = vsub.f32 %v3553_v29, %v3565_v5  ;;  %v5505_v29 = vpack.c.bf16 %v4640_v15, %v4639_v27 }
0x1662   : > { %v3576_v23 = vmul.f32 1.442695, %v3569_v47 }
0x1664   : > { %5903 = vpow2.f32 %v3576_v23 }
0x1665   : > { %v5898_v9 = vpop.eup %5897 }
0x1666   : > { %v5900_v24 = vpop.eup %5899  ;;  %v3581_v28 = vsel %vm926_vm5, %v5898_v9, 0.0 }
0x1667   : > { %3582 = vadd.xlane.f32.xlu1 %v3581_v28  ;;  %v3578_v20 = vsel %vm926_vm5, %v5900_v24, 0.0 }
0x1668   : > { %3579 = vadd.xlane.f32.xlu0 %v3578_v20 }
0x166a   : > { %v5902_v18 = vpop.eup %5901 }
0x166b   : > { %v3584_v58 = vsel %vm926_vm5, %v5902_v18, 0.0 }
0x166c   : > { %3585 = vadd.xlane.f32.xlu0 %v3584_v58 }
0x166e   : > { %v5904_v35 = vpop.eup %5903 }
0x166f   : > { %v3587_v40 = vsel %vm926_vm5, %v5904_v35, 0.0 }
0x1670   : > { %3588 = vadd.xlane.f32.xlu1 %v3587_v40 }
0x1681   : > { %5741 = vrot.lane.b32.xlu1 %v6862_v54, %s7395_s21 }
0x1682   : > { %5736 = vrot.lane.b32.xlu0 %v6848_v12, %s7395_s21 }
0x1685   : > { %3711 = vrot.lane.b32.xlu1 %v7000_v38, %s7394_s29 }
0x1686   : > { %3727 = vrot.lane.b32.xlu0 %v3410_v1, %s7392_s22 }
0x1689   : > { %3713 = vrot.lane.b32.xlu1 %v6998_v8, %s7394_s29 }
0x168a   : > { %3715 = vrot.lane.b32.xlu0 %v7004_v13, %s7394_s29 }
0x168d   : > { %3729 = vrot.lane.b32.xlu1 %v5142_v57, %s7392_s22 }
0x168e   : > { %3731 = vrot.lane.b32.xlu0 %v3420_v31, %s7392_s22 }
0x1691   : > { %3717 = vrot.lane.b32.xlu1 %v7002_v11, %s7394_s29 }
0x1695   : > { %3733 = vrot.lane.b32.xlu1 %v5145_v32, %s7392_s22 }
0x16f4   : > { %v3583_v54 = vpop.xlane.xlu1 %3582 }
0x16f5   : > { %v3580_v12 = vpop.xlane.xlu0 %3579 }
0x16f6   : > { %5905 = vrcp.f32 %v3580_v12 }
0x16f7   : > { %5907 = vrcp.f32 %v3583_v54 }
0x16f9   : > { %v3586_v38 = vpop.xlane.xlu0 %3585 }
0x16fa   : > { %5909 = vrcp.f32 %v3586_v38 }
0x16fd   : > { %v3589_v2 = vpop.xlane.xlu1 %3588  ;;  %v5737_v8 = vpop.permute.xlu0 %5736 }
0x16fe   : > { %v5739_v43 = vunpack.i.h.bf16 %v5737_v8  ;;  %v5738_v45 = vunpack.i.l.bf16 %v5737_v8  ;;  %5911 = vrcp.f32 %v3589_v2 }
0x1700   : > { %v5906_v13 = vpop.eup %5905  ;;  %v5485_v42 = vpack.c.bf16 %v5739_v43, %v5738_v45 }
0x1701   : > { %v5742_v3 = vpop.permute.xlu1 %5741  ;;  %v3594_v46 = vmul.f32 %v5906_v13, %v5900_v24  ;;  %v5908_v57 = vpop.eup %5907 }
0x1702   : > { %v5744_v48 = vunpack.i.h.bf16 %v5742_v3  ;;  %v5743_v44 = vunpack.i.l.bf16 %v5742_v3  ;;  %5486 = vmatprep.subr.bf16.mxu0 %v5485_v42  ;;  %v3595_v32 = vmul.f32 %v5908_v57, %v5898_v9  ;;  %v3728_v26 = vpop.permute.xlu0 %3727 }
0x1703   : > { %5488 = vmatpush3.bf16.msra.mxu0 %v5485_v42  ;;  %5168 = vmatprep.mubr.msk.f32.mxu0 %vm926_vm5, %v3594_v46 }
0x1704   : > { %v5489_v11 = vpack.c.bf16 %v5744_v48, %v5743_v44  ;;  %v5910_v1 = vpop.eup %5909 }
0x1705   : > { %v3596_v49 = vmul.f32 %v5910_v1, %v5902_v18  ;;  %v3712_v39 = vpop.permute.xlu1 %3711 }
0x1706   : > { %5490 = vmatprep.subr.bf16.mxu0 %v5489_v11  ;;  %v3716_v56 = vpop.permute.xlu0 %3715  ;;  %v3755_v47 = vsel %vm816_vm3, %v6992_v63, %v3712_v39 }
0x1707   : > { %5492 = vmatpush3.bf16.msra.mxu0 %v5489_v11  ;;  %v3759_v24 = vsel %vm926_vm5, %v3755_v47, %v3728_v26  ;;  %v4646_v47 = vld [vmem:[%s7366_s9 + $0x60] sm:$0xff] }
0x1708   : > { %v5912_v31 = vpop.eup %5911  ;;  %5494 = vmatprep.subr.bf16.mxu0 %v5493_v14 }
0x1709   : > { %v3597_v62 = vmul.f32 %v5912_v31, %v5904_v35  ;;  %v3714_v33 = vpop.permute.xlu1 %3713  ;;  %v3757_v35 = vsel %vm816_vm3, %v6996_v34, %v3716_v56  ;;  %v5958_v31 = vld [vmem:[%s7360_s3] sm:$0xff]  ;;  %v4647_v56 = vld [vmem:[%s7366_s9 + $0x68] sm:$0xff] }
0x170a   : > { %5169 = vmatmul.mubr.msk.f32.vlgmr.msra.gmra.mrb[44].mxu0 %vm926_vm5, %v3595_v32  ;;  %v3732_v5 = vpop.permute.xlu0 %3731  ;;  %v3756_v9 = vsel %vm816_vm3, %v6990_v60, %v3714_v33 }
0x170b   : > { %5171 = vmatprep.mubr.msk.f32.mxu0 %vm926_vm5, %v3596_v49  ;;  %5496 = vmatpush3.bf16.msra.mxu0 %v5493_v14  ;;  %v3761_v40 = vsel %vm926_vm5, %v3757_v35, %v3732_v5  ;;  %v5960_v14 = vld [vmem:[%s7360_s3 + $0x10] sm:$0xff] }
0x170c   : > { %5498 = vmatprep.subr.bf16.mxu0 %v5497_v4 }
0x170d   : > { %v3730_v55 = vpop.permute.xlu1 %3729 }
0x170e   : > { %5172 = vmatmul.mubr.msk.f32.gmra.mrb[46].mxu0 %vm926_vm5, %v3597_v62  ;;  %v3760_v20 = vsel %vm926_vm5, %v3756_v9, %v3730_v55  ;;  %v5959_v62 = vld [vmem:[%s7361_s4] sm:$0xff] }
0x170f   : > { %5500 = vmatpush3.bf16.msra.mxu0 %v5497_v4 }
0x1710   : > { %5502 = vmatprep.subr.bf16.mxu0 %v5501_v19 }
0x1711   : > { %v3718_v22 = vpop.permute.xlu1 %3717 }
0x1712   : > { %v3758_v60 = vsel %vm816_vm3, %v6994_v0, %v3718_v22 }
0x1713   : > { %5504 = vmatpush3.bf16.msra.mxu0 %v5501_v19 }
0x1714   : > { %5506 = vmatprep.subr.bf16.mxu0 %v5505_v29 }
0x1715   : > { %v3734_v53 = vpop.permute.xlu1 %3733 }
0x1716   : > { %v3762_v54 = vsel %vm926_vm5, %v3758_v60, %v3734_v53  ;;  %v4649_v53 = vld [vmem:[%s7366_s9 + $0x78] sm:$0xff] }
0x1717   : > { %5508 = vmatpush3.bf16.msra.mxu0 %v5505_v29  ;;  %v5509_v5 = vpack.c.bf16 %v4649_v53, %v4647_v56 }
0x1719   : > { %5510 = vmatprep.subr.bf16.mxu1 %v5509_v5 }
0x17dd   : > { %v5170_v36 = vpop.f32.mrb[44].mxu0 }
0x17de   : > { %3745 = vrot.lane.b32.xlu1 %v5170_v36, %s6020_s25  ;;  %v3688_v30 = vpop.f32.mrb[45].mxu0  ;;  %v5963_v36 = vld [vmem:[%s7360_s3 + $0x18] sm:$0xff] }
0x17df   : > { %3743 = vrot.lane.b32.xlu0 %v3688_v30, %s6020_s25 }
0x17e1   : > { %v5173_v7 = vpop.f32.mrb[46].mxu0 }
0x17e2   : > { %3749 = vrot.lane.b32.xlu1 %v5173_v7, %s6020_s25  ;;  %v3698_v16 = vpop.f32.mrb[47].mxu0 }
0x17e3   : > { %3747 = vrot.lane.b32.xlu0 %v3698_v16, %s6020_s25  ;;  %s7396_s25 = sadd.s32 4294967295, %s6016_s23  }
0x17e4   : > { %p7317_p6 = scmp.eq.s32.totalorder %s7396_s25, 1 }
0x17e6   : > { %p5966_p8 = pnand %p5965_p7, %p7317_p6 }
0x17e8   : > { %p5967_p9 = pneg %p5966_p8 }
0x17ea   : > { %p5974_p13 = pnand %p5973_p12, %p5967_p9 }
0x1850   : > { %v3746_v23 = vpop.permute.xlu1 %3745 }
0x1851   : > { %v3744_v28 = vpop.permute.xlu0 %3743  ;;  %v3764_v58 = vsel %vm654_vm2, %v3760_v20, %v3746_v23  ;;  %v4648_v23 = vld [vmem:[%s7366_s9 + $0x70] sm:$0xff] }
0x1852   : > { %v3763_v18 = vsel %vm654_vm2, %v3759_v24, %v3744_v28  ;;  %v5511_v9 = vpack.c.bf16 %v4648_v23, %v4646_v47  ;;  %v4651_v24 = vld [vmem:[%s7366_s9 + $0x88] sm:$0xff]  ;;  %v4653_v28 = vld [vmem:[%s7366_s9 + $0x98] sm:$0xff] }
0x1853   : > { %5190 = vmatprep.mubr.msk.f32.mxu0 %vm1974_vm6, %v3763_v18  ;;  %v5513_v20 = vpack.c.bf16 %v4653_v28, %v4651_v24  ;;  %v4650_v18 = vld [vmem:[%s7366_s9 + $0x80] sm:$0xff] }
0x1854   : > { %5191 = vmatmul.mubr.msk.f32.vlgmr.msra.gmra.mrb[48].mxu0 %vm1974_vm6, %v3764_v58  ;;  %v3750_v63 = vpop.permute.xlu1 %3749  ;;  %5512 = vmatpush1.bf16.msra.mxu1 %v5511_v9  ;;  %v4652_v58 = vld [vmem:[%s7366_s9 + $0x90] sm:$0xff] }
0x1855   : > { %v3748_v12 = vpop.permute.xlu0 %3747  ;;  %v3766_v2 = vsel %vm654_vm2, %v3762_v54, %v3750_v63  ;;  %v5515_v35 = vpack.c.bf16 %v4652_v58, %v4650_v18  ;;  %5514 = vmatprep.subr.bf16.mxu1 %v5513_v20  ;;  %v4655_v63 = vld [vmem:[%s7366_s9 + $0xa8] sm:$0xff]  ;;  %v4656_v54 = vld [vmem:[%s7366_s9 + $0xb0] sm:$0xff] }
0x1856   : > { %v3765_v38 = vsel %vm654_vm2, %v3761_v40, %v3748_v12  ;;  %v4657_v40 = vld [vmem:[%s7366_s9 + $0xb8] sm:$0xff]  ;;  %v4654_v12 = vld [vmem:[%s7366_s9 + $0xa0] sm:$0xff] }
0x1857   : > { %5193 = vmatprep.mubr.msk.f32.mxu0 %vm1974_vm6, %v3765_v38  ;;  %v5517_v60 = vpack.c.bf16 %v4657_v40, %v4655_v63  ;;  %v5519_v38 = vpack.c.bf16 %v4656_v54, %v4654_v12 }
0x1858   : > { %5194 = vmatmul.mubr.msk.f32.gmra.mrb[50].mxu0 %vm1974_vm6, %v3766_v2  ;;  %5516 = vmatpush1.bf16.msra.mxu1 %v5515_v35 }
0x1859   : > { %5518 = vmatprep.subr.bf16.mxu1 %v5517_v60 }
0x185c   : > { %5520 = vmatpush1.bf16.msra.mxu1 %v5519_v38 }
0x1927   : > { %v5192_v34 = vpop.f32.mrb[48].mxu0 }
0x1928   : > { %v7132_v8 = vadd.f32 %v5192_v34, %v6748_v37  ;;  %v3854_v43 = vpop.f32.mrb[49].mxu0  ;;  %v5956_v37 = vld [vmem:[%s7360_s3 + $0x8] sm:$0xff] }
0x1929   : > { %v3873_v45 = vadd.f32 %v3854_v43, %v6751_v41 }
0x192a   : > { %v3878_v0 = vrot.slane %v7132_v8, 7  ;;  %v3886_v41 = vmul.f32 %v5956_v37, %v7132_v8 }
0x192b   : > { %v3877_v13 = vrot.slane %v3873_v45, 7  ;;  %v5195_v42 = vpop.f32.mrb[50].mxu0  ;;  %v3885_v49 = vmul.f32 %v5958_v31, %v3873_v45 }
0x192c   : > { %v7137_v3 = vadd.f32 %v5195_v42, %v6761_v50  ;;  %v3864_v46 = vpop.f32.mrb[51].mxu0  ;;  %v5957_v50 = vld [vmem:[%s7361_s4 + $0x8] sm:$0xff] }
0x192d   : > { %v3883_v48 = vsel %vm632_vm1, %v3877_v13, %v3878_v0  ;;  %v7142_v44 = vadd.f32 %v3864_v46, %v6766_v51 }
0x192e   : > { %v3880_v11 = vrot.slane %v7137_v3, 7  ;;  %v3890_v57 = vmul.f32 %v5957_v50, %v3883_v48  ;;  %v3888_v30 = vmul.f32 %v5963_v36, %v7137_v3 }
0x192f   : > { %v3879_v1 = vrot.slane %v7142_v44, 7  ;;  %v3887_v21 = vmul.f32 %v5960_v14, %v7142_v44 }
0x1930   : > { %v7153_v32 = vadd.f32 %v3890_v57, %v3886_v41  ;;  %v3884_v51 = vsel %vm632_vm1, %v3880_v11, %v3877_v13 }
0x1931   : > { %v3889_v6 = vmul.f32 %v5959_v62, %v3884_v51  ;;  %v3882_v25 = vsel %vm632_vm1, %v3878_v0, %v3879_v1  ;;  %v3881_v52 = vsel %vm632_vm1, %v3879_v1, %v3880_v11  ;;  %v4645_v1 = vld [vmem:[%s7365_s8 + $0x1] ss:$0 sm:$0xff] }
0x1932   : > { %v3899_v4 = vmul.f32 %v7153_v32, %v7153_v32  ;;  %v3891_v17 = vmul.f32 %v5961_v61, %v3882_v25  ;;  %v3892_v27 = vmul.f32 %v5962_v10, %v3881_v52  ;;  %v4664_v61 = vld [vmem:[%s7368_s11 + $0x88] sm:$0xff] }
0x1933   : > { %v3893_v19 = vadd.f32 %v3889_v6, %v3885_v49 }
0x1934   : > { %v3905_v15 = vsel %vm654_vm2, %v3899_v4, 0.0  ;;  %v3895_v29 = vadd.f32 %v3891_v17, %v3887_v21  ;;  %v3896_v33 = vadd.f32 %v3892_v27, %v3888_v30  ;;  %v4663_v4 = vld [vmem:[%s7368_s11 + $0x80] sm:$0xff]  ;;  %v4665_v17 = vld [vmem:[%s7368_s11 + $0x90] sm:$0xff] }
0x1935   : > { %3906 = vadd.xlane.f32.xlu1 %v3905_v15  ;;  %v3898_v7 = vmul.f32 %v3893_v19, %v3893_v19  ;;  %v4667_v27 = vld [vmem:[%s7368_s11 + $0xa0] sm:$0xff]  ;;  %v4668_v15 = vld [vmem:[%s7368_s11 + $0xa8] sm:$0xff] }
0x1936   : > { %v3900_v39 = vmul.f32 %v3895_v29, %v3895_v29  ;;  %v3901_v26 = vmul.f32 %v3896_v33, %v3896_v33 }
0x1937   : > { %v3902_v16 = vsel %vm654_vm2, %v3898_v7, 0.0 }
0x1938   : > { %3903 = vadd.xlane.f32.xlu0 %v3902_v16  ;;  %v3908_v55 = vsel %vm654_vm2, %v3900_v39, 0.0  ;;  %v3911_v22 = vsel %vm654_vm2, %v3901_v26, 0.0 }
0x193c   : > { %3909 = vadd.xlane.f32.xlu0 %v3908_v55 }
0x1940   : > { %3912 = vadd.xlane.f32.xlu0 %v3911_v22 }
0x19c2   : > { %v3907_v2 = vpop.xlane.xlu1 %3906 }
0x19c3   : > { %v3915_v34 = vmax.f32 %v3907_v2, 1e-24 }
0x19c5   : > { %v3904_v43 = vpop.xlane.xlu0 %3903  ;;  %5913 = vrsqrt.f32 %v3915_v34 }
0x19c6   : > { %v3914_v45 = vmax.f32 %v3904_v43, 1e-24 }
0x19c8   : > { %5915 = vrsqrt.f32 %v3914_v45 }
0x19c9   : > { %v3910_v0 = vpop.xlane.xlu0 %3909 }
0x19ca   : > { %v3916_v13 = vmax.f32 %v3910_v0, 1e-24 }
0x19cc   : > { %5917 = vrsqrt.f32 %v3916_v13 }
0x19cd   : > { %v3913_v42 = vpop.xlane.xlu0 %3912 }
0x19ce   : > { %v3917_v46 = vmax.f32 %v3913_v42, 1e-24 }
0x19cf   : > { %v5914_v48 = vpop.eup %5913 }
0x19d0   : > { %5919 = vrsqrt.f32 %v3917_v46  ;;  %v3923_v11 = vmul.f32 %v5914_v48, %v7153_v32 }
0x19d2   : > { %v5916_v37 = vpop.eup %5915  ;;  %v3927_v31 = vmul.f32 6.928203, %v3923_v11 }
0x19d3   : > { %v3922_v41 = vmul.f32 %v5916_v37, %v3893_v19  ;;  %v5521_v19 = vpack.c.bf16 %v4664_v61, %v4663_v4  ;;  %v4669_v4 = vld [vmem:[%s7368_s11 + $0xb0] sm:$0xff]  ;;  %v4670_v61 = vld [vmem:[%s7368_s11 + $0xb8] sm:$0xff] }
0x19d4   : > { %v3935_v6 = vmul.f32 %v4645_v1, %v3927_v31 }
0x19d5   : > { %v3926_v50 = vmul.f32 6.928203, %v3922_v41  ;;  %5522 = vmatprep.subr.bf16.mxu1 %v5521_v19 }
0x19d6   : > { %v5918_v57 = vpop.eup %5917 }
0x19d7   : > { %v3934_v51 = vmul.f32 %v4645_v1, %v3926_v50  ;;  %v3924_v49 = vmul.f32 %v5918_v57, %v3895_v29  ;;  %v5529_v29 = vpack.c.bf16 %v4668_v15, %v4667_v27  ;;  %v4673_v27 = vld [vmem:[%s7368_s11 + $0xd0] sm:$0xff]  ;;  %v4674_v15 = vld [vmem:[%s7368_s11 + $0xd8] sm:$0xff] }
0x19d9   : > { %4658 = vmatmul.mubr.msk.f32.vlgmr.msra.gmra.mrb[48].mxu1 %vm654_vm2, %v3934_v51  ;;  %v3928_v25 = vmul.f32 6.928203, %v3924_v49 }
0x19da   : > { %v5920_v62 = vpop.eup %5919  ;;  %4033 = vmatprep.mubr.f32.mxu1 %v6019_v59  ;;  %5524 = vmatpush3.bf16.msra.mxu1 %v5521_v19  ;;  %v4671_v19 = vld [vmem:[%s7368_s11 + $0xc0] sm:$0xff] }
0x19db   : > { %v3925_v52 = vmul.f32 %v5920_v62, %v3896_v33  ;;  %v3936_v32 = vmul.f32 %v4645_v1, %v3928_v25 }
0x19dd   : > { %4659 = vmatmul.mubr.msk.f32.gmra.mrb[50].mxu1 %vm654_vm2, %v3935_v6  ;;  %v3929_v14 = vmul.f32 6.928203, %v3925_v52 }
0x19de   : > { %4039 = vmatprep.mubr.f32.mxu1 %v6019_v59 }
0x19df   : > { %v3937_v21 = vmul.f32 %v4645_v1, %v3929_v14 }
0x19e1   : > { %4660 = vmatmul.mubr.msk.f32.gmra.mrb[52].mxu1 %vm654_vm2, %v3936_v32 }
0x19e2   : > { %4045 = vmatprep.mubr.f32.mxu1 %v6019_v59  ;;  %v4666_v59 = vld [vmem:[%s7368_s11 + $0x98] sm:$0xff] }
0x19e3   : > { %v5525_v10 = vpack.c.bf16 %v4666_v59, %v4665_v17  ;;  %v5533_v17 = vpack.c.bf16 %v4670_v61, %v4669_v4  ;;  %v4672_v59 = vld [vmem:[%s7368_s11 + $0xc8] sm:$0xff] }
0x19e5   : > { %4661 = vmatmul.mubr.msk.f32.gmra.mrb[54].mxu1 %vm654_vm2, %v3937_v21  ;;  %5526 = vmatprep.subr.bf16.mxu1 %v5525_v10 }
0x19e6   : > { %5528 = vmatpush3.bf16.msra.mxu1 %v5525_v10  ;;  %v5537_v10 = vpack.c.bf16 %v4672_v59, %v4671_v19 }
0x19e7   : > { %5530 = vmatprep.subr.bf16.mxu1 %v5529_v29 }
0x19ea   : > { %5532 = vmatpush3.bf16.msra.mxu1 %v5529_v29  ;;  %v5541_v29 = vpack.c.bf16 %v4674_v15, %v4673_v27 }
0x19eb   : > { %5534 = vmatprep.subr.bf16.mxu1 %v5533_v17 }
0x19ee   : > { %5536 = vmatpush3.bf16.msra.mxu1 %v5533_v17  ;;  %v4679_v17 = vld [vmem:[%s7369_s12] ss:$0 sm:$0xff] }
0x19ef   : > { %5538 = vmatprep.subr.bf16.mxu1 %v5537_v10 }
0x19f2   : > { %5540 = vmatpush3.bf16.msra.mxu1 %v5537_v10 }
0x19f3   : > { %5542 = vmatprep.subr.bf16.mxu1 %v5541_v29 }
0x19f6   : > { %5544 = vmatpush3.bf16.msra.mxu1 %v5541_v29 }
0x1aac   : > { %v4029_v36 = vpop.f32.mrb[48].mxu1 }
0x1aad   : > { %v4031_v30 = vpop.f32.mrb[49].mxu1 }
0x1aae   : > { %v4056_v7 = vmul.f32 0.044715, %v4031_v30  ;;  %v4052_v43 = vmul.f32 0.5, %v4031_v30 }
0x1ab0   : > { %v4060_v16 = vmul.f32 %v4056_v7, %v4031_v30  ;;  %v4035_v39 = vpop.f32.mrb[50].mxu1 }
0x1ab1   : > { %v4037_v33 = vpop.f32.mrb[51].mxu1 }
0x1ab2   : > { %v4064_v55 = vmul.f32 %v4060_v16, %v4031_v30  ;;  %v4057_v26 = vmul.f32 0.044715, %v4037_v33  ;;  %v4053_v42 = vmul.f32 0.5, %v4037_v33  ;;  %v4677_v16 = vld [vmem:[%s7368_s11 + $0xf0] sm:$0xff] }
0x1ab4   : > { %v4068_v22 = vadd.f32 %v4064_v55, %v4031_v30  ;;  %v4061_v56 = vmul.f32 %v4057_v26, %v4037_v33  ;;  %v4041_v53 = vpop.f32.mrb[52].mxu1  ;;  %v4676_v30 = vld [vmem:[%s7368_s11 + $0xe8] sm:$0xff] }
0x1ab5   : > { %v4043_v5 = vpop.f32.mrb[53].mxu1 }
0x1ab6   : > { %v4072_v47 = vmul.f32 0.7978846, %v4068_v22  ;;  %v4065_v23 = vmul.f32 %v4061_v56, %v4037_v33  ;;  %v4058_v9 = vmul.f32 0.044715, %v4043_v5  ;;  %v4054_v50 = vmul.f32 0.5, %v4043_v5 }
0x1ab8   : > { %5921 = vtanh.f32 %v4072_v47  ;;  %v4069_v24 = vadd.f32 %v4065_v23, %v4037_v33  ;;  %v4062_v28 = vmul.f32 %v4058_v9, %v4043_v5  ;;  %v4047_v20 = vpop.f32.mrb[54].mxu1 }
0x1ab9   : > { %v4049_v18 = vpop.f32.mrb[55].mxu1 }
0x1aba   : > { %v4073_v58 = vmul.f32 0.7978846, %v4069_v24  ;;  %v4066_v35 = vmul.f32 %v4062_v28, %v4043_v5  ;;  %v4059_v63 = vmul.f32 0.044715, %v4049_v18  ;;  %v4055_v62 = vmul.f32 0.5, %v4049_v18 }
0x1abb   : > { %v4662_v28 = vld [vmem:[%s7367_s10 + $0x1] ss:$0 sm:$0xff] }
0x1abc   : > { %5923 = vtanh.f32 %v4073_v58  ;;  %v4070_v40 = vadd.f32 %v4066_v35, %v4043_v5  ;;  %v4063_v60 = vmul.f32 %v4059_v63, %v4049_v18 }
0x1abe   : > { %v4074_v12 = vmul.f32 0.7978846, %v4070_v40  ;;  %v4067_v54 = vmul.f32 %v4063_v60, %v4049_v18 }
0x1ac0   : > { %5925 = vtanh.f32 %v4074_v12  ;;  %v4071_v38 = vadd.f32 %v4067_v54, %v4049_v18 }
0x1ac2   : > { %v5922_v2 = vpop.eup %5921  ;;  %v4075_v34 = vmul.f32 0.7978846, %v4071_v38 }
0x1ac3   : > { %v4080_v45 = vadd.f32 1.0, %v5922_v2 }
0x1ac4   : > { %5927 = vtanh.f32 %v4075_v34 }
0x1ac5   : > { %v4084_v0 = vmul.f32 %v4080_v45, %v4052_v43 }
0x1ac6   : > { %v5924_v13 = vpop.eup %5923 }
0x1ac7   : > { %v4088_v46 = vmul.f32 %v4084_v0, %v4029_v36  ;;  %v4081_v48 = vadd.f32 1.0, %v5924_v13  ;;  %v4675_v36 = vld [vmem:[%s7368_s11 + $0xe0] sm:$0xff] }
0x1ac8   : > { %v5545_v7 = vpack.c.bf16 %v4676_v30, %v4675_v36 }
0x1ac9   : > { %v4093_v37 = vmul.f32 %v4088_v46, %v4088_v46  ;;  %v4085_v41 = vmul.f32 %v4081_v48, %v4053_v42 }
0x1aca   : > { %v5926_v11 = vpop.eup %5925  ;;  %5546 = vmatprep.subr.bf16.mxu1 %v5545_v7 }
0x1acb   : > { %4097 = vadd.xlane.f32.xlu0 %v4093_v37  ;;  %v4089_v57 = vmul.f32 %v4085_v41, %v4035_v39  ;;  %v4082_v1 = vadd.f32 1.0, %v5926_v11  ;;  %5548 = vmatpush3.bf16.msra.mxu1 %v5545_v7  ;;  %v4678_v39 = vld [vmem:[%s7368_s11 + $0xf8] sm:$0xff] }
0x1acc   : > { %v5549_v33 = vpack.c.bf16 %v4678_v39, %v4677_v16 }
0x1acd   : > { %v4094_v51 = vmul.f32 %v4089_v57, %v4089_v57  ;;  %v4086_v31 = vmul.f32 %v4082_v1, %v4054_v50 }
0x1ace   : > { %v5928_v49 = vpop.eup %5927  ;;  %5550 = vmatprep.subr.bf16.mxu1 %v5549_v33 }
0x1acf   : > { %4099 = vadd.xlane.f32.xlu1 %v4094_v51  ;;  %v4090_v6 = vmul.f32 %v4086_v31, %v4041_v53  ;;  %v4083_v25 = vadd.f32 1.0, %v5928_v49  ;;  %5552 = vmatpush3.bf16.msra.mxu1 %v5549_v33  ;;  %v4259_v51 = vld [vmem:[%s7370_s13 + $0x8] sm:$0xff]  ;;  %v4261_v31 = vld [vmem:[%s7370_s13 + $0x18] sm:$0xff] }
0x1ad1   : > { %v4095_v52 = vmul.f32 %v4090_v6, %v4090_v6  ;;  %v4087_v32 = vmul.f32 %v4083_v25, %v4055_v62  ;;  %v4262_v62 = vld [vmem:[%s7370_s13 + $0x20] sm:$0xff] }
0x1ad3   : > { %4101 = vadd.xlane.f32.xlu0 %v4095_v52  ;;  %v4091_v14 = vmul.f32 %v4087_v32, %v4047_v20 }
0x1ad5   : > { %v4096_v21 = vmul.f32 %v4091_v14, %v4091_v14 }
0x1ad7   : > { %4103 = vadd.xlane.f32.xlu1 %v4096_v21 }
0x1b58   : > { %v4098_v55 = vpop.xlane.xlu0 %4097 }
0x1b59   : > { %v4105_v26 = vmax.f32 %v4098_v55, 1e-24 }
0x1b5b   : > { %5929 = vrsqrt.f32 %v4105_v26 }
0x1b5c   : > { %v4100_v22 = vpop.xlane.xlu1 %4099 }
0x1b5d   : > { %v4106_v56 = vmax.f32 %v4100_v22, 1e-24 }
0x1b5f   : > { %5931 = vrsqrt.f32 %v4106_v56 }
0x1b60   : > { %v4102_v53 = vpop.xlane.xlu0 %4101 }
0x1b61   : > { %v4107_v5 = vmax.f32 %v4102_v53, 1e-24 }
0x1b63   : > { %5933 = vrsqrt.f32 %v4107_v5 }
0x1b64   : > { %v4104_v47 = vpop.xlane.xlu1 %4103 }
0x1b65   : > { %v5930_v23 = vpop.eup %5929  ;;  %v4108_v9 = vmax.f32 %v4104_v47, 1e-24 }
0x1b66   : > { %v4113_v24 = vmul.f32 %v5930_v23, %v4088_v46 }
0x1b67   : > { %5935 = vrsqrt.f32 %v4108_v9 }
0x1b68   : > { %v4117_v20 = vmul.f32 11.313708, %v4113_v24 }
0x1b69   : > { %v5932_v18 = vpop.eup %5931 }
0x1b6a   : > { %v4114_v58 = vmul.f32 %v5932_v18, %v4089_v57  ;;  %v4125_v35 = vmul.f32 %v4662_v28, %v4117_v20 }
0x1b6c   : > { %v4118_v63 = vmul.f32 11.313708, %v4114_v58  ;;  %5228 = vmatprep.mubr.f32.mxu1 %v4125_v35 }
0x1b6d   : > { %v5934_v40 = vpop.eup %5933 }
0x1b6e   : > { %v4126_v60 = vmul.f32 %v4662_v28, %v4118_v63  ;;  %v4115_v12 = vmul.f32 %v5934_v40, %v4090_v6  ;;  %v4263_v6 = vld [vmem:[%s7370_s13 + $0x28] sm:$0xff] }
0x1b6f   : > { %v5561_v25 = vpack.c.bf16 %v4263_v6, %v4262_v62 }
0x1b70   : > { %5229 = vmatmul.mubr.f32.vlgmr.msra.gmra.mrb[56].mxu1 %v4126_v60  ;;  %v4119_v54 = vmul.f32 11.313708, %v4115_v12 }
0x1b71   : > { %v5936_v38 = vpop.eup %5935 }
0x1b72   : > { %v4127_v2 = vmul.f32 %v4662_v28, %v4119_v54  ;;  %v4116_v34 = vmul.f32 %v5936_v38, %v4091_v14 }
0x1b74   : > { %5231 = vmatprep.mubr.f32.mxu1 %v4127_v2  ;;  %v4120_v43 = vmul.f32 11.313708, %v4116_v34 }
0x1b76   : > { %v4128_v45 = vmul.f32 %v4662_v28, %v4120_v43 }
0x1b78   : > { %5232 = vmatmul.mubr.f32.gmra.mrb[58].mxu1 %v4128_v45 }
0x1c43   : > { %v5230_v0 = vpop.f32.mrb[56].mxu1 }
0x1c44   : > { %v4230_v13 = vadd.f32 %v5230_v0, %v7132_v8  ;;  %v4212_v42 = vpop.f32.mrb[57].mxu1  ;;  %v4258_v8 = vld [vmem:[%s7370_s13] sm:$0xff] }
0x1c46   : > { %v4234_v46 = vmul.f32 %v4230_v13, %v4230_v13 }
0x1c48   : > { %v4236_v48 = vsel %vm654_vm2, %v4234_v46, 0.0 }
0x1c49   : > { %4237 = vadd.xlane.f32.xlu0 %v4236_v48 }
0x1c4b   : > { %v5233_v37 = vpop.f32.mrb[58].mxu1 }
0x1c4c   : > { %v4232_v41 = vadd.f32 %v5233_v37, %v7137_v3  ;;  %v4221_v11 = vpop.f32.mrb[59].mxu1  ;;  %v5553_v3 = vpack.c.bf16 %v4259_v51, %v4258_v8 }
0x1c4d   : > { %v4231_v50 = vadd.f32 %v4221_v11, %v7142_v44  ;;  %v4260_v44 = vld [vmem:[%s7370_s13 + $0x10] sm:$0xff] }
0x1c4e   : > { %4354 = vst.msk [vmem:[#allocation2] sm:$0xff] %vm654_vm2, %v4232_v41  ;;  %4355 = vst.msk [vmem:[#allocation3] sm:$0xff] %vm654_vm2, %v4232_v41  ;;  %5554 = vmatprep.subr.bf16.mxu0 %v5553_v3  ;;  %v5557_v49 = vpack.c.bf16 %v4261_v31, %v4260_v44 }
0x1c4f   : > { %v4235_v57 = vmul.f32 %v4231_v50, %v4231_v50  ;;  %5556 = vmatpush3.bf16.msra.mxu0 %v5553_v3 }
0x1c50   : > { %5558 = vmatprep.subr.bf16.mxu0 %v5557_v49 }
0x1c51   : > { %v4239_v1 = vsel %vm654_vm2, %v4235_v57, 0.0 }
0x1c52   : > { %4240 = vadd.xlane.f32.xlu1 %v4239_v1 }
0x1c53   : > { %5560 = vmatpush3.bf16.msra.mxu0 %v5557_v49 }
0x1c54   : > { %5562 = vmatprep.subr.bf16.mxu0 %v5561_v25 }
0x1c57   : > { %5564 = vmatpush3.bf16.msra.mxu0 %v5561_v25 }
0x1cd6   : > { %v4238_v52 = vpop.xlane.xlu0 %4237 }
0x1cd7   : > { %v4242_v32 = vmax.f32 %v4238_v52, 1e-24 }
0x1cd9   : > { %5937 = vrsqrt.f32 %v4242_v32 }
0x1cdf   : > { %v4241_v14 = vpop.xlane.xlu1 %4240 }
0x1ce0   : > { %v4243_v21 = vmax.f32 %v4241_v14, 1e-24 }
0x1ce2   : > { %5939 = vrsqrt.f32 %v4243_v21 }
0x1ce3   : > { %v5938_v4 = vpop.eup %5937 }
0x1ce4   : > { %v4246_v61 = vmul.f32 %v5938_v4, %v4230_v13 }
0x1ce6   : > { %v4248_v19 = vmul.f32 6.928203, %v4246_v61 }
0x1ce8   : > { %v4256_v59 = vmul.f32 %v4679_v17, %v4248_v19 }
0x1cea   : > { %5246 = vmatprep.mubr.msk.f32.mxu0 %vm654_vm2, %v4256_v59 }
0x1cec   : > { %v5940_v10 = vpop.eup %5939 }
0x1ced   : > { %v4247_v27 = vmul.f32 %v5940_v10, %v4231_v50 }
0x1cef   : > { %v4249_v15 = vmul.f32 6.928203, %v4247_v27 }
0x1cf1   : > { %v4257_v29 = vmul.f32 %v4679_v17, %v4249_v15 }
0x1cf3   : > { %5247 = vmatmul.mubr.msk.f32.vlgmr.msra.gmra.mrb[52].mxu0 %vm654_vm2, %v4257_v29 }
0x1cf4   : > { %5977 = shalt.err (!%p5974_p13)
}
0x1cf5   : > { %s7398_s0 = sld [smem:[#allocation10_spill]] }
0x1cfb   : > { %s5978_s19 = scalar_lea.hbm %s7398_s0, 128 }
0x1cfc   : > { %p5979_p0 = scmp.ne.s32.totalorder %s7398_s0, %s5978_s19  ;;  %p5984_p3 = scmp.lt.u32.totalorder %s5978_s19, %s7398_s0 }
0x1cfe   : > { %p5980_p1 = pnand %p5979_p0, %p7317_p6 }
0x1d00   : > { %p5981_p2 = pneg %p5980_p1 }
0x1d02   : > { %p5986_p4 = pnand %p5984_p3, %p5981_p2 }
0x1d04   : > { %5989 = shalt.err (!%p5986_p4)
}
0x1d05   : > { %5566 = dma.vmem_to_hbm [thread:$0]  (%p7317_p6), %s4378_s14, 128, %s7398_s0, [#allocation4]  }
0x1d06   : > { %s7399_s24 = sld [smem:[#allocation9_spill]] }
0x1d0c   : > { %v4680_v36 = vld [vmem:[%s7399_s24] ss:$0 sm:$0xff] }
0x1dc6   : > { %v5248_v30 = vpop.f32.mrb[52].mxu0 }
0x1dc7   : > { %v4349_v7 = vadd.f32 %v5248_v30, %v4680_v36  ;;  %v4343_v16 = vpop.f32.mrb[53].mxu0 }
0x1dc8   : > { %v4344_v39 = vadd.f32 %v4680_v36, %v4343_v16 }
0x1dc9   : > { %4353 = vst [vmem:[%s6145_s16 + $0x8] sm:$0xff] %v4349_v7 }
0x1dca   : > { %4352 = vst [vmem:[%s6145_s16] sm:$0xff] %v4344_v39 }
0x1dcb   : > { %6003 = dma.done.wait (%p7317_p6), [#allocation4], 128  }
0x1dcc   : > { %6005 = vsyncadd (%p7317_p6), [#allocation4], 4294967168 }
0x1dcd PF: > { %s28_s23 = sadd.s32 1, %s6016_s23   ;;  %s7400_s21 = sld [smem:[#allocation6_spill]] }
0x1dce   : > { %p25_p5 = scmp.ge.s32.totalorder %s28_s23, 4   ;;  %s7401_s22 = sld [smem:[#allocation7_spill]] }
0x1dd0   :  { %27 = sbr.rel (!%p25_p5) target bundleno = 6 (0x6), region = 131 }
0x1dd7   :  { %4402 = vsyncpa [#allocation4], 1 }
0x1dd8   :  { %4404 = vsyncpa [#allocation4 + $0x1], 1 }

</bundles_post_ra>
